<compile_context>
chip_gen: v5e
topology: v5e:2x2
jax: 0.10.0
libtpu: 0.0.40
codegen_flags: <defaults>
</compile_context>

<pallas_src>
import functools
import math

import numpy as np

import jax
import jax.numpy as jnp
from jax import lax
from jax.experimental import pallas as pl
from jax.experimental.pallas import tpu as pltpu


def _gelu_exact(x):
    # PyTorch default GELU (erf form).
    return 0.5 * x * (1.0 + lax.erf(x * (1.0 / math.sqrt(2.0))))


def _group_norm_all(x_cp, gamma, beta, eps=1e-5):
    # GroupNorm(num_groups=1): stats over ALL channels + positions of the
    # sample. x_cp: (C, P); gamma/beta: (C, 1). Single pass (sum + sum-sq).
    n = x_cp.shape[0] * x_cp.shape[1]
    s = jnp.sum(x_cp)
    ss = jnp.sum(x_cp * x_cp)
    mean = s / n
    var = jnp.maximum(ss / n - mean * mean, 0.0)
    return (x_cp - mean) * lax.rsqrt(var + eps) * gamma + beta


def double_conv_kernel(x_ref, mask_ref, w1_ref, g1_ref, b1_ref, w2_ref, g2_ref,
                       b2_ref, out_ref,
                       xpad_ref, h1pad_ref, col1_ref, col2_ref,
                       *, D, H, W, pad, residual):
    # x_ref    : (1, Cin, P)       flattened sample, P = D*H*W on lanes
    # mask_ref : (27, P)           per-tap {0,1} boundary masks (f32)
    # w1_ref   : (Cmid, 27*Cin)    conv1 weights, K ordered as (tap, cin)
    # w2_ref   : (Cout, 27*Cmid)
    # g*/b*    : (C, 1)            GroupNorm affine params
    # out_ref  : (1, Cout, P)
    # xpad_ref / h1pad_ref : (C, P + 2*pad)  halo-padded flat activations
    # col1_ref / col2_ref  : (27*Cin, P) / (27*Cmid, P) im2col scratch
    Cin = x_ref.shape[1]
    Cmid = h1pad_ref.shape[0]
    Cout = out_ref.shape[1]
    HW = H * W
    P = D * HW

    def fill_col(src_ref, col_ref, C):
        # Build the im2col matrix: row block t holds the tap-(kd,kh,kw)
        # shifted + masked activations. Shifts are static lane-offset slices
        # of the padded flat activations; masks kill h/w/d wrap-around reads.
        for t in range(27):
            kd, kh, kw = t // 9, (t // 3) % 3, t % 3
            delta = (kd - 1) * HW + (kh - 1) * W + (kw - 1)
            patch = src_ref[:, pad + delta:pad + delta + P]          # (C, P)
            if (kd, kh, kw) != (1, 1, 1):
                patch = patch * mask_ref[t:t + 1, :]
            col_ref[t * C:(t + 1) * C, :] = patch

    # ---- stage the input into the padded flat scratch -----------------------
    x_val = x_ref[0].astype(jnp.float32)                             # (Cin, P)
    zero_cin = jnp.zeros((Cin, pad), jnp.float32)
    xpad_ref[:, 0:pad] = zero_cin
    xpad_ref[:, pad + P:pad + P + pad] = zero_cin
    xpad_ref[:, pad:pad + P] = x_val

    # ---- conv1: single big-K matmul  (Cmid, 27*Cin) @ (27*Cin, P) -----------
    fill_col(xpad_ref, col1_ref, Cin)
    acc1 = jnp.dot(w1_ref[...], col1_ref[...],
                   preferred_element_type=jnp.float32)               # (Cmid, P)

    # ---- GroupNorm(1, Cmid) + GELU ------------------------------------------
    h1 = _gelu_exact(_group_norm_all(acc1, g1_ref[...], b1_ref[...]))

    # ---- stage the intermediate ---------------------------------------------
    zero_cmid = jnp.zeros((Cmid, pad), jnp.float32)
    h1pad_ref[:, 0:pad] = zero_cmid
    h1pad_ref[:, pad + P:pad + P + pad] = zero_cmid
    h1pad_ref[:, pad:pad + P] = h1

    # ---- conv2: single big-K matmul  (Cout, 27*Cmid) @ (27*Cmid, P) ---------
    fill_col(h1pad_ref, col2_ref, Cmid)
    acc2 = jnp.dot(w2_ref[...], col2_ref[...],
                   preferred_element_type=jnp.float32)               # (Cout, P)

    # ---- GroupNorm(1, Cout) (+ optional residual GELU) ----------------------
    y = _group_norm_all(acc2, g2_ref[...], b2_ref[...])
    if residual:
        # Only valid when Cin == Cout (asserted in the wrapper).
        y = _gelu_exact(x_val + y)

    out_ref[...] = y.reshape(1, Cout, P).astype(out_ref.dtype)


def _boundary_masks(D, H, W):
    """(27, D*H*W) float32 {0,1}: validity of tap (kd,kh,kw) at each position."""
    dd, hh, ww = np.meshgrid(np.arange(D), np.arange(H), np.arange(W),
                             indexing="ij")
    dd, hh, ww = dd.reshape(-1), hh.reshape(-1), ww.reshape(-1)
    masks = np.zeros((27, D * H * W), np.float32)
    for t in range(27):
        kd, kh, kw = t // 9, (t // 3) % 3, t % 3
        od, oh, ow = kd - 1, kh - 1, kw - 1
        ok = ((dd + od >= 0) & (dd + od < D) &
              (hh + oh >= 0) & (hh + oh < H) &
              (ww + ow >= 0) & (ww + ow < W))
        masks[t] = ok.astype(np.float32)
    return jnp.asarray(masks)


def double_conv(x_ncdhw, w1, g1, b1, w2, g2, b2, *, residual=False):
    """x: (N, Cin, D, H, W); w1: (Cmid, Cin, 3,3,3); w2: (Cout, Cmid, 3,3,3)."""
    N, Cin, D, H, W = x_ncdhw.shape
    Cmid = w1.shape[0]
    Cout = w2.shape[0]
    assert w1.shape == (Cmid, Cin, 3, 3, 3), w1.shape
    assert w2.shape == (Cout, Cmid, 3, 3, 3), w2.shape
    if residual:
        assert Cin == Cout, "residual DoubleConv requires in_channels == out_channels"

    P = D * H * W
    # Lane-tile-aligned halo, large enough for the largest flat tap shift.
    pad = ((H * W + W + 1 + 127) // 128) * 128

    x_flat = x_ncdhw.reshape(N, Cin, P)          # free reshape (NCDHW order)
    masks = _boundary_masks(D, H, W)             # (27, P)

    # (Cout, Cin, kd, kh, kw) -> (Cout, 27*Cin), K ordered as (tap, cin).
    w1mat = jnp.transpose(w1, (0, 2, 3, 4, 1)).reshape(Cmid, 27 * Cin)
    w2mat = jnp.transpose(w2, (0, 2, 3, 4, 1)).reshape(Cout, 27 * Cmid)
    g1c, b1c = g1.reshape(Cmid, 1), b1.reshape(Cmid, 1)
    g2c, b2c = g2.reshape(Cout, 1), b2.reshape(Cout, 1)

    kernel = functools.partial(double_conv_kernel, D=D, H=H, W=W, pad=pad,
                               residual=residual)

    out = pl.pallas_call(
        kernel,
        out_shape=jax.ShapeDtypeStruct((N, Cout, P), x_ncdhw.dtype),
        grid_spec=pltpu.PrefetchScalarGridSpec(
            num_scalar_prefetch=0,
            grid=(N,),
            in_specs=[
                pl.BlockSpec((1, Cin, P), lambda n: (n, 0, 0)),
                pl.BlockSpec((27, P), lambda n: (0, 0)),
                pl.BlockSpec((Cmid, 27 * Cin), lambda n: (0, 0)),
                pl.BlockSpec((Cmid, 1), lambda n: (0, 0)),
                pl.BlockSpec((Cmid, 1), lambda n: (0, 0)),
                pl.BlockSpec((Cout, 27 * Cmid), lambda n: (0, 0)),
                pl.BlockSpec((Cout, 1), lambda n: (0, 0)),
                pl.BlockSpec((Cout, 1), lambda n: (0, 0)),
            ],
            out_specs=pl.BlockSpec((1, Cout, P), lambda n: (n, 0, 0)),
            scratch_shapes=[
                pltpu.VMEM((Cin, P + 2 * pad), jnp.float32),
                pltpu.VMEM((Cmid, P + 2 * pad), jnp.float32),
                pltpu.VMEM((27 * Cin, P), jnp.float32),
                pltpu.VMEM((27 * Cmid, P), jnp.float32),
            ],
        ),
        compiler_params=pltpu.CompilerParams(
            dimension_semantics=("parallel",)),
    )(x_flat, masks, w1mat, g1c, b1c, w2mat, g2c, b2c)

    return out.reshape(N, Cout, D, H, W)


def double_conv_ref(x, w1, g1, b1, w2, g2, b2, *, residual=False, eps=1e-5):
    """Pure-JAX reference matching PyTorch DoubleConv.forward (NCDHW)."""
    def conv(a, w):
        return lax.conv_general_dilated(
            a, w, window_strides=(1, 1, 1),
            padding=((1, 1), (1, 1), (1, 1)),
            dimension_numbers=("NCDHW", "OIDHW", "NCDHW"))

    def gn(a, g, b):
        mean = jnp.mean(a, axis=(1, 2, 3, 4), keepdims=True)
        var = jnp.mean((a - mean) ** 2, axis=(1, 2, 3, 4), keepdims=True)
        ah = (a - mean) * lax.rsqrt(var + eps)
        return ah * g.reshape(1, -1, 1, 1, 1) + b.reshape(1, -1, 1, 1, 1)

    h = _gelu_exact(gn(conv(x, w1), g1, b1))
    y = gn(conv(h, w2), g2, b2)
    if residual:
        y = _gelu_exact(x + y)
    return y


if __name__ == "__main__":
    key = jax.random.PRNGKey(0)
    keys = jax.random.split(key, 10)

    # ---- plain DoubleConv ----------------------------------------------------
    N, Cin, Cmid, Cout = 2, 4, 8, 8
    D = H = W = 8

    x = jax.random.normal(keys[0], (N, Cin, D, H, W), jnp.float32)
    w1 = 0.1 * jax.random.normal(keys[1], (Cmid, Cin, 3, 3, 3), jnp.float32)
    w2 = 0.1 * jax.random.normal(keys[2], (Cout, Cmid, 3, 3, 3), jnp.float32)
    g1 = 1.0 + 0.1 * jax.random.normal(keys[3], (Cmid,), jnp.float32)
    b1 = 0.1 * jax.random.normal(keys[4], (Cmid,), jnp.float32)
    g2 = 1.0 + 0.1 * jax.random.normal(keys[5], (Cout,), jnp.float32)
    b2 = 0.1 * jax.random.normal(keys[6], (Cout,), jnp.float32)

    out = jax.block_until_ready(
        double_conv(x, w1, g1, b1, w2, g2, b2, residual=False))
    ref = jax.block_until_ready(
        double_conv_ref(x, w1, g1, b1, w2, g2, b2, residual=False))
    assert out.shape == (N, Cout, D, H, W), out.shape
    err = float(jnp.max(jnp.abs(out - ref)))
    assert jnp.allclose(out, ref, rtol=1e-3, atol=1e-3), err

    # ---- residual variant (requires Cin == Cout) -----------------------------
    Cr = 8
    xr = jax.random.normal(keys[7], (N, Cr, D, H, W), jnp.float32)
    w1r = 0.1 * jax.random.normal(keys[8], (Cr, Cr, 3, 3, 3), jnp.float32)
    w2r = 0.1 * jax.random.normal(keys[9], (Cr, Cr, 3, 3, 3), jnp.float32)

    outr = jax.block_until_ready(
        double_conv(xr, w1r, g1, b1, w2r, g2, b2, residual=True))
    refr = jax.block_until_ready(
        double_conv_ref(xr, w1r, g1, b1, w2r, g2, b2, residual=True))
    errr = float(jnp.max(jnp.abs(outr - refr)))
    assert jnp.allclose(outr, refr, rtol=1e-3, atol=1e-3), errr

    print("KERNEL_OK")
</pallas_src>

<mosaic_0001>
module attributes {stable_mosaic.version = 11 : i64} {
  func.func @double_conv_kernel(%arg0: i32, %arg1: memref<1x4x512xf32, #tpu.memory_space<vmem>>, %arg2: memref<27x512xf32, #tpu.memory_space<vmem>>, %arg3: memref<8x108xf32, #tpu.memory_space<vmem>>, %arg4: memref<8x1xf32, #tpu.memory_space<vmem>>, %arg5: memref<8x1xf32, #tpu.memory_space<vmem>>, %arg6: memref<8x216xf32, #tpu.memory_space<vmem>>, %arg7: memref<8x1xf32, #tpu.memory_space<vmem>>, %arg8: memref<8x1xf32, #tpu.memory_space<vmem>>, %arg9: memref<1x8x512xf32, #tpu.memory_space<vmem>>, %arg10: memref<4x768xf32, #tpu.memory_space<vmem>>, %arg11: memref<8x768xf32, #tpu.memory_space<vmem>>, %arg12: memref<108x512xf32, #tpu.memory_space<vmem>>, %arg13: memref<216x512xf32, #tpu.memory_space<vmem>>) attributes {dimension_semantics = [#tpu.dimension_semantics<parallel>], iteration_bounds = array<i64: 2>, scalar_prefetch = 0 : i64, scratch_operands = 4 : i64, tpu.core_type = #tpu.core_type<tc>, window_params = [{transform_indices = @transform_0, window_bounds = array<i64: 1, 4, 512>}, {pipeline_mode = #tpu.pipeline_mode<synchronous>, transform_indices = @transform_1, window_bounds = array<i64: 27, 512>}, {pipeline_mode = #tpu.pipeline_mode<synchronous>, transform_indices = @transform_2, window_bounds = array<i64: 8, 108>}, {pipeline_mode = #tpu.pipeline_mode<synchronous>, transform_indices = @transform_3, window_bounds = array<i64: 8, 1>}, {pipeline_mode = #tpu.pipeline_mode<synchronous>, transform_indices = @transform_4, window_bounds = array<i64: 8, 1>}, {pipeline_mode = #tpu.pipeline_mode<synchronous>, transform_indices = @transform_5, window_bounds = array<i64: 8, 216>}, {pipeline_mode = #tpu.pipeline_mode<synchronous>, transform_indices = @transform_6, window_bounds = array<i64: 8, 1>}, {pipeline_mode = #tpu.pipeline_mode<synchronous>, transform_indices = @transform_7, window_bounds = array<i64: 8, 1>}, {transform_indices = @transform_8, window_bounds = array<i64: 1, 8, 512>}]} {
    %c0 = arith.constant 0 : index
    %c0_0 = arith.constant 0 : index
    %c0_1 = arith.constant 0 : index
    %0 = vector.load %arg1[%c0, %c0_0, %c0_1] : memref<1x4x512xf32, #tpu.memory_space<vmem>>, vector<1x4x512xf32>
    %1 = vector.shape_cast %0 : vector<1x4x512xf32> to vector<4x512xf32>
    %cst = arith.constant 0.000000e+00 : f32
    %2 = vector.broadcast %cst : f32 to vector<4x128xf32>
    %c0_2 = arith.constant 0 : index
    %c0_3 = arith.constant 0 : index
    %3 = vector.load %arg10[%c0_2, %c0_3] : memref<4x768xf32, #tpu.memory_space<vmem>>, vector<4x128xf32>
    tpu.vector_store %arg10[%c0_2, %c0_3], %2 {strides = array<i32>} : memref<4x768xf32, #tpu.memory_space<vmem>>, vector<4x128xf32>,
    %c0_4 = arith.constant 0 : index
    %c640 = arith.constant 640 : index
    %4 = vector.load %arg10[%c0_4, %c640] : memref<4x768xf32, #tpu.memory_space<vmem>>, vector<4x128xf32>
    tpu.vector_store %arg10[%c0_4, %c640], %2 {strides = array<i32>} : memref<4x768xf32, #tpu.memory_space<vmem>>, vector<4x128xf32>,
    %c0_5 = arith.constant 0 : index
    %c128 = arith.constant 128 : index
    %5 = vector.load %arg10[%c0_5, %c128] : memref<4x768xf32, #tpu.memory_space<vmem>>, vector<4x512xf32>
    tpu.vector_store %arg10[%c0_5, %c128], %1 {strides = array<i32>} : memref<4x768xf32, #tpu.memory_space<vmem>>, vector<4x512xf32>,
    %c0_6 = arith.constant 0 : index
    %c55 = arith.constant 55 : index
    %6 = vector.load %arg10[%c0_6, %c55] : memref<4x768xf32, #tpu.memory_space<vmem>>, vector<4x512xf32>
    %c0_7 = arith.constant 0 : index
    %c0_8 = arith.constant 0 : index
    %7 = vector.load %arg2[%c0_7, %c0_8] : memref<27x512xf32, #tpu.memory_space<vmem>>, vector<1x512xf32>
    %8 = vector.broadcast %7 : vector<1x512xf32> to vector<4x512xf32>
    %9 = arith.mulf %6, %8 : vector<4x512xf32>
    %c0_9 = arith.constant 0 : index
    %c0_10 = arith.constant 0 : index
    %10 = vector.load %arg12[%c0_9, %c0_10] : memref<108x512xf32, #tpu.memory_space<vmem>>, vector<4x512xf32>
    tpu.vector_store %arg12[%c0_9, %c0_10], %9 {strides = array<i32>} : memref<108x512xf32, #tpu.memory_space<vmem>>, vector<4x512xf32>,
    %c0_11 = arith.constant 0 : index
    %c56 = arith.constant 56 : index
    %11 = vector.load %arg10[%c0_11, %c56] : memref<4x768xf32, #tpu.memory_space<vmem>>, vector<4x512xf32>
    %c1 = arith.constant 1 : index
    %c0_12 = arith.constant 0 : index
    %12 = vector.load %arg2[%c1, %c0_12] : memref<27x512xf32, #tpu.memory_space<vmem>>, vector<1x512xf32>
    %13 = vector.broadcast %12 : vector<1x512xf32> to vector<4x512xf32>
    %14 = arith.mulf %11, %13 : vector<4x512xf32>
    %c4 = arith.constant 4 : index
    %c0_13 = arith.constant 0 : index
    %15 = vector.load %arg12[%c4, %c0_13] : memref<108x512xf32, #tpu.memory_space<vmem>>, vector<4x512xf32>
    tpu.vector_store %arg12[%c4, %c0_13], %14 {strides = array<i32>} : memref<108x512xf32, #tpu.memory_space<vmem>>, vector<4x512xf32>,
    %c0_14 = arith.constant 0 : index
    %c57 = arith.constant 57 : index
    %16 = vector.load %arg10[%c0_14, %c57] : memref<4x768xf32, #tpu.memory_space<vmem>>, vector<4x512xf32>
    %c2 = arith.constant 2 : index
    %c0_15 = arith.constant 0 : index
    %17 = vector.load %arg2[%c2, %c0_15] : memref<27x512xf32, #tpu.memory_space<vmem>>, vector<1x512xf32>
    %18 = vector.broadcast %17 : vector<1x512xf32> to vector<4x512xf32>
    %19 = arith.mulf %16, %18 : vector<4x512xf32>
    %c8 = arith.constant 8 : index
    %c0_16 = arith.constant 0 : index
    %20 = vector.load %arg12[%c8, %c0_16] : memref<108x512xf32, #tpu.memory_space<vmem>>, vector<4x512xf32>
    tpu.vector_store %arg12[%c8, %c0_16], %19 {strides = array<i32>} : memref<108x512xf32, #tpu.memory_space<vmem>>, vector<4x512xf32>,
    %c0_17 = arith.constant 0 : index
    %c63 = arith.constant 63 : index
    %21 = vector.load %arg10[%c0_17, %c63] : memref<4x768xf32, #tpu.memory_space<vmem>>, vector<4x512xf32>
    %c3 = arith.constant 3 : index
    %c0_18 = arith.constant 0 : index
    %22 = vector.load %arg2[%c3, %c0_18] : memref<27x512xf32, #tpu.memory_space<vmem>>, vector<1x512xf32>
    %23 = vector.broadcast %22 : vector<1x512xf32> to vector<4x512xf32>
    %24 = arith.mulf %21, %23 : vector<4x512xf32>
    %c12 = arith.constant 12 : index
    %c0_19 = arith.constant 0 : index
    %25 = vector.load %arg12[%c12, %c0_19] : memref<108x512xf32, #tpu.memory_space<vmem>>, vector<4x512xf32>
    tpu.vector_store %arg12[%c12, %c0_19], %24 {strides = array<i32>} : memref<108x512xf32, #tpu.memory_space<vmem>>, vector<4x512xf32>,
    %c0_20 = arith.constant 0 : index
    %c64 = arith.constant 64 : index
    %26 = vector.load %arg10[%c0_20, %c64] : memref<4x768xf32, #tpu.memory_space<vmem>>, vector<4x512xf32>
    %c4_21 = arith.constant 4 : index
    %c0_22 = arith.constant 0 : index
    %27 = vector.load %arg2[%c4_21, %c0_22] : memref<27x512xf32, #tpu.memory_space<vmem>>, vector<1x512xf32>
    %28 = vector.broadcast %27 : vector<1x512xf32> to vector<4x512xf32>
    %29 = arith.mulf %26, %28 : vector<4x512xf32>
    %c16 = arith.constant 16 : index
    %c0_23 = arith.constant 0 : index
    %30 = vector.load %arg12[%c16, %c0_23] : memref<108x512xf32, #tpu.memory_space<vmem>>, vector<4x512xf32>
    tpu.vector_store %arg12[%c16, %c0_23], %29 {strides = array<i32>} : memref<108x512xf32, #tpu.memory_space<vmem>>, vector<4x512xf32>,
    %c0_24 = arith.constant 0 : index
    %c65 = arith.constant 65 : index
    %31 = vector.load %arg10[%c0_24, %c65] : memref<4x768xf32, #tpu.memory_space<vmem>>, vector<4x512xf32>
    %c5 = arith.constant 5 : index
    %c0_25 = arith.constant 0 : index
    %32 = vector.load %arg2[%c5, %c0_25] : memref<27x512xf32, #tpu.memory_space<vmem>>, vector<1x512xf32>
    %33 = vector.broadcast %32 : vector<1x512xf32> to vector<4x512xf32>
    %34 = arith.mulf %31, %33 : vector<4x512xf32>
    %c20 = arith.constant 20 : index
    %c0_26 = arith.constant 0 : index
    %35 = vector.load %arg12[%c20, %c0_26] : memref<108x512xf32, #tpu.memory_space<vmem>>, vector<4x512xf32>
    tpu.vector_store %arg12[%c20, %c0_26], %34 {strides = array<i32>} : memref<108x512xf32, #tpu.memory_space<vmem>>, vector<4x512xf32>,
    %c0_27 = arith.constant 0 : index
    %c71 = arith.constant 71 : index
    %36 = vector.load %arg10[%c0_27, %c71] : memref<4x768xf32, #tpu.memory_space<vmem>>, vector<4x512xf32>
    %c6 = arith.constant 6 : index
    %c0_28 = arith.constant 0 : index
    %37 = vector.load %arg2[%c6, %c0_28] : memref<27x512xf32, #tpu.memory_space<vmem>>, vector<1x512xf32>
    %38 = vector.broadcast %37 : vector<1x512xf32> to vector<4x512xf32>
    %39 = arith.mulf %36, %38 : vector<4x512xf32>
    %c24 = arith.constant 24 : index
    %c0_29 = arith.constant 0 : index
    %40 = vector.load %arg12[%c24, %c0_29] : memref<108x512xf32, #tpu.memory_space<vmem>>, vector<4x512xf32>
    tpu.vector_store %arg12[%c24, %c0_29], %39 {strides = array<i32>} : memref<108x512xf32, #tpu.memory_space<vmem>>, vector<4x512xf32>,
    %c0_30 = arith.constant 0 : index
    %c72 = arith.constant 72 : index
    %41 = vector.load %arg10[%c0_30, %c72] : memref<4x768xf32, #tpu.memory_space<vmem>>, vector<4x512xf32>
    %c7 = arith.constant 7 : index
    %c0_31 = arith.constant 0 : index
    %42 = vector.load %arg2[%c7, %c0_31] : memref<27x512xf32, #tpu.memory_space<vmem>>, vector<1x512xf32>
    %43 = vector.broadcast %42 : vector<1x512xf32> to vector<4x512xf32>
    %44 = arith.mulf %41, %43 : vector<4x512xf32>
    %c28 = arith.constant 28 : index
    %c0_32 = arith.constant 0 : index
    %45 = vector.load %arg12[%c28, %c0_32] : memref<108x512xf32, #tpu.memory_space<vmem>>, vector<4x512xf32>
    tpu.vector_store %arg12[%c28, %c0_32], %44 {strides = array<i32>} : memref<108x512xf32, #tpu.memory_space<vmem>>, vector<4x512xf32>,
    %c0_33 = arith.constant 0 : index
    %c73 = arith.constant 73 : index
    %46 = vector.load %arg10[%c0_33, %c73] : memref<4x768xf32, #tpu.memory_space<vmem>>, vector<4x512xf32>
    %c8_34 = arith.constant 8 : index
    %c0_35 = arith.constant 0 : index
    %47 = vector.load %arg2[%c8_34, %c0_35] : memref<27x512xf32, #tpu.memory_space<vmem>>, vector<1x512xf32>
    %48 = vector.broadcast %47 : vector<1x512xf32> to vector<4x512xf32>
    %49 = arith.mulf %46, %48 : vector<4x512xf32>
    %c32 = arith.constant 32 : index
    %c0_36 = arith.constant 0 : index
    %50 = vector.load %arg12[%c32, %c0_36] : memref<108x512xf32, #tpu.memory_space<vmem>>, vector<4x512xf32>
    tpu.vector_store %arg12[%c32, %c0_36], %49 {strides = array<i32>} : memref<108x512xf32, #tpu.memory_space<vmem>>, vector<4x512xf32>,
    %c0_37 = arith.constant 0 : index
    %c119 = arith.constant 119 : index
    %51 = vector.load %arg10[%c0_37, %c119] : memref<4x768xf32, #tpu.memory_space<vmem>>, vector<4x512xf32>
    %c9 = arith.constant 9 : index
    %c0_38 = arith.constant 0 : index
    %52 = vector.load %arg2[%c9, %c0_38] : memref<27x512xf32, #tpu.memory_space<vmem>>, vector<1x512xf32>
    %53 = vector.broadcast %52 : vector<1x512xf32> to vector<4x512xf32>
    %54 = arith.mulf %51, %53 : vector<4x512xf32>
    %c36 = arith.constant 36 : index
    %c0_39 = arith.constant 0 : index
    %55 = vector.load %arg12[%c36, %c0_39] : memref<108x512xf32, #tpu.memory_space<vmem>>, vector<4x512xf32>
    tpu.vector_store %arg12[%c36, %c0_39], %54 {strides = array<i32>} : memref<108x512xf32, #tpu.memory_space<vmem>>, vector<4x512xf32>,
    %c0_40 = arith.constant 0 : index
    %c120 = arith.constant 120 : index
    %56 = vector.load %arg10[%c0_40, %c120] : memref<4x768xf32, #tpu.memory_space<vmem>>, vector<4x512xf32>
    %c10 = arith.constant 10 : index
    %c0_41 = arith.constant 0 : index
    %57 = vector.load %arg2[%c10, %c0_41] : memref<27x512xf32, #tpu.memory_space<vmem>>, vector<1x512xf32>
    %58 = vector.broadcast %57 : vector<1x512xf32> to vector<4x512xf32>
    %59 = arith.mulf %56, %58 : vector<4x512xf32>
    %c40 = arith.constant 40 : index
    %c0_42 = arith.constant 0 : index
    %60 = vector.load %arg12[%c40, %c0_42] : memref<108x512xf32, #tpu.memory_space<vmem>>, vector<4x512xf32>
    tpu.vector_store %arg12[%c40, %c0_42], %59 {strides = array<i32>} : memref<108x512xf32, #tpu.memory_space<vmem>>, vector<4x512xf32>,
    %c0_43 = arith.constant 0 : index
    %c121 = arith.constant 121 : index
    %61 = vector.load %arg10[%c0_43, %c121] : memref<4x768xf32, #tpu.memory_space<vmem>>, vector<4x512xf32>
    %c11 = arith.constant 11 : index
    %c0_44 = arith.constant 0 : index
    %62 = vector.load %arg2[%c11, %c0_44] : memref<27x512xf32, #tpu.memory_space<vmem>>, vector<1x512xf32>
    %63 = vector.broadcast %62 : vector<1x512xf32> to vector<4x512xf32>
    %64 = arith.mulf %61, %63 : vector<4x512xf32>
    %c44 = arith.constant 44 : index
    %c0_45 = arith.constant 0 : index
    %65 = vector.load %arg12[%c44, %c0_45] : memref<108x512xf32, #tpu.memory_space<vmem>>, vector<4x512xf32>
    tpu.vector_store %arg12[%c44, %c0_45], %64 {strides = array<i32>} : memref<108x512xf32, #tpu.memory_space<vmem>>, vector<4x512xf32>,
    %c0_46 = arith.constant 0 : index
    %c127 = arith.constant 127 : index
    %66 = vector.load %arg10[%c0_46, %c127] : memref<4x768xf32, #tpu.memory_space<vmem>>, vector<4x512xf32>
    %c12_47 = arith.constant 12 : index
    %c0_48 = arith.constant 0 : index
    %67 = vector.load %arg2[%c12_47, %c0_48] : memref<27x512xf32, #tpu.memory_space<vmem>>, vector<1x512xf32>
    %68 = vector.broadcast %67 : vector<1x512xf32> to vector<4x512xf32>
    %69 = arith.mulf %66, %68 : vector<4x512xf32>
    %c48 = arith.constant 48 : index
    %c0_49 = arith.constant 0 : index
    %70 = vector.load %arg12[%c48, %c0_49] : memref<108x512xf32, #tpu.memory_space<vmem>>, vector<4x512xf32>
    tpu.vector_store %arg12[%c48, %c0_49], %69 {strides = array<i32>} : memref<108x512xf32, #tpu.memory_space<vmem>>, vector<4x512xf32>,
    %c0_50 = arith.constant 0 : index
    %c128_51 = arith.constant 128 : index
    %71 = vector.load %arg10[%c0_50, %c128_51] : memref<4x768xf32, #tpu.memory_space<vmem>>, vector<4x512xf32>
    %c52 = arith.constant 52 : index
    %c0_52 = arith.constant 0 : index
    %72 = vector.load %arg12[%c52, %c0_52] : memref<108x512xf32, #tpu.memory_space<vmem>>, vector<4x512xf32>
    tpu.vector_store %arg12[%c52, %c0_52], %71 {strides = array<i32>} : memref<108x512xf32, #tpu.memory_space<vmem>>, vector<4x512xf32>,
    %c0_53 = arith.constant 0 : index
    %c129 = arith.constant 129 : index
    %73 = vector.load %arg10[%c0_53, %c129] : memref<4x768xf32, #tpu.memory_space<vmem>>, vector<4x512xf32>
    %c14 = arith.constant 14 : index
    %c0_54 = arith.constant 0 : index
    %74 = vector.load %arg2[%c14, %c0_54] : memref<27x512xf32, #tpu.memory_space<vmem>>, vector<1x512xf32>
    %75 = vector.broadcast %74 : vector<1x512xf32> to vector<4x512xf32>
    %76 = arith.mulf %73, %75 : vector<4x512xf32>
    %c56_55 = arith.constant 56 : index
    %c0_56 = arith.constant 0 : index
    %77 = vector.load %arg12[%c56_55, %c0_56] : memref<108x512xf32, #tpu.memory_space<vmem>>, vector<4x512xf32>
    tpu.vector_store %arg12[%c56_55, %c0_56], %76 {strides = array<i32>} : memref<108x512xf32, #tpu.memory_space<vmem>>, vector<4x512xf32>,
    %c0_57 = arith.constant 0 : index
    %c135 = arith.constant 135 : index
    %78 = vector.load %arg10[%c0_57, %c135] : memref<4x768xf32, #tpu.memory_space<vmem>>, vector<4x512xf32>
    %c15 = arith.constant 15 : index
    %c0_58 = arith.constant 0 : index
    %79 = vector.load %arg2[%c15, %c0_58] : memref<27x512xf32, #tpu.memory_space<vmem>>, vector<1x512xf32>
    %80 = vector.broadcast %79 : vector<1x512xf32> to vector<4x512xf32>
    %81 = arith.mulf %78, %80 : vector<4x512xf32>
    %c60 = arith.constant 60 : index
    %c0_59 = arith.constant 0 : index
    %82 = vector.load %arg12[%c60, %c0_59] : memref<108x512xf32, #tpu.memory_space<vmem>>, vector<4x512xf32>
    tpu.vector_store %arg12[%c60, %c0_59], %81 {strides = array<i32>} : memref<108x512xf32, #tpu.memory_space<vmem>>, vector<4x512xf32>,
    %c0_60 = arith.constant 0 : index
    %c136 = arith.constant 136 : index
    %83 = vector.load %arg10[%c0_60, %c136] : memref<4x768xf32, #tpu.memory_space<vmem>>, vector<4x512xf32>
    %c16_61 = arith.constant 16 : index
    %c0_62 = arith.constant 0 : index
    %84 = vector.load %arg2[%c16_61, %c0_62] : memref<27x512xf32, #tpu.memory_space<vmem>>, vector<1x512xf32>
    %85 = vector.broadcast %84 : vector<1x512xf32> to vector<4x512xf32>
    %86 = arith.mulf %83, %85 : vector<4x512xf32>
    %c64_63 = arith.constant 64 : index
    %c0_64 = arith.constant 0 : index
    %87 = vector.load %arg12[%c64_63, %c0_64] : memref<108x512xf32, #tpu.memory_space<vmem>>, vector<4x512xf32>
    tpu.vector_store %arg12[%c64_63, %c0_64], %86 {strides = array<i32>} : memref<108x512xf32, #tpu.memory_space<vmem>>, vector<4x512xf32>,
    %c0_65 = arith.constant 0 : index
    %c137 = arith.constant 137 : index
    %88 = vector.load %arg10[%c0_65, %c137] : memref<4x768xf32, #tpu.memory_space<vmem>>, vector<4x512xf32>
    %c17 = arith.constant 17 : index
    %c0_66 = arith.constant 0 : index
    %89 = vector.load %arg2[%c17, %c0_66] : memref<27x512xf32, #tpu.memory_space<vmem>>, vector<1x512xf32>
    %90 = vector.broadcast %89 : vector<1x512xf32> to vector<4x512xf32>
    %91 = arith.mulf %88, %90 : vector<4x512xf32>
    %c68 = arith.constant 68 : index
    %c0_67 = arith.constant 0 : index
    %92 = vector.load %arg12[%c68, %c0_67] : memref<108x512xf32, #tpu.memory_space<vmem>>, vector<4x512xf32>
    tpu.vector_store %arg12[%c68, %c0_67], %91 {strides = array<i32>} : memref<108x512xf32, #tpu.memory_space<vmem>>, vector<4x512xf32>,
    %c0_68 = arith.constant 0 : index
    %c183 = arith.constant 183 : index
    %93 = vector.load %arg10[%c0_68, %c183] : memref<4x768xf32, #tpu.memory_space<vmem>>, vector<4x512xf32>
    %c18 = arith.constant 18 : index
    %c0_69 = arith.constant 0 : index
    %94 = vector.load %arg2[%c18, %c0_69] : memref<27x512xf32, #tpu.memory_space<vmem>>, vector<1x512xf32>
    %95 = vector.broadcast %94 : vector<1x512xf32> to vector<4x512xf32>
    %96 = arith.mulf %93, %95 : vector<4x512xf32>
    %c72_70 = arith.constant 72 : index
    %c0_71 = arith.constant 0 : index
    %97 = vector.load %arg12[%c72_70, %c0_71] : memref<108x512xf32, #tpu.memory_space<vmem>>, vector<4x512xf32>
    tpu.vector_store %arg12[%c72_70, %c0_71], %96 {strides = array<i32>} : memref<108x512xf32, #tpu.memory_space<vmem>>, vector<4x512xf32>,
    %c0_72 = arith.constant 0 : index
    %c184 = arith.constant 184 : index
    %98 = vector.load %arg10[%c0_72, %c184] : memref<4x768xf32, #tpu.memory_space<vmem>>, vector<4x512xf32>
    %c19 = arith.constant 19 : index
    %c0_73 = arith.constant 0 : index
    %99 = vector.load %arg2[%c19, %c0_73] : memref<27x512xf32, #tpu.memory_space<vmem>>, vector<1x512xf32>
    %100 = vector.broadcast %99 : vector<1x512xf32> to vector<4x512xf32>
    %101 = arith.mulf %98, %100 : vector<4x512xf32>
    %c76 = arith.constant 76 : index
    %c0_74 = arith.constant 0 : index
    %102 = vector.load %arg12[%c76, %c0_74] : memref<108x512xf32, #tpu.memory_space<vmem>>, vector<4x512xf32>
    tpu.vector_store %arg12[%c76, %c0_74], %101 {strides = array<i32>} : memref<108x512xf32, #tpu.memory_space<vmem>>, vector<4x512xf32>,
    %c0_75 = arith.constant 0 : index
    %c185 = arith.constant 185 : index
    %103 = vector.load %arg10[%c0_75, %c185] : memref<4x768xf32, #tpu.memory_space<vmem>>, vector<4x512xf32>
    %c20_76 = arith.constant 20 : index
    %c0_77 = arith.constant 0 : index
    %104 = vector.load %arg2[%c20_76, %c0_77] : memref<27x512xf32, #tpu.memory_space<vmem>>, vector<1x512xf32>
    %105 = vector.broadcast %104 : vector<1x512xf32> to vector<4x512xf32>
    %106 = arith.mulf %103, %105 : vector<4x512xf32>
    %c80 = arith.constant 80 : index
    %c0_78 = arith.constant 0 : index
    %107 = vector.load %arg12[%c80, %c0_78] : memref<108x512xf32, #tpu.memory_space<vmem>>, vector<4x512xf32>
    tpu.vector_store %arg12[%c80, %c0_78], %106 {strides = array<i32>} : memref<108x512xf32, #tpu.memory_space<vmem>>, vector<4x512xf32>,
    %c0_79 = arith.constant 0 : index
    %c191 = arith.constant 191 : index
    %108 = vector.load %arg10[%c0_79, %c191] : memref<4x768xf32, #tpu.memory_space<vmem>>, vector<4x512xf32>
    %c21 = arith.constant 21 : index
    %c0_80 = arith.constant 0 : index
    %109 = vector.load %arg2[%c21, %c0_80] : memref<27x512xf32, #tpu.memory_space<vmem>>, vector<1x512xf32>
    %110 = vector.broadcast %109 : vector<1x512xf32> to vector<4x512xf32>
    %111 = arith.mulf %108, %110 : vector<4x512xf32>
    %c84 = arith.constant 84 : index
    %c0_81 = arith.constant 0 : index
    %112 = vector.load %arg12[%c84, %c0_81] : memref<108x512xf32, #tpu.memory_space<vmem>>, vector<4x512xf32>
    tpu.vector_store %arg12[%c84, %c0_81], %111 {strides = array<i32>} : memref<108x512xf32, #tpu.memory_space<vmem>>, vector<4x512xf32>,
    %c0_82 = arith.constant 0 : index
    %c192 = arith.constant 192 : index
    %113 = vector.load %arg10[%c0_82, %c192] : memref<4x768xf32, #tpu.memory_space<vmem>>, vector<4x512xf32>
    %c22 = arith.constant 22 : index
    %c0_83 = arith.constant 0 : index
    %114 = vector.load %arg2[%c22, %c0_83] : memref<27x512xf32, #tpu.memory_space<vmem>>, vector<1x512xf32>
    %115 = vector.broadcast %114 : vector<1x512xf32> to vector<4x512xf32>
    %116 = arith.mulf %113, %115 : vector<4x512xf32>
    %c88 = arith.constant 88 : index
    %c0_84 = arith.constant 0 : index
    %117 = vector.load %arg12[%c88, %c0_84] : memref<108x512xf32, #tpu.memory_space<vmem>>, vector<4x512xf32>
    tpu.vector_store %arg12[%c88, %c0_84], %116 {strides = array<i32>} : memref<108x512xf32, #tpu.memory_space<vmem>>, vector<4x512xf32>,
    %c0_85 = arith.constant 0 : index
    %c193 = arith.constant 193 : index
    %118 = vector.load %arg10[%c0_85, %c193] : memref<4x768xf32, #tpu.memory_space<vmem>>, vector<4x512xf32>
    %c23 = arith.constant 23 : index
    %c0_86 = arith.constant 0 : index
    %119 = vector.load %arg2[%c23, %c0_86] : memref<27x512xf32, #tpu.memory_space<vmem>>, vector<1x512xf32>
    %120 = vector.broadcast %119 : vector<1x512xf32> to vector<4x512xf32>
    %121 = arith.mulf %118, %120 : vector<4x512xf32>
    %c92 = arith.constant 92 : index
    %c0_87 = arith.constant 0 : index
    %122 = vector.load %arg12[%c92, %c0_87] : memref<108x512xf32, #tpu.memory_space<vmem>>, vector<4x512xf32>
    tpu.vector_store %arg12[%c92, %c0_87], %121 {strides = array<i32>} : memref<108x512xf32, #tpu.memory_space<vmem>>, vector<4x512xf32>,
    %c0_88 = arith.constant 0 : index
    %c199 = arith.constant 199 : index
    %123 = vector.load %arg10[%c0_88, %c199] : memref<4x768xf32, #tpu.memory_space<vmem>>, vector<4x512xf32>
    %c24_89 = arith.constant 24 : index
    %c0_90 = arith.constant 0 : index
    %124 = vector.load %arg2[%c24_89, %c0_90] : memref<27x512xf32, #tpu.memory_space<vmem>>, vector<1x512xf32>
    %125 = vector.broadcast %124 : vector<1x512xf32> to vector<4x512xf32>
    %126 = arith.mulf %123, %125 : vector<4x512xf32>
    %c96 = arith.constant 96 : index
    %c0_91 = arith.constant 0 : index
    %127 = vector.load %arg12[%c96, %c0_91] : memref<108x512xf32, #tpu.memory_space<vmem>>, vector<4x512xf32>
    tpu.vector_store %arg12[%c96, %c0_91], %126 {strides = array<i32>} : memref<108x512xf32, #tpu.memory_space<vmem>>, vector<4x512xf32>,
    %c0_92 = arith.constant 0 : index
    %c200 = arith.constant 200 : index
    %128 = vector.load %arg10[%c0_92, %c200] : memref<4x768xf32, #tpu.memory_space<vmem>>, vector<4x512xf32>
    %c25 = arith.constant 25 : index
    %c0_93 = arith.constant 0 : index
    %129 = vector.load %arg2[%c25, %c0_93] : memref<27x512xf32, #tpu.memory_space<vmem>>, vector<1x512xf32>
    %130 = vector.broadcast %129 : vector<1x512xf32> to vector<4x512xf32>
    %131 = arith.mulf %128, %130 : vector<4x512xf32>
    %c100 = arith.constant 100 : index
    %c0_94 = arith.constant 0 : index
    %132 = vector.load %arg12[%c100, %c0_94] : memref<108x512xf32, #tpu.memory_space<vmem>>, vector<4x512xf32>
    tpu.vector_store %arg12[%c100, %c0_94], %131 {strides = array<i32>} : memref<108x512xf32, #tpu.memory_space<vmem>>, vector<4x512xf32>,
    %c0_95 = arith.constant 0 : index
    %c201 = arith.constant 201 : index
    %133 = vector.load %arg10[%c0_95, %c201] : memref<4x768xf32, #tpu.memory_space<vmem>>, vector<4x512xf32>
    %c26 = arith.constant 26 : index
    %c0_96 = arith.constant 0 : index
    %134 = vector.load %arg2[%c26, %c0_96] : memref<27x512xf32, #tpu.memory_space<vmem>>, vector<1x512xf32>
    %135 = vector.broadcast %134 : vector<1x512xf32> to vector<4x512xf32>
    %136 = arith.mulf %133, %135 : vector<4x512xf32>
    %c104 = arith.constant 104 : index
    %c0_97 = arith.constant 0 : index
    %137 = vector.load %arg12[%c104, %c0_97] : memref<108x512xf32, #tpu.memory_space<vmem>>, vector<4x512xf32>
    tpu.vector_store %arg12[%c104, %c0_97], %136 {strides = array<i32>} : memref<108x512xf32, #tpu.memory_space<vmem>>, vector<4x512xf32>,
    %c0_98 = arith.constant 0 : index
    %c0_99 = arith.constant 0 : index
    %138 = vector.load %arg3[%c0_98, %c0_99] : memref<8x108xf32, #tpu.memory_space<vmem>>, vector<8x108xf32>
    %c0_100 = arith.constant 0 : index
    %c0_101 = arith.constant 0 : index
    %139 = vector.load %arg12[%c0_100, %c0_101] : memref<108x512xf32, #tpu.memory_space<vmem>>, vector<108x512xf32>
    %cst_102 = arith.constant dense<0.000000e+00> : vector<8x512xf32>
    %140 = tpu.matmul %138, %139, %cst_102 {dimension_numbers = #tpu.dot_dimension_numbers<[1], [0], [0], [1], [0, 0, 1, 1], [], []>} : vector<8x108xf32>, vector<108x512xf32>, vector<8x512xf32> -> vector<8x512xf32>
    %c0_103 = arith.constant 0 : index
    %c0_104 = arith.constant 0 : index
    %141 = vector.load %arg4[%c0_103, %c0_104] : memref<8x1xf32, #tpu.memory_space<vmem>>, vector<8x1xf32>
    %c0_105 = arith.constant 0 : index
    %c0_106 = arith.constant 0 : index
    %142 = vector.load %arg5[%c0_105, %c0_106] : memref<8x1xf32, #tpu.memory_space<vmem>>, vector<8x1xf32>
    %143 = vector.shape_cast %140 : vector<8x512xf32> to vector<1x8x512xf32>
    %cst_107 = arith.constant dense<0.000000e+00> : vector<1xf32>
    %144 = vector.multi_reduction <add>, %143, %cst_107 [1, 2] : vector<1x8x512xf32> to vector<1xf32>
    %145 = vector.shape_cast %144 : vector<1xf32> to vector<1x1x1xf32>
    %146 = vector.extract %145[0, 0, 0] : f32 from vector<1x1x1xf32>
    %147 = arith.mulf %140, %140 : vector<8x512xf32>
    %148 = vector.shape_cast %147 : vector<8x512xf32> to vector<1x8x512xf32>
    %cst_108 = arith.constant dense<0.000000e+00> : vector<1xf32>
    %149 = vector.multi_reduction <add>, %148, %cst_108 [1, 2] : vector<1x8x512xf32> to vector<1xf32>
    %150 = vector.shape_cast %149 : vector<1xf32> to vector<1x1x1xf32>
    %151 = vector.extract %150[0, 0, 0] : f32 from vector<1x1x1xf32>
    %cst_109 = arith.constant 4.096000e+03 : f32
    %152 = arith.divf %146, %cst_109 : f32
    %cst_110 = arith.constant 4.096000e+03 : f32
    %153 = arith.divf %151, %cst_110 : f32
    %154 = arith.mulf %152, %152 : f32
    %155 = arith.subf %153, %154 : f32
    %cst_111 = arith.constant 0.000000e+00 : f32
    %156 = arith.maximumf %155, %cst_111 : f32
    %157 = vector.broadcast %152 : f32 to vector<8x512xf32>
    %158 = arith.subf %140, %157 : vector<8x512xf32>
    %cst_112 = arith.constant 9.99999974E-6 : f32
    %159 = arith.addf %156, %cst_112 : f32
    %160 = math.rsqrt %159 : f32
    %161 = vector.broadcast %160 : f32 to vector<8x512xf32>
    %162 = arith.mulf %158, %161 : vector<8x512xf32>
    %163 = vector.broadcast %141 : vector<8x1xf32> to vector<8x512xf32>
    %164 = arith.mulf %162, %163 : vector<8x512xf32>
    %165 = vector.broadcast %142 : vector<8x1xf32> to vector<8x512xf32>
    %166 = arith.addf %164, %165 : vector<8x512xf32>
    %cst_113 = arith.constant 5.000000e-01 : f32
    %167 = vector.broadcast %cst_113 : f32 to vector<8x512xf32>
    %168 = arith.mulf %167, %166 : vector<8x512xf32>
    %cst_114 = arith.constant 0.707106769 : f32
    %169 = vector.broadcast %cst_114 : f32 to vector<8x512xf32>
    %170 = arith.mulf %166, %169 : vector<8x512xf32>
    %171 = math.erf %170 : vector<8x512xf32>
    %cst_115 = arith.constant 1.000000e+00 : f32
    %172 = vector.broadcast %cst_115 : f32 to vector<8x512xf32>
    %173 = arith.addf %172, %171 : vector<8x512xf32>
    %174 = arith.mulf %168, %173 : vector<8x512xf32>
    %cst_116 = arith.constant 0.000000e+00 : f32
    %175 = vector.broadcast %cst_116 : f32 to vector<8x128xf32>
    %c0_117 = arith.constant 0 : index
    %c0_118 = arith.constant 0 : index
    %176 = vector.load %arg11[%c0_117, %c0_118] : memref<8x768xf32, #tpu.memory_space<vmem>>, vector<8x128xf32>
    tpu.vector_store %arg11[%c0_117, %c0_118], %175 {strides = array<i32>} : memref<8x768xf32, #tpu.memory_space<vmem>>, vector<8x128xf32>,
    %c0_119 = arith.constant 0 : index
    %c640_120 = arith.constant 640 : index
    %177 = vector.load %arg11[%c0_119, %c640_120] : memref<8x768xf32, #tpu.memory_space<vmem>>, vector<8x128xf32>
    tpu.vector_store %arg11[%c0_119, %c640_120], %175 {strides = array<i32>} : memref<8x768xf32, #tpu.memory_space<vmem>>, vector<8x128xf32>,
    %c0_121 = arith.constant 0 : index
    %c128_122 = arith.constant 128 : index
    %178 = vector.load %arg11[%c0_121, %c128_122] : memref<8x768xf32, #tpu.memory_space<vmem>>, vector<8x512xf32>
    tpu.vector_store %arg11[%c0_121, %c128_122], %174 {strides = array<i32>} : memref<8x768xf32, #tpu.memory_space<vmem>>, vector<8x512xf32>,
    %c0_123 = arith.constant 0 : index
    %c55_124 = arith.constant 55 : index
    %179 = vector.load %arg11[%c0_123, %c55_124] : memref<8x768xf32, #tpu.memory_space<vmem>>, vector<8x512xf32>
    %c0_125 = arith.constant 0 : index
    %c0_126 = arith.constant 0 : index
    %180 = vector.load %arg2[%c0_125, %c0_126] : memref<27x512xf32, #tpu.memory_space<vmem>>, vector<1x512xf32>
    %181 = vector.broadcast %180 : vector<1x512xf32> to vector<8x512xf32>
    %182 = arith.mulf %179, %181 : vector<8x512xf32>
    %c0_127 = arith.constant 0 : index
    %c0_128 = arith.constant 0 : index
    %183 = vector.load %arg13[%c0_127, %c0_128] : memref<216x512xf32, #tpu.memory_space<vmem>>, vector<8x512xf32>
    tpu.vector_store %arg13[%c0_127, %c0_128], %182 {strides = array<i32>} : memref<216x512xf32, #tpu.memory_space<vmem>>, vector<8x512xf32>,
    %c0_129 = arith.constant 0 : index
    %c56_130 = arith.constant 56 : index
    %184 = vector.load %arg11[%c0_129, %c56_130] : memref<8x768xf32, #tpu.memory_space<vmem>>, vector<8x512xf32>
    %c1_131 = arith.constant 1 : index
    %c0_132 = arith.constant 0 : index
    %185 = vector.load %arg2[%c1_131, %c0_132] : memref<27x512xf32, #tpu.memory_space<vmem>>, vector<1x512xf32>
    %186 = vector.broadcast %185 : vector<1x512xf32> to vector<8x512xf32>
    %187 = arith.mulf %184, %186 : vector<8x512xf32>
    %c8_133 = arith.constant 8 : index
    %c0_134 = arith.constant 0 : index
    %188 = vector.load %arg13[%c8_133, %c0_134] : memref<216x512xf32, #tpu.memory_space<vmem>>, vector<8x512xf32>
    tpu.vector_store %arg13[%c8_133, %c0_134], %187 {strides = array<i32>} : memref<216x512xf32, #tpu.memory_space<vmem>>, vector<8x512xf32>,
    %c0_135 = arith.constant 0 : index
    %c57_136 = arith.constant 57 : index
    %189 = vector.load %arg11[%c0_135, %c57_136] : memref<8x768xf32, #tpu.memory_space<vmem>>, vector<8x512xf32>
    %c2_137 = arith.constant 2 : index
    %c0_138 = arith.constant 0 : index
    %190 = vector.load %arg2[%c2_137, %c0_138] : memref<27x512xf32, #tpu.memory_space<vmem>>, vector<1x512xf32>
    %191 = vector.broadcast %190 : vector<1x512xf32> to vector<8x512xf32>
    %192 = arith.mulf %189, %191 : vector<8x512xf32>
    %c16_139 = arith.constant 16 : index
    %c0_140 = arith.constant 0 : index
    %193 = vector.load %arg13[%c16_139, %c0_140] : memref<216x512xf32, #tpu.memory_space<vmem>>, vector<8x512xf32>
    tpu.vector_store %arg13[%c16_139, %c0_140], %192 {strides = array<i32>} : memref<216x512xf32, #tpu.memory_space<vmem>>, vector<8x512xf32>,
    %c0_141 = arith.constant 0 : index
    %c63_142 = arith.constant 63 : index
    %194 = vector.load %arg11[%c0_141, %c63_142] : memref<8x768xf32, #tpu.memory_space<vmem>>, vector<8x512xf32>
    %c3_143 = arith.constant 3 : index
    %c0_144 = arith.constant 0 : index
    %195 = vector.load %arg2[%c3_143, %c0_144] : memref<27x512xf32, #tpu.memory_space<vmem>>, vector<1x512xf32>
    %196 = vector.broadcast %195 : vector<1x512xf32> to vector<8x512xf32>
    %197 = arith.mulf %194, %196 : vector<8x512xf32>
    %c24_145 = arith.constant 24 : index
    %c0_146 = arith.constant 0 : index
    %198 = vector.load %arg13[%c24_145, %c0_146] : memref<216x512xf32, #tpu.memory_space<vmem>>, vector<8x512xf32>
    tpu.vector_store %arg13[%c24_145, %c0_146], %197 {strides = array<i32>} : memref<216x512xf32, #tpu.memory_space<vmem>>, vector<8x512xf32>,
    %c0_147 = arith.constant 0 : index
    %c64_148 = arith.constant 64 : index
    %199 = vector.load %arg11[%c0_147, %c64_148] : memref<8x768xf32, #tpu.memory_space<vmem>>, vector<8x512xf32>
    %c4_149 = arith.constant 4 : index
    %c0_150 = arith.constant 0 : index
    %200 = vector.load %arg2[%c4_149, %c0_150] : memref<27x512xf32, #tpu.memory_space<vmem>>, vector<1x512xf32>
    %201 = vector.broadcast %200 : vector<1x512xf32> to vector<8x512xf32>
    %202 = arith.mulf %199, %201 : vector<8x512xf32>
    %c32_151 = arith.constant 32 : index
    %c0_152 = arith.constant 0 : index
    %203 = vector.load %arg13[%c32_151, %c0_152] : memref<216x512xf32, #tpu.memory_space<vmem>>, vector<8x512xf32>
    tpu.vector_store %arg13[%c32_151, %c0_152], %202 {strides = array<i32>} : memref<216x512xf32, #tpu.memory_space<vmem>>, vector<8x512xf32>,
    %c0_153 = arith.constant 0 : index
    %c65_154 = arith.constant 65 : index
    %204 = vector.load %arg11[%c0_153, %c65_154] : memref<8x768xf32, #tpu.memory_space<vmem>>, vector<8x512xf32>
    %c5_155 = arith.constant 5 : index
    %c0_156 = arith.constant 0 : index
    %205 = vector.load %arg2[%c5_155, %c0_156] : memref<27x512xf32, #tpu.memory_space<vmem>>, vector<1x512xf32>
    %206 = vector.broadcast %205 : vector<1x512xf32> to vector<8x512xf32>
    %207 = arith.mulf %204, %206 : vector<8x512xf32>
    %c40_157 = arith.constant 40 : index
    %c0_158 = arith.constant 0 : index
    %208 = vector.load %arg13[%c40_157, %c0_158] : memref<216x512xf32, #tpu.memory_space<vmem>>, vector<8x512xf32>
    tpu.vector_store %arg13[%c40_157, %c0_158], %207 {strides = array<i32>} : memref<216x512xf32, #tpu.memory_space<vmem>>, vector<8x512xf32>,
    %c0_159 = arith.constant 0 : index
    %c71_160 = arith.constant 71 : index
    %209 = vector.load %arg11[%c0_159, %c71_160] : memref<8x768xf32, #tpu.memory_space<vmem>>, vector<8x512xf32>
    %c6_161 = arith.constant 6 : index
    %c0_162 = arith.constant 0 : index
    %210 = vector.load %arg2[%c6_161, %c0_162] : memref<27x512xf32, #tpu.memory_space<vmem>>, vector<1x512xf32>
    %211 = vector.broadcast %210 : vector<1x512xf32> to vector<8x512xf32>
    %212 = arith.mulf %209, %211 : vector<8x512xf32>
    %c48_163 = arith.constant 48 : index
    %c0_164 = arith.constant 0 : index
    %213 = vector.load %arg13[%c48_163, %c0_164] : memref<216x512xf32, #tpu.memory_space<vmem>>, vector<8x512xf32>
    tpu.vector_store %arg13[%c48_163, %c0_164], %212 {strides = array<i32>} : memref<216x512xf32, #tpu.memory_space<vmem>>, vector<8x512xf32>,
    %c0_165 = arith.constant 0 : index
    %c72_166 = arith.constant 72 : index
    %214 = vector.load %arg11[%c0_165, %c72_166] : memref<8x768xf32, #tpu.memory_space<vmem>>, vector<8x512xf32>
    %c7_167 = arith.constant 7 : index
    %c0_168 = arith.constant 0 : index
    %215 = vector.load %arg2[%c7_167, %c0_168] : memref<27x512xf32, #tpu.memory_space<vmem>>, vector<1x512xf32>
    %216 = vector.broadcast %215 : vector<1x512xf32> to vector<8x512xf32>
    %217 = arith.mulf %214, %216 : vector<8x512xf32>
    %c56_169 = arith.constant 56 : index
    %c0_170 = arith.constant 0 : index
    %218 = vector.load %arg13[%c56_169, %c0_170] : memref<216x512xf32, #tpu.memory_space<vmem>>, vector<8x512xf32>
    tpu.vector_store %arg13[%c56_169, %c0_170], %217 {strides = array<i32>} : memref<216x512xf32, #tpu.memory_space<vmem>>, vector<8x512xf32>,
    %c0_171 = arith.constant 0 : index
    %c73_172 = arith.constant 73 : index
    %219 = vector.load %arg11[%c0_171, %c73_172] : memref<8x768xf32, #tpu.memory_space<vmem>>, vector<8x512xf32>
    %c8_173 = arith.constant 8 : index
    %c0_174 = arith.constant 0 : index
    %220 = vector.load %arg2[%c8_173, %c0_174] : memref<27x512xf32, #tpu.memory_space<vmem>>, vector<1x512xf32>
    %221 = vector.broadcast %220 : vector<1x512xf32> to vector<8x512xf32>
    %222 = arith.mulf %219, %221 : vector<8x512xf32>
    %c64_175 = arith.constant 64 : index
    %c0_176 = arith.constant 0 : index
    %223 = vector.load %arg13[%c64_175, %c0_176] : memref<216x512xf32, #tpu.memory_space<vmem>>, vector<8x512xf32>
    tpu.vector_store %arg13[%c64_175, %c0_176], %222 {strides = array<i32>} : memref<216x512xf32, #tpu.memory_space<vmem>>, vector<8x512xf32>,
    %c0_177 = arith.constant 0 : index
    %c119_178 = arith.constant 119 : index
    %224 = vector.load %arg11[%c0_177, %c119_178] : memref<8x768xf32, #tpu.memory_space<vmem>>, vector<8x512xf32>
    %c9_179 = arith.constant 9 : index
    %c0_180 = arith.constant 0 : index
    %225 = vector.load %arg2[%c9_179, %c0_180] : memref<27x512xf32, #tpu.memory_space<vmem>>, vector<1x512xf32>
    %226 = vector.broadcast %225 : vector<1x512xf32> to vector<8x512xf32>
    %227 = arith.mulf %224, %226 : vector<8x512xf32>
    %c72_181 = arith.constant 72 : index
    %c0_182 = arith.constant 0 : index
    %228 = vector.load %arg13[%c72_181, %c0_182] : memref<216x512xf32, #tpu.memory_space<vmem>>, vector<8x512xf32>
    tpu.vector_store %arg13[%c72_181, %c0_182], %227 {strides = array<i32>} : memref<216x512xf32, #tpu.memory_space<vmem>>, vector<8x512xf32>,
    %c0_183 = arith.constant 0 : index
    %c120_184 = arith.constant 120 : index
    %229 = vector.load %arg11[%c0_183, %c120_184] : memref<8x768xf32, #tpu.memory_space<vmem>>, vector<8x512xf32>
    %c10_185 = arith.constant 10 : index
    %c0_186 = arith.constant 0 : index
    %230 = vector.load %arg2[%c10_185, %c0_186] : memref<27x512xf32, #tpu.memory_space<vmem>>, vector<1x512xf32>
    %231 = vector.broadcast %230 : vector<1x512xf32> to vector<8x512xf32>
    %232 = arith.mulf %229, %231 : vector<8x512xf32>
    %c80_187 = arith.constant 80 : index
    %c0_188 = arith.constant 0 : index
    %233 = vector.load %arg13[%c80_187, %c0_188] : memref<216x512xf32, #tpu.memory_space<vmem>>, vector<8x512xf32>
    tpu.vector_store %arg13[%c80_187, %c0_188], %232 {strides = array<i32>} : memref<216x512xf32, #tpu.memory_space<vmem>>, vector<8x512xf32>,
    %c0_189 = arith.constant 0 : index
    %c121_190 = arith.constant 121 : index
    %234 = vector.load %arg11[%c0_189, %c121_190] : memref<8x768xf32, #tpu.memory_space<vmem>>, vector<8x512xf32>
    %c11_191 = arith.constant 11 : index
    %c0_192 = arith.constant 0 : index
    %235 = vector.load %arg2[%c11_191, %c0_192] : memref<27x512xf32, #tpu.memory_space<vmem>>, vector<1x512xf32>
    %236 = vector.broadcast %235 : vector<1x512xf32> to vector<8x512xf32>
    %237 = arith.mulf %234, %236 : vector<8x512xf32>
    %c88_193 = arith.constant 88 : index
    %c0_194 = arith.constant 0 : index
    %238 = vector.load %arg13[%c88_193, %c0_194] : memref<216x512xf32, #tpu.memory_space<vmem>>, vector<8x512xf32>
    tpu.vector_store %arg13[%c88_193, %c0_194], %237 {strides = array<i32>} : memref<216x512xf32, #tpu.memory_space<vmem>>, vector<8x512xf32>,
    %c0_195 = arith.constant 0 : index
    %c127_196 = arith.constant 127 : index
    %239 = vector.load %arg11[%c0_195, %c127_196] : memref<8x768xf32, #tpu.memory_space<vmem>>, vector<8x512xf32>
    %c12_197 = arith.constant 12 : index
    %c0_198 = arith.constant 0 : index
    %240 = vector.load %arg2[%c12_197, %c0_198] : memref<27x512xf32, #tpu.memory_space<vmem>>, vector<1x512xf32>
    %241 = vector.broadcast %240 : vector<1x512xf32> to vector<8x512xf32>
    %242 = arith.mulf %239, %241 : vector<8x512xf32>
    %c96_199 = arith.constant 96 : index
    %c0_200 = arith.constant 0 : index
    %243 = vector.load %arg13[%c96_199, %c0_200] : memref<216x512xf32, #tpu.memory_space<vmem>>, vector<8x512xf32>
    tpu.vector_store %arg13[%c96_199, %c0_200], %242 {strides = array<i32>} : memref<216x512xf32, #tpu.memory_space<vmem>>, vector<8x512xf32>,
    %c0_201 = arith.constant 0 : index
    %c128_202 = arith.constant 128 : index
    %244 = vector.load %arg11[%c0_201, %c128_202] : memref<8x768xf32, #tpu.memory_space<vmem>>, vector<8x512xf32>
    %c104_203 = arith.constant 104 : index
    %c0_204 = arith.constant 0 : index
    %245 = vector.load %arg13[%c104_203, %c0_204] : memref<216x512xf32, #tpu.memory_space<vmem>>, vector<8x512xf32>
    tpu.vector_store %arg13[%c104_203, %c0_204], %244 {strides = array<i32>} : memref<216x512xf32, #tpu.memory_space<vmem>>, vector<8x512xf32>,
    %c0_205 = arith.constant 0 : index
    %c129_206 = arith.constant 129 : index
    %246 = vector.load %arg11[%c0_205, %c129_206] : memref<8x768xf32, #tpu.memory_space<vmem>>, vector<8x512xf32>
    %c14_207 = arith.constant 14 : index
    %c0_208 = arith.constant 0 : index
    %247 = vector.load %arg2[%c14_207, %c0_208] : memref<27x512xf32, #tpu.memory_space<vmem>>, vector<1x512xf32>
    %248 = vector.broadcast %247 : vector<1x512xf32> to vector<8x512xf32>
    %249 = arith.mulf %246, %248 : vector<8x512xf32>
    %c112 = arith.constant 112 : index
    %c0_209 = arith.constant 0 : index
    %250 = vector.load %arg13[%c112, %c0_209] : memref<216x512xf32, #tpu.memory_space<vmem>>, vector<8x512xf32>
    tpu.vector_store %arg13[%c112, %c0_209], %249 {strides = array<i32>} : memref<216x512xf32, #tpu.memory_space<vmem>>, vector<8x512xf32>,
    %c0_210 = arith.constant 0 : index
    %c135_211 = arith.constant 135 : index
    %251 = vector.load %arg11[%c0_210, %c135_211] : memref<8x768xf32, #tpu.memory_space<vmem>>, vector<8x512xf32>
    %c15_212 = arith.constant 15 : index
    %c0_213 = arith.constant 0 : index
    %252 = vector.load %arg2[%c15_212, %c0_213] : memref<27x512xf32, #tpu.memory_space<vmem>>, vector<1x512xf32>
    %253 = vector.broadcast %252 : vector<1x512xf32> to vector<8x512xf32>
    %254 = arith.mulf %251, %253 : vector<8x512xf32>
    %c120_214 = arith.constant 120 : index
    %c0_215 = arith.constant 0 : index
    %255 = vector.load %arg13[%c120_214, %c0_215] : memref<216x512xf32, #tpu.memory_space<vmem>>, vector<8x512xf32>
    tpu.vector_store %arg13[%c120_214, %c0_215], %254 {strides = array<i32>} : memref<216x512xf32, #tpu.memory_space<vmem>>, vector<8x512xf32>,
    %c0_216 = arith.constant 0 : index
    %c136_217 = arith.constant 136 : index
    %256 = vector.load %arg11[%c0_216, %c136_217] : memref<8x768xf32, #tpu.memory_space<vmem>>, vector<8x512xf32>
    %c16_218 = arith.constant 16 : index
    %c0_219 = arith.constant 0 : index
    %257 = vector.load %arg2[%c16_218, %c0_219] : memref<27x512xf32, #tpu.memory_space<vmem>>, vector<1x512xf32>
    %258 = vector.broadcast %257 : vector<1x512xf32> to vector<8x512xf32>
    %259 = arith.mulf %256, %258 : vector<8x512xf32>
    %c128_220 = arith.constant 128 : index
    %c0_221 = arith.constant 0 : index
    %260 = vector.load %arg13[%c128_220, %c0_221] : memref<216x512xf32, #tpu.memory_space<vmem>>, vector<8x512xf32>
    tpu.vector_store %arg13[%c128_220, %c0_221], %259 {strides = array<i32>} : memref<216x512xf32, #tpu.memory_space<vmem>>, vector<8x512xf32>,
    %c0_222 = arith.constant 0 : index
    %c137_223 = arith.constant 137 : index
    %261 = vector.load %arg11[%c0_222, %c137_223] : memref<8x768xf32, #tpu.memory_space<vmem>>, vector<8x512xf32>
    %c17_224 = arith.constant 17 : index
    %c0_225 = arith.constant 0 : index
    %262 = vector.load %arg2[%c17_224, %c0_225] : memref<27x512xf32, #tpu.memory_space<vmem>>, vector<1x512xf32>
    %263 = vector.broadcast %262 : vector<1x512xf32> to vector<8x512xf32>
    %264 = arith.mulf %261, %263 : vector<8x512xf32>
    %c136_226 = arith.constant 136 : index
    %c0_227 = arith.constant 0 : index
    %265 = vector.load %arg13[%c136_226, %c0_227] : memref<216x512xf32, #tpu.memory_space<vmem>>, vector<8x512xf32>
    tpu.vector_store %arg13[%c136_226, %c0_227], %264 {strides = array<i32>} : memref<216x512xf32, #tpu.memory_space<vmem>>, vector<8x512xf32>,
    %c0_228 = arith.constant 0 : index
    %c183_229 = arith.constant 183 : index
    %266 = vector.load %arg11[%c0_228, %c183_229] : memref<8x768xf32, #tpu.memory_space<vmem>>, vector<8x512xf32>
    %c18_230 = arith.constant 18 : index
    %c0_231 = arith.constant 0 : index
    %267 = vector.load %arg2[%c18_230, %c0_231] : memref<27x512xf32, #tpu.memory_space<vmem>>, vector<1x512xf32>
    %268 = vector.broadcast %267 : vector<1x512xf32> to vector<8x512xf32>
    %269 = arith.mulf %266, %268 : vector<8x512xf32>
    %c144 = arith.constant 144 : index
    %c0_232 = arith.constant 0 : index
    %270 = vector.load %arg13[%c144, %c0_232] : memref<216x512xf32, #tpu.memory_space<vmem>>, vector<8x512xf32>
    tpu.vector_store %arg13[%c144, %c0_232], %269 {strides = array<i32>} : memref<216x512xf32, #tpu.memory_space<vmem>>, vector<8x512xf32>,
    %c0_233 = arith.constant 0 : index
    %c184_234 = arith.constant 184 : index
    %271 = vector.load %arg11[%c0_233, %c184_234] : memref<8x768xf32, #tpu.memory_space<vmem>>, vector<8x512xf32>
    %c19_235 = arith.constant 19 : index
    %c0_236 = arith.constant 0 : index
    %272 = vector.load %arg2[%c19_235, %c0_236] : memref<27x512xf32, #tpu.memory_space<vmem>>, vector<1x512xf32>
    %273 = vector.broadcast %272 : vector<1x512xf32> to vector<8x512xf32>
    %274 = arith.mulf %271, %273 : vector<8x512xf32>
    %c152 = arith.constant 152 : index
    %c0_237 = arith.constant 0 : index
    %275 = vector.load %arg13[%c152, %c0_237] : memref<216x512xf32, #tpu.memory_space<vmem>>, vector<8x512xf32>
    tpu.vector_store %arg13[%c152, %c0_237], %274 {strides = array<i32>} : memref<216x512xf32, #tpu.memory_space<vmem>>, vector<8x512xf32>,
    %c0_238 = arith.constant 0 : index
    %c185_239 = arith.constant 185 : index
    %276 = vector.load %arg11[%c0_238, %c185_239] : memref<8x768xf32, #tpu.memory_space<vmem>>, vector<8x512xf32>
    %c20_240 = arith.constant 20 : index
    %c0_241 = arith.constant 0 : index
    %277 = vector.load %arg2[%c20_240, %c0_241] : memref<27x512xf32, #tpu.memory_space<vmem>>, vector<1x512xf32>
    %278 = vector.broadcast %277 : vector<1x512xf32> to vector<8x512xf32>
    %279 = arith.mulf %276, %278 : vector<8x512xf32>
    %c160 = arith.constant 160 : index
    %c0_242 = arith.constant 0 : index
    %280 = vector.load %arg13[%c160, %c0_242] : memref<216x512xf32, #tpu.memory_space<vmem>>, vector<8x512xf32>
    tpu.vector_store %arg13[%c160, %c0_242], %279 {strides = array<i32>} : memref<216x512xf32, #tpu.memory_space<vmem>>, vector<8x512xf32>,
    %c0_243 = arith.constant 0 : index
    %c191_244 = arith.constant 191 : index
    %281 = vector.load %arg11[%c0_243, %c191_244] : memref<8x768xf32, #tpu.memory_space<vmem>>, vector<8x512xf32>
    %c21_245 = arith.constant 21 : index
    %c0_246 = arith.constant 0 : index
    %282 = vector.load %arg2[%c21_245, %c0_246] : memref<27x512xf32, #tpu.memory_space<vmem>>, vector<1x512xf32>
    %283 = vector.broadcast %282 : vector<1x512xf32> to vector<8x512xf32>
    %284 = arith.mulf %281, %283 : vector<8x512xf32>
    %c168 = arith.constant 168 : index
    %c0_247 = arith.constant 0 : index
    %285 = vector.load %arg13[%c168, %c0_247] : memref<216x512xf32, #tpu.memory_space<vmem>>, vector<8x512xf32>
    tpu.vector_store %arg13[%c168, %c0_247], %284 {strides = array<i32>} : memref<216x512xf32, #tpu.memory_space<vmem>>, vector<8x512xf32>,
    %c0_248 = arith.constant 0 : index
    %c192_249 = arith.constant 192 : index
    %286 = vector.load %arg11[%c0_248, %c192_249] : memref<8x768xf32, #tpu.memory_space<vmem>>, vector<8x512xf32>
    %c22_250 = arith.constant 22 : index
    %c0_251 = arith.constant 0 : index
    %287 = vector.load %arg2[%c22_250, %c0_251] : memref<27x512xf32, #tpu.memory_space<vmem>>, vector<1x512xf32>
    %288 = vector.broadcast %287 : vector<1x512xf32> to vector<8x512xf32>
    %289 = arith.mulf %286, %288 : vector<8x512xf32>
    %c176 = arith.constant 176 : index
    %c0_252 = arith.constant 0 : index
    %290 = vector.load %arg13[%c176, %c0_252] : memref<216x512xf32, #tpu.memory_space<vmem>>, vector<8x512xf32>
    tpu.vector_store %arg13[%c176, %c0_252], %289 {strides = array<i32>} : memref<216x512xf32, #tpu.memory_space<vmem>>, vector<8x512xf32>,
    %c0_253 = arith.constant 0 : index
    %c193_254 = arith.constant 193 : index
    %291 = vector.load %arg11[%c0_253, %c193_254] : memref<8x768xf32, #tpu.memory_space<vmem>>, vector<8x512xf32>
    %c23_255 = arith.constant 23 : index
    %c0_256 = arith.constant 0 : index
    %292 = vector.load %arg2[%c23_255, %c0_256] : memref<27x512xf32, #tpu.memory_space<vmem>>, vector<1x512xf32>
    %293 = vector.broadcast %292 : vector<1x512xf32> to vector<8x512xf32>
    %294 = arith.mulf %291, %293 : vector<8x512xf32>
    %c184_257 = arith.constant 184 : index
    %c0_258 = arith.constant 0 : index
    %295 = vector.load %arg13[%c184_257, %c0_258] : memref<216x512xf32, #tpu.memory_space<vmem>>, vector<8x512xf32>
    tpu.vector_store %arg13[%c184_257, %c0_258], %294 {strides = array<i32>} : memref<216x512xf32, #tpu.memory_space<vmem>>, vector<8x512xf32>,
    %c0_259 = arith.constant 0 : index
    %c199_260 = arith.constant 199 : index
    %296 = vector.load %arg11[%c0_259, %c199_260] : memref<8x768xf32, #tpu.memory_space<vmem>>, vector<8x512xf32>
    %c24_261 = arith.constant 24 : index
    %c0_262 = arith.constant 0 : index
    %297 = vector.load %arg2[%c24_261, %c0_262] : memref<27x512xf32, #tpu.memory_space<vmem>>, vector<1x512xf32>
    %298 = vector.broadcast %297 : vector<1x512xf32> to vector<8x512xf32>
    %299 = arith.mulf %296, %298 : vector<8x512xf32>
    %c192_263 = arith.constant 192 : index
    %c0_264 = arith.constant 0 : index
    %300 = vector.load %arg13[%c192_263, %c0_264] : memref<216x512xf32, #tpu.memory_space<vmem>>, vector<8x512xf32>
    tpu.vector_store %arg13[%c192_263, %c0_264], %299 {strides = array<i32>} : memref<216x512xf32, #tpu.memory_space<vmem>>, vector<8x512xf32>,
    %c0_265 = arith.constant 0 : index
    %c200_266 = arith.constant 200 : index
    %301 = vector.load %arg11[%c0_265, %c200_266] : memref<8x768xf32, #tpu.memory_space<vmem>>, vector<8x512xf32>
    %c25_267 = arith.constant 25 : index
    %c0_268 = arith.constant 0 : index
    %302 = vector.load %arg2[%c25_267, %c0_268] : memref<27x512xf32, #tpu.memory_space<vmem>>, vector<1x512xf32>
    %303 = vector.broadcast %302 : vector<1x512xf32> to vector<8x512xf32>
    %304 = arith.mulf %301, %303 : vector<8x512xf32>
    %c200_269 = arith.constant 200 : index
    %c0_270 = arith.constant 0 : index
    %305 = vector.load %arg13[%c200_269, %c0_270] : memref<216x512xf32, #tpu.memory_space<vmem>>, vector<8x512xf32>
    tpu.vector_store %arg13[%c200_269, %c0_270], %304 {strides = array<i32>} : memref<216x512xf32, #tpu.memory_space<vmem>>, vector<8x512xf32>,
    %c0_271 = arith.constant 0 : index
    %c201_272 = arith.constant 201 : index
    %306 = vector.load %arg11[%c0_271, %c201_272] : memref<8x768xf32, #tpu.memory_space<vmem>>, vector<8x512xf32>
    %c26_273 = arith.constant 26 : index
    %c0_274 = arith.constant 0 : index
    %307 = vector.load %arg2[%c26_273, %c0_274] : memref<27x512xf32, #tpu.memory_space<vmem>>, vector<1x512xf32>
    %308 = vector.broadcast %307 : vector<1x512xf32> to vector<8x512xf32>
    %309 = arith.mulf %306, %308 : vector<8x512xf32>
    %c208 = arith.constant 208 : index
    %c0_275 = arith.constant 0 : index
    %310 = vector.load %arg13[%c208, %c0_275] : memref<216x512xf32, #tpu.memory_space<vmem>>, vector<8x512xf32>
    tpu.vector_store %arg13[%c208, %c0_275], %309 {strides = array<i32>} : memref<216x512xf32, #tpu.memory_space<vmem>>, vector<8x512xf32>,
    %c0_276 = arith.constant 0 : index
    %c0_277 = arith.constant 0 : index
    %311 = vector.load %arg6[%c0_276, %c0_277] : memref<8x216xf32, #tpu.memory_space<vmem>>, vector<8x216xf32>
    %c0_278 = arith.constant 0 : index
    %c0_279 = arith.constant 0 : index
    %312 = vector.load %arg13[%c0_278, %c0_279] : memref<216x512xf32, #tpu.memory_space<vmem>>, vector<216x512xf32>
    %cst_280 = arith.constant dense<0.000000e+00> : vector<8x512xf32>
    %313 = tpu.matmul %311, %312, %cst_280 {dimension_numbers = #tpu.dot_dimension_numbers<[1], [0], [0], [1], [0, 0, 1, 1], [], []>} : vector<8x216xf32>, vector<216x512xf32>, vector<8x512xf32> -> vector<8x512xf32>
    %c0_281 = arith.constant 0 : index
    %c0_282 = arith.constant 0 : index
    %314 = vector.load %arg7[%c0_281, %c0_282] : memref<8x1xf32, #tpu.memory_space<vmem>>, vector<8x1xf32>
    %c0_283 = arith.constant 0 : index
    %c0_284 = arith.constant 0 : index
    %315 = vector.load %arg8[%c0_283, %c0_284] : memref<8x1xf32, #tpu.memory_space<vmem>>, vector<8x1xf32>
    %316 = vector.shape_cast %313 : vector<8x512xf32> to vector<1x8x512xf32>
    %cst_285 = arith.constant dense<0.000000e+00> : vector<1xf32>
    %317 = vector.multi_reduction <add>, %316, %cst_285 [1, 2] : vector<1x8x512xf32> to vector<1xf32>
    %318 = vector.shape_cast %317 : vector<1xf32> to vector<1x1x1xf32>
    %319 = vector.extract %318[0, 0, 0] : f32 from vector<1x1x1xf32>
    %320 = arith.mulf %313, %313 : vector<8x512xf32>
    %321 = vector.shape_cast %320 : vector<8x512xf32> to vector<1x8x512xf32>
    %cst_286 = arith.constant dense<0.000000e+00> : vector<1xf32>
    %322 = vector.multi_reduction <add>, %321, %cst_286 [1, 2] : vector<1x8x512xf32> to vector<1xf32>
    %323 = vector.shape_cast %322 : vector<1xf32> to vector<1x1x1xf32>
    %324 = vector.extract %323[0, 0, 0] : f32 from vector<1x1x1xf32>
    %cst_287 = arith.constant 4.096000e+03 : f32
    %325 = arith.divf %319, %cst_287 : f32
    %cst_288 = arith.constant 4.096000e+03 : f32
    %326 = arith.divf %324, %cst_288 : f32
    %327 = arith.mulf %325, %325 : f32
    %328 = arith.subf %326, %327 : f32
    %cst_289 = arith.constant 0.000000e+00 : f32
    %329 = arith.maximumf %328, %cst_289 : f32
    %330 = vector.broadcast %325 : f32 to vector<8x512xf32>
    %331 = arith.subf %313, %330 : vector<8x512xf32>
    %cst_290 = arith.constant 9.99999974E-6 : f32
    %332 = arith.addf %329, %cst_290 : f32
    %333 = math.rsqrt %332 : f32
    %334 = vector.broadcast %333 : f32 to vector<8x512xf32>
    %335 = arith.mulf %331, %334 : vector<8x512xf32>
    %336 = vector.broadcast %314 : vector<8x1xf32> to vector<8x512xf32>
    %337 = arith.mulf %335, %336 : vector<8x512xf32>
    %338 = vector.broadcast %315 : vector<8x1xf32> to vector<8x512xf32>
    %339 = arith.addf %337, %338 : vector<8x512xf32>
    %340 = vector.shape_cast %339 : vector<8x512xf32> to vector<1x8x512xf32>
    %c0_291 = arith.constant 0 : index
    %c0_292 = arith.constant 0 : index
    %c0_293 = arith.constant 0 : index
    %341 = vector.load %arg9[%c0_291, %c0_292, %c0_293] : memref<1x8x512xf32, #tpu.memory_space<vmem>>, vector<1x8x512xf32>
    tpu.vector_store %arg9[%c0_291, %c0_292, %c0_293], %340 {strides = array<i32>} : memref<1x8x512xf32, #tpu.memory_space<vmem>>, vector<1x8x512xf32>,
    return
  }
  func.func @transform_0(%arg0: i32) -> (i32, i32, i32) {
    %c0_i32 = arith.constant 0 : i32
    %c0_i32_0 = arith.constant 0 : i32
    %c0_i32_1 = arith.constant 0 : i32
    return %arg0, %c0_i32, %c0_i32_0 : i32, i32, i32
  }
  func.func @transform_1(%arg0: i32) -> (i32, i32) {
    %c0_i32 = arith.constant 0 : i32
    %c0_i32_0 = arith.constant 0 : i32
    %c0_i32_1 = arith.constant 0 : i32
    return %c0_i32, %c0_i32_0 : i32, i32
  }
  func.func @transform_2(%arg0: i32) -> (i32, i32) {
    %c0_i32 = arith.constant 0 : i32
    %c0_i32_0 = arith.constant 0 : i32
    %c0_i32_1 = arith.constant 0 : i32
    return %c0_i32, %c0_i32_0 : i32, i32
  }
  func.func @transform_3(%arg0: i32) -> (i32, i32) {
    %c0_i32 = arith.constant 0 : i32
    %c0_i32_0 = arith.constant 0 : i32
    %c0_i32_1 = arith.constant 0 : i32
    return %c0_i32, %c0_i32_0 : i32, i32
  }
  func.func @transform_4(%arg0: i32) -> (i32, i32) {
    %c0_i32 = arith.constant 0 : i32
    %c0_i32_0 = arith.constant 0 : i32
    %c0_i32_1 = arith.constant 0 : i32
    return %c0_i32, %c0_i32_0 : i32, i32
  }
  func.func @transform_5(%arg0: i32) -> (i32, i32) {
    %c0_i32 = arith.constant 0 : i32
    %c0_i32_0 = arith.constant 0 : i32
    %c0_i32_1 = arith.constant 0 : i32
    return %c0_i32, %c0_i32_0 : i32, i32
  }
  func.func @transform_6(%arg0: i32) -> (i32, i32) {
    %c0_i32 = arith.constant 0 : i32
    %c0_i32_0 = arith.constant 0 : i32
    %c0_i32_1 = arith.constant 0 : i32
    return %c0_i32, %c0_i32_0 : i32, i32
  }
  func.func @transform_7(%arg0: i32) -> (i32, i32) {
    %c0_i32 = arith.constant 0 : i32
    %c0_i32_0 = arith.constant 0 : i32
    %c0_i32_1 = arith.constant 0 : i32
    return %c0_i32, %c0_i32_0 : i32, i32
  }
  func.func @transform_8(%arg0: i32) -> (i32, i32, i32) {
    %c0_i32 = arith.constant 0 : i32
    %c0_i32_0 = arith.constant 0 : i32
    %c0_i32_1 = arith.constant 0 : i32
    return %arg0, %c0_i32, %c0_i32_0 : i32, i32, i32
  }
}

</mosaic_0001>

<bundles_post_ra>
// kernel: tpu_custom_call.1
= control target key start
LH: loop header
LB: loop body
LE: loop exit
PB: predicated region body
PF: predicated region fallthrough
CT: control target
= control target key end

     0   :  { %s7727_s0 = inlined_call_operand.hbm [shape: f32[2,4,512], index: 0, kind: input, shape index: {}]   ;;  %s7728_s1 = inlined_call_operand.hbm [shape: f32[27,512], index: 1, kind: input, shape index: {}]   ;;  %s7729_s2 = inlined_call_operand.vmem [shape: f32[8,108], index: 2, kind: input, shape index: {}]   ;;  %s7730_s3 = inlined_call_operand.vmem [shape: f32[8,1], index: 3, kind: input, shape index: {}]   ;;  %s7731_s4 = inlined_call_operand.vmem [shape: f32[8,1], index: 4, kind: input, shape index: {}]   ;;  %s7732_s5 = inlined_call_operand.vmem [shape: f32[8,216], index: 5, kind: input, shape index: {}]   ;;  %s7733_s6 = inlined_call_operand.vmem [shape: f32[8,1], index: 6, kind: input, shape index: {}]   ;;  %s7734_s7 = inlined_call_operand.vmem [shape: f32[8,1], index: 7, kind: input, shape index: {}]   ;;  %s7735_s8 = inlined_call_operand.hbm [shape: f32[2,8,512], index: 8, kind: output, shape index: {}]  }
   0x1   :  { %7870 = sst [smem:[#allocation93_spill]] %s7727_s0 }
   0x2   :  { %7871 = sst [smem:[#allocation94_spill]] %s7728_s1 }
   0x3   :  { %7872 = sst [smem:[#allocation95_spill]] %s7729_s2 }
   0x4   :  { %7873 = sst [smem:[#allocation96_spill]] %s7730_s3 }
   0x5   :  { %7874 = sst [smem:[#allocation97_spill]] %s7731_s4 }
   0x6   :  { %13 = vsyncpa [#allocation7], 0 }
   0x7   :  { %15 = vsyncpa [#allocation7 + $0x1], 0 }
   0x8   :  { %16 = vsyncpa [#allocation10], 0 }
   0x9   :  { %17 = vsyncpa [#allocation8], 0 }
   0xa   :  { %19 = vsyncpa [#allocation8 + $0x1], 0  ;;  %s5101_s27 = smov 0   ;;  %s5103_s28 = smov 0  }
   0xb   :  { %s5105_s29 = smov 0   ;;  %s5107_s30 = smov 0  }
   0xc LB: > { %7875 = sst [smem:[#allocation15_spill]] %s5022_s28  ;;  %s5125_s12 = sadd.s32 4294967295, %s5030_s30   ;;  %s5030_s30 = sphi %s5107_s30, %s8238_s30   ;;  %s5026_s29 = sphi %s5105_s29, %s8241_s29   ;;  %s5022_s28 = sphi %s5103_s28, %s8240_s28   ;;  %s5018_s27 = sphi %s5101_s27, %s8239_s27  }
   0xd   : > { %7876 = sst [smem:[#allocation16_spill]] %s5026_s29  ;;  %p4497_p0 = scmp.ge.s32.totalorder %s5030_s30, 1 }
   0xe   : > { %7877 = sst [smem:[#allocation17_spill]] %s5030_s30  ;;  %p46_p1 = scmp.eq.s32.totalorder %s5125_s12, 0 }
   0xf   : > { %s7878_s1 = sld [smem:[#allocation94_spill]]  ;;  %p229_p2 = scmp.lt.s32.totalorder %s5030_s30, 3 }
  0x10   : > { %s5032_s14 = smov [#allocation9]   ;;  %s5033_s16 = smov 512  }
  0x11   : > { %p5130_p3 = pnand %p4497_p0, %p229_p2  ;;  %s242_s15 = sshll.u32 %s5032_s14, 4  ;;  %s243_s15 = int_to_ptr.vmem [resolvable:$true] %s242_s15 }
  0x12   : > { %s5034_s17 = smov 32   ;;  %s4496_s18 = sadd.s32 4294967294, %s5030_s30  }
  0x13   : > { %p4552_p4 = pneg %p5130_p3  ;;  %s5141_s19 = sadd.s32 1, %s5030_s30  }
  0x14   : > { %7880 = sst [smem:[#allocation18_spill]] %s5141_s19  ;;  %s32_s20 = sadd.s32 1, %s5026_s29 }
  0x15   : > { %s240_s11 = sshll.u32 %s7878_s1, 4  ;;  %p4553_p6 = pnand %p4552_p4, %p46_p1  ;;  %s241_s11 = int_to_ptr.hbm [resolvable:$true] %s240_s11 }
  0x16   : > { %s29_s21 = ssub.s32 %s5030_s30, %s5141_s19  ;;  %p39_p7 = scmp.ne.s32.totalorder %s5026_s29, %s5022_s28 }
  0x17   : > { %4555 = dma.hbm_to_vmem [thread:$0]  (!%p4553_p6), %s241_s11, 2048, %s243_s15, [#allocation10], %s5033_s16, %s5033_s16, %s5034_s17  }
  0x18   : > { %p30_p8 = scmp.eq.s32.totalorder %s29_s21, 0  ;;  %p40_p9 = scmp.eq.s32.totalorder %s5030_s30, 0 }
  0x19   : > { %p45_p10 = scmp.ne.s32.totalorder %s5022_s28, %s5018_s27  ;;  %p216_p11 = scmp.eq.s32.totalorder %s5125_s12, 1 }
  0x1a   : > { %s5153_s22 = scalar_select %p30_p8, %s5026_s29, %s32_s20  }
  0x1b   : > { %p5157_p12 = por %p46_p1, %p45_p10  ;;  %p5161_p13 = por %p216_p11, %p39_p7 }
  0x1c   : > { %7881 = sst [smem:[#allocation19_spill]] %s5153_s22  ;;  %p222_p0 = scmp.eq.s32.totalorder %s4496_s18, 1 }
  0x1d   : > { %p41_p2 = por %p40_p9, %p39_p7  ;;  %s274_s25 = sand.u32 1, %s5026_s29  }
  0x1e   : > { %p5166_p4 = por %p222_p0, %p45_p10  ;;  %p4565_p6 = scmp.lt.s32.totalorder %s5030_s30, 2 }
  0x1f   : > { %s4500_s9 = sshll.u32 %s274_s25, 4  ;;  %s4528_s10 = sshll.u32 %s5030_s30, 4 }
  0x20   : > { %s7885_s0 = sld [smem:[#allocation93_spill]]  ;;  %s278_s17 = scalar_lea.vmem [#allocation6], %s4500_s9 }
  0x21   : > { %s287_s20 = sshll.u32 %s278_s17, 4  ;;  %p5175_p8 = pnand %p4565_p6, %p41_p2  ;;  %s288_s20 = int_to_ptr.vmem [resolvable:$true] %s287_s20 }
  0x22   : > { %s275_s21 = scalar_lea.sflag [#allocation7], %s274_s25 }
  0x23   : > { %p4934_p9 = pneg %p5175_p8 }
  0x26   : > { %s283_s15 = scalar_lea.hbm %s7885_s0, %s4528_s10  ;;  %s4937_s9 = scalar_lea.hbm %s7885_s0, 32 }
  0x27   : > { %s285_s16 = sshll.u32 %s283_s15, 4  ;;  %s286_s16 = int_to_ptr.hbm [resolvable:$true] %s285_s16 }
  0x28   : > { %s4930_s1 = sshra.s32 %s286_s16, 4  ;;  %s4931_s1 = int_to_ptr.hbm [resolvable:$true] %s4930_s1 }
  0x29   : > { %s4932_s22 = scalar_lea.hbm %s4931_s1, 16  ;;  %p4938_p0 = scmp.lt.s32.totalorder %s4931_s1, %s7885_s0 }
  0x2a   : > { %p4933_p7 = scmp.ne.s32.totalorder %s4931_s1, %s4932_s22  ;;  %p4939_p2 = scmp.lt.s32.totalorder %s4937_s9, %s4932_s22 }
  0x2c   : > { %p4935_p10 = pnand %p4934_p9, %p4933_p7  ;;  %p4940_p6 = por %p4939_p2, %p4938_p0 }
  0x2e   : > { %p4936_p11 = pneg %p4935_p10 }
  0x30   : > { %p4941_p5 = pnand %p4940_p6, %p4936_p11 }
  0x32   : > { %4944 = shalt.err (!%p4941_p5)
}
  0x33   : > { %4559 = dma.hbm_to_vmem [thread:$0]  (!%p5175_p8), %s286_s16, 256, %s288_s20, %s275_s21  }
  0x34   : > { %296 = sbr.rel (%p5130_p3) target bundleno = 2632 (0xa48), region = 52 }
  0x39   : > { %s5192_s25 = sand.u32 1, %s5022_s28  }
  0x3a   : > { %s4504_s17 = sshll.u32 %s5192_s25, 4  ;;  %s299_s10 = scalar_lea.sflag [#allocation7], %s5192_s25 }
  0x3b   : > { %s5196_s11 = scalar_lea.vmem [#allocation6], %s4504_s17 }
  0x3c   : > { %5005 = dma.done.wait (%p5157_p12), %s299_s10, 256  }
  0x3d   : > { %5007 = vsyncadd (%p5157_p12), %s299_s10, 4294967040 }
  0x3e   : > { %5009 = dma.done.wait (%p46_p1), [#allocation10], 2048  }
  0x3f   : > { %5011 = vsyncadd (%p46_p1), [#allocation10], 4294965248  ;;  %v350_v0 = vld [vmem:[#allocation9] ss:$8 sm:$0xf]  ;;  %vm358_vm0 = vcmask 1043456  }
  0x40   : > { %v417_v1 = vld [vmem:[#allocation9 + $0x1] ss:$8 sm:$0xf]  ;;  %v352_v2 = vperm.slane %v350_v0, 0  ;;  %v353_v3 = vperm.slane %v350_v0, 1  ;;  %v355_v8 = vperm.slane %v350_v0, 3 }
  0x41   : > { %v419_v4 = vperm.slane %v417_v1, 0  ;;  %v420_v5 = vperm.slane %v417_v1, 1  ;;  %v422_v9 = vperm.slane %v417_v1, 3  ;;  %v550_v12 = vld [vmem:[#allocation9 + $0x3] ss:$8 sm:$0xf] }
  0x42   : > { %v356_v6 = vrot.slane %v353_v3, 4  ;;  %v421_v13 = vperm.slane %v417_v1, 2  ;;  %s7763_s1 = smov 55   ;;  %s7792_s13 = smov 56   ;;  %v354_v14 = vperm.slane %v350_v0, 2  ;;  %v555_v15 = vperm.slane %v550_v12, 3 }
  0x43   : > { %v423_v7 = vrot.slane %v420_v5, 4  ;;  %v357_v16 = vrot.slane %v355_v8, 4  ;;  %v484_v17 = vld [vmem:[#allocation9 + $0x2] ss:$8 sm:$0xf]  ;;  %v554_v18 = vperm.slane %v550_v12, 2 }
  0x44   : > { %v359_v10 = vsel %vm358_vm0, %v352_v2, %v356_v6  ;;  %v424_v19 = vrot.slane %v422_v9, 4  ;;  %v557_v20 = vrot.slane %v555_v15, 4  ;;  %v617_v21 = vld [vmem:[#allocation9 + $0x4] ss:$8 sm:$0xf]  ;;  %v487_v22 = vperm.slane %v484_v17, 1 }
  0x45   : > { %v425_v11 = vsel %vm358_vm0, %v419_v4, %v423_v7  ;;  %361 = vrot.lane.b32.xlu0 %v359_v10, %s7763_s1  ;;  %v489_v24 = vperm.slane %v484_v17, 3  ;;  %v486_v25 = vperm.slane %v484_v17, 0  ;;  %v360_v26 = vsel %vm358_vm0, %v354_v14, %v357_v16  ;;  %s7788_s22 = smov 63   ;;  %v747_v36 = vld [vmem:[#allocation9 + $0x6] ss:$8 sm:$0xf] }
  0x46   : > { %427 = vrot.lane.b32.xlu1 %v425_v11, %s7792_s13  ;;  %v426_v23 = vsel %vm358_vm0, %v421_v13, %v424_v19  ;;  %v559_v27 = vsel %vm358_vm0, %v554_v18, %v557_v20  ;;  %v620_v28 = vperm.slane %v617_v21, 1  ;;  %v490_v29 = vrot.slane %v487_v22, 4  ;;  %s7781_s23 = smov 57   ;;  %s7779_s16 = smov 64  }
  0x47   : > { %429 = vrot.lane.b32.xlu2 %v426_v23, %s7792_s13  ;;  %v488_v30 = vperm.slane %v484_v17, 2  ;;  %v491_v31 = vrot.slane %v489_v24, 4  ;;  %v619_v32 = vperm.slane %v617_v21, 0  ;;  %v622_v35 = vperm.slane %v617_v21, 3  ;;  %s7740_s20 = smov 71   ;;  %s7790_s18 = smov 65  }
  0x48   : > { %v623_v33 = vrot.slane %v620_v28, 4  ;;  %v492_v34 = vsel %vm358_vm0, %v486_v25, %v490_v29  ;;  %v553_v38 = vperm.slane %v550_v12, 1  ;;  %v752_v40 = vperm.slane %v747_v36, 3  ;;  %v682_v45 = vld [vmem:[#allocation9 + $0x5] ss:$8 sm:$0xf] }
  0x49   : > { %v493_v37 = vsel %vm358_vm0, %v488_v30, %v491_v31  ;;  %v621_v41 = vperm.slane %v617_v21, 2  ;;  %v624_v42 = vrot.slane %v622_v35, 4  ;;  %v552_v43 = vperm.slane %v550_v12, 0  ;;  %v811_v50 = vld [vmem:[#allocation9 + $0x7] ss:$8 sm:$0xf] }
  0x4a   : > { %v625_v39 = vsel %vm358_vm0, %v619_v32, %v623_v33  ;;  %v556_v44 = vrot.slane %v553_v38, 4  ;;  %v751_v46 = vperm.slane %v747_v36, 2  ;;  %v754_v47 = vrot.slane %v752_v40, 4  ;;  %v940_v63 = vld [vmem:[#allocation9 + $0x21] ss:$8 sm:$0xf] }
  0x4b   : > { %v626_v48 = vsel %vm358_vm0, %v621_v41, %v624_v42  ;;  %v685_v49 = vperm.slane %v682_v45, 1  ;;  %v687_v52 = vperm.slane %v682_v45, 3  ;;  %v814_v54 = vperm.slane %v811_v50, 1  ;;  %s7738_s21 = smov 72   ;;  %s7777_s9 = smov 119  }
  0x4c   : > { %v558_v51 = vsel %vm358_vm0, %v552_v43, %v556_v44  ;;  %v756_v53 = vsel %vm358_vm0, %v751_v46, %v754_v47  ;;  %v684_v55 = vperm.slane %v682_v45, 0  ;;  %v686_v57 = vperm.slane %v682_v45, 2  ;;  %v876_v8 = vld [vmem:[#allocation9 + $0x20] ss:$8 sm:$0xf]  ;;  %s7736_s14 = smov 73  }
  0x4d   : > { %363 = vrot.lane.b32.xlu0 %v360_v26, %s7763_s1  ;;  %v688_v56 = vrot.slane %v685_v49, 4  ;;  %v689_v58 = vrot.slane %v687_v52, 4  ;;  %v813_v59 = vperm.slane %v811_v50, 0  ;;  %v817_v60 = vrot.slane %v814_v54, 4  ;;  %s7761_s15 = smov 120   ;;  %s7755_s17 = smov 127  }
  0x4e   : > { %562 = vrot.lane.b32.xlu1 %v559_v27, %s7788_s22  ;;  %v816_v62 = vperm.slane %v811_v50, 3  ;;  %v750_v1 = vperm.slane %v747_v36, 1  ;;  %v945_v3 = vperm.slane %v940_v63, 3  ;;  %v815_v4 = vperm.slane %v811_v50, 2  ;;  %s7748_s10 = smov 121   ;;  %v341_v46 = vld [vmem:[%s5196_s11] sm:$0xff] }
  0x4f   : > { %494 = vrot.lane.b32.xlu2 %v492_v34, %s7781_s23  ;;  %v690_v61 = vsel %vm358_vm0, %v684_v55, %v688_v56  ;;  %v691_v0 = vsel %vm358_vm0, %v686_v57, %v689_v58  ;;  %v819_v2 = vsel %vm358_vm0, %v813_v59, %v817_v60  ;;  %v749_v6 = vperm.slane %v747_v36, 0  ;;  %v1007_v13 = vld [vmem:[#allocation9 + $0x22] ss:$8 sm:$0xf]  ;;  %345 = vst [vmem:[#allocation2 + $0x4] sm:$0xff] %v341_v46  ;;  %s7900_s3 = sld [smem:[#allocation96_spill]] }
  0x50   : > { %v818_v5 = vrot.slane %v816_v62, 4  ;;  %v753_v7 = vrot.slane %v750_v1, 4  ;;  %v944_v9 = vperm.slane %v940_v63, 2  ;;  %v947_v10 = vrot.slane %v945_v3, 4  ;;  %s7901_s4 = sld [smem:[#allocation97_spill]]  ;;  %s5055_s29 = smov 0.0  }
  0x51   : > { %v879_v12 = vperm.slane %v876_v8, 1  ;;  %v881_v15 = vperm.slane %v876_v8, 3  ;;  %v1010_v17 = vperm.slane %v1007_v13, 1  ;;  %v878_v18 = vperm.slane %v876_v8, 0  ;;  %s7902_s2 = sld [smem:[#allocation95_spill]]  ;;  %s7962_s19 = smov 57  }
  0x52   : > { %v820_v11 = vsel %vm358_vm0, %v815_v4, %v818_v5  ;;  %v755_v14 = vsel %vm358_vm0, %v749_v6, %v753_v7  ;;  %v949_v16 = vsel %vm358_vm0, %v944_v9, %v947_v10  ;;  %v880_v20 = vperm.slane %v876_v8, 2  ;;  %v1140_v26 = vld [vmem:[#allocation9 + $0x24] ss:$8 sm:$0xf] }
  0x53   : > { %v882_v19 = vrot.slane %v879_v12, 4  ;;  %v883_v21 = vrot.slane %v881_v15, 4  ;;  %v1009_v22 = vperm.slane %v1007_v13, 0  ;;  %v1013_v23 = vrot.slane %v1010_v17, 4 }
  0x54   : > { %v5044_v25 = vmov 0.0   ;;  %v943_v28 = vperm.slane %v940_v63, 1  ;;  %v1145_v30 = vperm.slane %v1140_v26, 3  ;;  %v942_v31 = vperm.slane %v940_v63, 0 }
  0x55   : > { %496 = vrot.lane.b32.xlu0 %v493_v37, %s7781_s23  ;;  %v884_v24 = vsel %vm358_vm0, %v878_v18, %v882_v19  ;;  %343 = vst [vmem:[#allocation2] sm:$0xf] %v5044_v25  ;;  %v885_v27 = vsel %vm358_vm0, %v880_v20, %v883_v21  ;;  %v1015_v29 = vsel %vm358_vm0, %v1009_v22, %v1013_v23  ;;  %v1144_v33 = vperm.slane %v1140_v26, 2  ;;  %v1073_v35 = vld [vmem:[#allocation9 + $0x23] ss:$8 sm:$0xf] }
  0x56   : > { %627 = vrot.lane.b32.xlu1 %v625_v39, %s7779_s16  ;;  %344 = vst [vmem:[#allocation2 + $0x14] sm:$0xf] %v5044_v25  ;;  %v946_v32 = vrot.slane %v943_v28, 4  ;;  %v1147_v34 = vrot.slane %v1145_v30, 4  ;;  %v1078_v37 = vperm.slane %v1073_v35, 3  ;;  %v1077_v39 = vperm.slane %v1073_v35, 2 }
  0x57   : > { %629 = vrot.lane.b32.xlu2 %v626_v48, %s7779_s16  ;;  %v1143_v42 = vperm.slane %v1140_v26, 1  ;;  %v1142_v43 = vperm.slane %v1140_v26, 0  ;;  %v1012_v47 = vperm.slane %v1007_v13, 3  ;;  %v1011_v48 = vperm.slane %v1007_v13, 2 }
  0x58   : > { %v948_v36 = vsel %vm358_vm0, %v942_v31, %v946_v32  ;;  %v1149_v38 = vsel %vm358_vm0, %v1144_v33, %v1147_v34  ;;  %v1080_v40 = vrot.slane %v1078_v37, 4  ;;  %v1076_v52 = vperm.slane %v1073_v35, 1 }
  0x59   : > { %v1146_v44 = vrot.slane %v1143_v42, 4  ;;  %v1014_v49 = vrot.slane %v1012_v47, 4  ;;  %vm367_vm1 = vcmask 449536   ;;  %vm433_vm2 = vcmask 457728  }
  0x5a   : > { %v1082_v41 = vsel %vm358_vm0, %v1077_v39, %v1080_v40  ;;  %v1079_v54 = vrot.slane %v1076_v52, 4  ;;  %vm500_vm3 = vcmask 465920   ;;  %vm566_vm4 = vcmask 515072  }
  0x5b   : > { %v1148_v45 = vsel %vm358_vm0, %v1142_v43, %v1146_v44  ;;  %v1016_v50 = vsel %vm358_vm0, %v1011_v48, %v1014_v49  ;;  %vm7850_vm5 = vcmask 523264   ;;  %vm7846_vm6 = vcmask 531456  }
  0x5c   : > { %v5260_v58 = vld [vmem:[#allocation2] sm:$0xff]  ;;  %vm7849_vm7 = vcmask 580608   ;;  %vm7742_vm8 = vcmask 588800   ;;  %vm7743_vm9 = vcmask 596992   ;;  %vm7754_vm10 = vcmask 973824  }
  0x5d   : > { %560 = vrot.lane.b32.xlu0 %v558_v51, %s7788_s22  ;;  %v342_v51 = vld [vmem:[%s5196_s11 + $0x8] sm:$0xff]  ;;  %vm7753_vm11 = vcmask 982016   ;;  %vm7752_vm12 = vcmask 990208   ;;  %vm7750_vm13 = vcmask 1039360   ;;  %s7746_s11 = smov 9   ;;  %vm990_vm14 = vcmask 72704  }
  0x5e   : > { %759 = vrot.lane.b32.xlu1 %v756_v53, %s7740_s20  ;;  %346 = vst [vmem:[#allocation2 + $0xc] sm:$0xff] %v342_v51  ;;  %v1075_v53 = vperm.slane %v1073_v35, 0  ;;  %vm1056_vm15 = vcmask 64512  }
  0x5f   : > { %692 = vrot.lane.b32.xlu2 %v690_v61, %s7790_s18 }
  0x60   : > { %v1081_v55 = vsel %vm358_vm0, %v1075_v53, %v1079_v54 }
  0x65   : > { %694 = vrot.lane.b32.xlu0 %v691_v0, %s7790_s18  ;;  %v5266_v5 = vld [vmem:[#allocation2 + $0x8] sm:$0xff]  ;;  %v415_v17 = vld [vmem:[#allocation2 + $0x10] sm:$0xf] }
  0x66   : > { %821 = vrot.lane.b32.xlu1 %v819_v2, %s7738_s21  ;;  %v349_v2 = vld [vmem:[#allocation2 + $0x10] sm:$0xf] }
  0x67   : > { %823 = vrot.lane.b32.xlu2 %v820_v11, %s7738_s21  ;;  %v482_v35 = vld [vmem:[#allocation2 + $0x10] sm:$0xf] }
  0x68   : > { %v548_v51 = vld [vmem:[#allocation2 + $0x10] sm:$0xf] }
  0x6d   : > { %757 = vrot.lane.b32.xlu0 %v755_v14, %s7740_s20 }
  0x6e   : > { %952 = vrot.lane.b32.xlu1 %v949_v16, %s7777_s9 }
  0x6f   : > { %886 = vrot.lane.b32.xlu2 %v884_v24, %s7736_s14 }
  0x75   : > { %888 = vrot.lane.b32.xlu0 %v885_v27, %s7736_s14 }
  0x76   : > { %1017 = vrot.lane.b32.xlu1 %v1015_v29, %s7761_s15 }
  0x77   : > { %1019 = vrot.lane.b32.xlu2 %v1016_v50, %s7761_s15 }
  0x7d   : > { %950 = vrot.lane.b32.xlu0 %v948_v36, %s7777_s9 }
  0x7e   : > { %1152 = vrot.lane.b32.xlu1 %v1149_v38, %s7755_s17 }
  0x7f   : > { %1083 = vrot.lane.b32.xlu2 %v1081_v55, %s7748_s10 }
  0x85   : > { %1085 = vrot.lane.b32.xlu0 %v1082_v41, %s7748_s10 }
  0x8d   : > { %1150 = vrot.lane.b32.xlu0 %v1148_v45, %s7755_s17 }
  0xa1   : > { %v430_v60 = vpop.permute.xlu2 %429 }
  0xa2   : > { %v432_v7 = vrot.slane %v430_v60, 4 }
  0xa4   : > { %v442_v21 = vmul.f32 %v432_v7, %v415_v17  ;;  %v680_v17 = vld [vmem:[#allocation2 + $0x10] sm:$0xf] }
  0xa9   : > { %v495_v8 = vpop.permute.xlu2 %494 }
  0xaa   : > { %v498_v14 = vrot.slane %v495_v8, 4 }
  0xac   : > { %v501_v20 = vsel %vm500_vm3, %v498_v14, %v495_v8 }
  0xad   : > { %v507_v24 = vmul.f32 %v501_v20, %v5260_v58 }
  0xb1   : > { %v630_v38 = vpop.permute.xlu2 %629 }
  0xb2   : > { %v632_v50 = vrot.slane %v630_v38, 4 }
  0xb7   : > { %v362_v56 = vpop.permute.xlu0 %361 }
  0xb8   : > { %v428_v57 = vpop.permute.xlu1 %427  ;;  %v365_v59 = vrot.slane %v362_v56, 4 }
  0xb9   : > { %v431_v62 = vrot.slane %v428_v57, 4  ;;  %v693_v55 = vpop.permute.xlu2 %692 }
  0xba   : > { %v368_v61 = vsel %vm367_vm1, %v365_v59, %v362_v56 }
  0xbb   : > { %v374_v63 = vmul.f32 %v368_v61, %v5260_v58  ;;  %v434_v0 = vsel %vm433_vm2, %v431_v62, %v428_v57  ;;  %v435_v15 = vsel %vm358_vm0, %v431_v62, %v432_v7 }
  0xbc   : > { %v440_v4 = vmul.f32 %v434_v0, %v5260_v58  ;;  %v436_v19 = vsel %vm433_vm2, %v435_v15, %v430_v60 }
  0xbd   : > { %380 = vst [vmem:[#allocation1] ss:$2 sm:$0xff] %v374_v63  ;;  %v441_v23 = vmul.f32 %v436_v19, %v5266_v5  ;;  %v696_v63 = vrot.slane %v693_v55, 4 }
  0xbf   : > { %v364_v1 = vpop.permute.xlu0 %363  ;;  %v698_v7 = vsel %vm7846_vm6, %v696_v63, %v693_v55 }
  0xc0   : > { %v366_v3 = vrot.slane %v364_v1, 4  ;;  %v563_v22 = vpop.permute.xlu1 %562 }
  0xc1   : > { %v565_v34 = vrot.slane %v563_v22, 4 }
  0xc2   : > { %v369_v6 = vsel %vm358_vm0, %v365_v59, %v366_v3  ;;  %v376_v10 = vmul.f32 %v366_v3, %v349_v2 }
  0xc3   : > { %v370_v9 = vsel %vm367_vm1, %v369_v6, %v364_v1  ;;  %v575_v60 = vmul.f32 %v565_v34, %v548_v51 }
  0xc4   : > { %v385_v11 = vld.sshfl [vmem:[#allocation1] sm:$0xff pattern:$0x75316420]  ;;  %v386_v12 = vld.sshfl [vmem:[#allocation1 + $0x8] sm:$0xff pattern:$0x75316420]  ;;  %v375_v13 = vmul.f32 %v370_v9, %v5266_v5 }
  0xc5   : > { %447 = vst [vmem:[#allocation1 + $0x1] ss:$2 sm:$0xff] %v440_v4  ;;  %390 = vrot.lane.b32.xlu1 %v385_v11, %s7736_s14  ;;  %v615_v4 = vld [vmem:[#allocation2 + $0x10] sm:$0xf] }
  0xc6   : > { %382 = vst [vmem:[#allocation1 + $0x10] ss:$2 sm:$0xff] %v375_v13 }
  0xc7   : > { %384 = vst [vmem:[#allocation1 + $0x20] ss:$2 sm:$0xff] %v376_v10  ;;  %v497_v16 = vpop.permute.xlu0 %496 }
  0xc8   : > { %v499_v18 = vrot.slane %v497_v16, 4  ;;  %v628_v39 = vpop.permute.xlu1 %627 }
  0xc9   : > { %v631_v46 = vrot.slane %v628_v39, 4 }
  0xca   : > { %v502_v25 = vsel %vm358_vm0, %v498_v14, %v499_v18  ;;  %v509_v40 = vmul.f32 %v499_v18, %v482_v35  ;;  %v704_v14 = vmul.f32 %v698_v7, %v5260_v58 }
  0xcb   : > { %v503_v31 = vsel %vm500_vm3, %v502_v25, %v497_v16  ;;  %v634_v53 = vsel %vm7850_vm5, %v631_v46, %v628_v39  ;;  %v635_v54 = vsel %vm358_vm0, %v631_v46, %v632_v50 }
  0xcc   : > { %v452_v26 = vld.sshfl [vmem:[#allocation1] sm:$0xff pattern:$0x75316420]  ;;  %v453_v30 = vld.sshfl [vmem:[#allocation1 + $0x8] sm:$0xff pattern:$0x75316420]  ;;  %v508_v36 = vmul.f32 %v503_v31, %v5266_v5  ;;  %v640_v61 = vmul.f32 %v634_v53, %v5260_v58  ;;  %v636_v62 = vsel %vm7850_vm5, %v635_v54, %v630_v38 }
  0xcd   : > { %v387_v27 = vld.sshfl [vmem:[#allocation1 + $0x10] sm:$0xff pattern:$0x75316420]  ;;  %v388_v28 = vld.sshfl [vmem:[#allocation1 + $0x18] sm:$0xff pattern:$0x75316420]  ;;  %392 = vrot.lane.b32.xlu1 %v386_v12, %s7736_s14  ;;  %v641_v6 = vmul.f32 %v636_v62, %v5266_v5  ;;  %v642_v12 = vmul.f32 %v632_v50, %v615_v4 }
  0xce   : > { %v389_v29 = vld.sshfl [vmem:[#allocation1 + $0x20] sm:$0xff pattern:$0x75316420]  ;;  %449 = vst [vmem:[#allocation1 + $0x11] ss:$2 sm:$0xff] %v441_v23  ;;  %394 = vrot.lane.b32.xlu2 %v387_v27, %s7736_s14 }
  0xcf   : > { %451 = vst [vmem:[#allocation1 + $0x21] ss:$2 sm:$0xff] %v442_v21  ;;  %398 = vrot.lane.b32.xlu0 %v389_v29, %s7736_s14  ;;  %v561_v32 = vpop.permute.xlu0 %560 }
  0xd0   : > { %513 = vst [vmem:[#allocation1] ss:$2 sm:$0xff] %v507_v24  ;;  %v564_v33 = vrot.slane %v561_v32, 4  ;;  %v760_v9 = vpop.permute.xlu1 %759  ;;  %v824_v24 = vpop.permute.xlu2 %823 }
  0xd1   : > { %v762_v18 = vrot.slane %v760_v9, 4 }
  0xd2   : > { %v567_v37 = vsel %vm566_vm4, %v564_v33, %v561_v32  ;;  %v568_v41 = vsel %vm358_vm0, %v564_v33, %v565_v34  ;;  %v745_v33 = vld [vmem:[#allocation2 + $0x10] sm:$0xf]  ;;  %v826_v34 = vrot.slane %v824_v24, 4 }
  0xd3   : > { %v573_v44 = vmul.f32 %v567_v37, %v5260_v58  ;;  %v569_v49 = vsel %vm566_vm4, %v568_v41, %v563_v22  ;;  %v771_v41 = vmul.f32 %v762_v18, %v745_v33 }
  0xd4   : > { %v574_v52 = vmul.f32 %v569_v49, %v5266_v5  ;;  %v809_v49 = vld [vmem:[#allocation2 + $0x10] sm:$0xf] }
  0xd5   : > { %v454_v42 = vld.sshfl [vmem:[#allocation1 + $0x10] sm:$0xff pattern:$0x75316420]  ;;  %v455_v43 = vld.sshfl [vmem:[#allocation1 + $0x18] sm:$0xff pattern:$0x75316420] }
  0xd6   : > { %v456_v45 = vld.sshfl [vmem:[#allocation1 + $0x20] sm:$0xff pattern:$0x75316420]  ;;  %515 = vst [vmem:[#allocation1 + $0x10] ss:$2 sm:$0xff] %v508_v36  ;;  %396 = vrot.lane.b32.xlu2 %v388_v28, %s7736_s14  ;;  %s7744_s14 = smov 8  }
  0xd7   : > { %v518_v47 = vld.sshfl [vmem:[#allocation1] sm:$0xff pattern:$0x75316420]  ;;  %v5287_v48 = vld.sshfl [vmem:[#allocation1 + $0x8] sm:$0xff pattern:$0x75316420]  ;;  %457 = vrot.lane.b32.xlu0 %v452_v26, %s7738_s21  ;;  %465 = vrot.lane.b32.xlu1 %v456_v45, %s7738_s21  ;;  %v695_v56 = vpop.permute.xlu0 %694 }
  0xd8   : > { %517 = vst [vmem:[#allocation1 + $0x20] ss:$2 sm:$0xff] %v509_v40  ;;  %v697_v0 = vrot.slane %v695_v56, 4  ;;  %v822_v29 = vpop.permute.xlu1 %821 }
  0xd9   : > { %580 = vst [vmem:[#allocation1 + $0x1] ss:$2 sm:$0xff] %v573_v44  ;;  %v825_v35 = vrot.slane %v822_v29, 4  ;;  %v887_v44 = vpop.permute.xlu2 %886 }
  0xda   : > { %v699_v8 = vsel %vm358_vm0, %v696_v63, %v697_v0  ;;  %v706_v27 = vmul.f32 %v697_v0, %v680_v17  ;;  %v890_v50 = vrot.slane %v887_v44, 4 }
  0xdb   : > { %v700_v15 = vsel %vm7846_vm6, %v699_v8, %v695_v56  ;;  %v827_v39 = vsel %vm7742_vm8, %v825_v35, %v822_v29 }
  0xdc   : > { %v705_v22 = vmul.f32 %v700_v15, %v5266_v5  ;;  %v833_v46 = vmul.f32 %v827_v39, %v5260_v58  ;;  %v892_v55 = vsel %vm7743_vm9, %v890_v50, %v887_v44 }
  0xdd   : > { %v520_v57 = vld.sshfl [vmem:[#allocation1 + $0x10] sm:$0xff pattern:$0x75316420]  ;;  %v521_v59 = vld.sshfl [vmem:[#allocation1 + $0x18] sm:$0xff pattern:$0x75316420]  ;;  %v898_v63 = vmul.f32 %v892_v55, %v5260_v58 }
  0xde   : > { %582 = vst [vmem:[#allocation1 + $0x11] ss:$2 sm:$0xff] %v574_v52  ;;  %461 = vrot.lane.b32.xlu2 %v454_v42, %s7738_s21  ;;  %v828_v42 = vsel %vm358_vm0, %v825_v35, %v826_v34  ;;  %v1005_v35 = vld [vmem:[#allocation2 + $0x10] sm:$0xf] }
  0xdf   : > { %463 = vrot.lane.b32.xlu0 %v455_v43, %s7738_s21  ;;  %459 = vrot.lane.b32.xlu1 %v453_v30, %s7738_s21  ;;  %v522_v1 = vld.sshfl [vmem:[#allocation1 + $0x20] sm:$0xff pattern:$0x75316420]  ;;  %v758_v13 = vpop.permute.xlu0 %757  ;;  %v1071_v55 = vld [vmem:[#allocation2 + $0x10] sm:$0xf]  ;;  %s7759_s21 = smov 7  }
  0xe0   : > { %v585_v2 = vld.sshfl [vmem:[#allocation1] sm:$0xff pattern:$0x75316420]  ;;  %v586_v3 = vld.sshfl [vmem:[#allocation1 + $0x8] sm:$0xff pattern:$0x75316420]  ;;  %v953_v56 = vpop.permute.xlu1 %952 }
  0xe1   : > { %584 = vst [vmem:[#allocation1 + $0x21] ss:$2 sm:$0xff] %v575_v60  ;;  %v761_v19 = vrot.slane %v758_v13, 4 }
  0xe2   : > { %646 = vst [vmem:[#allocation1] ss:$2 sm:$0xff] %v640_v61 }
  0xe3   : > { %v763_v23 = vsel %vm7849_vm7, %v761_v19, %v758_v13  ;;  %v764_v28 = vsel %vm358_vm0, %v761_v19, %v762_v18  ;;  %v938_v19 = vld [vmem:[#allocation2 + $0x10] sm:$0xf] }
  0xe4   : > { %v769_v30 = vmul.f32 %v763_v23, %v5260_v58  ;;  %v765_v32 = vsel %vm7849_vm7, %v764_v28, %v760_v9 }
  0xe5   : > { %v587_v10 = vld.sshfl [vmem:[#allocation1 + $0x10] sm:$0xff pattern:$0x75316420]  ;;  %v5303_v11 = vld.sshfl [vmem:[#allocation1 + $0x18] sm:$0xff pattern:$0x75316420]  ;;  %v770_v38 = vmul.f32 %v765_v32, %v5266_v5 }
  0xe6   : > { %648 = vst [vmem:[#allocation1 + $0x10] ss:$2 sm:$0xff] %v641_v6  ;;  %531 = vrot.lane.b32.xlu2 %v522_v1, %s7740_s20 }
  0xe7   : > { %527 = vrot.lane.b32.xlu0 %v520_v57, %s7740_s20  ;;  %523 = vrot.lane.b32.xlu1 %v518_v47, %s7740_s20  ;;  %v889_v40 = vpop.permute.xlu0 %888  ;;  %v835_v57 = vmul.f32 %v826_v34, %v809_v49 }
  0xe8   : > { %v589_v16 = vld.sshfl [vmem:[#allocation1 + $0x20] sm:$0xff pattern:$0x75316420]  ;;  %v891_v51 = vrot.slane %v889_v40, 4  ;;  %v1018_v13 = vpop.permute.xlu1 %1017 }
  0xe9   : > { %650 = vst [vmem:[#allocation1 + $0x20] ss:$2 sm:$0xff] %v642_v12  ;;  %v651_v20 = vld.sshfl [vmem:[#allocation1] sm:$0xff pattern:$0x75316420] }
  0xea   : > { %v5310_v21 = vld.sshfl [vmem:[#allocation1 + $0x8] sm:$0xff pattern:$0x75316420] }
  0xeb   : > { %711 = vst [vmem:[#allocation1 + $0x1] ss:$2 sm:$0xff] %v704_v14 }
  0xed   : > { %v5314_v25 = vld.sshfl [vmem:[#allocation1 + $0x10] sm:$0xff pattern:$0x75316420]  ;;  %v5316_v26 = vld.sshfl [vmem:[#allocation1 + $0x18] sm:$0xff pattern:$0x75316420] }
  0xee   : > { %713 = vst [vmem:[#allocation1 + $0x11] ss:$2 sm:$0xff] %v705_v22  ;;  %525 = vrot.lane.b32.xlu2 %v5287_v48, %s7740_s20  ;;  %v829_v48 = vsel %vm7742_vm8, %v828_v42, %v824_v24  ;;  %v1021_v22 = vrot.slane %v1018_v13, 4 }
  0xef   : > { %598 = vrot.lane.b32.xlu0 %v589_v16, %s7790_s18  ;;  %529 = vrot.lane.b32.xlu1 %v521_v59, %s7740_s20  ;;  %v834_v54 = vmul.f32 %v829_v48, %v5266_v5  ;;  %v893_v59 = vsel %vm358_vm0, %v890_v50, %v891_v51  ;;  %v951_v60 = vpop.permute.xlu0 %950  ;;  %s7757_s20 = smov 1  }
  0xf0   : > { %v655_v31 = vld.sshfl [vmem:[#allocation1 + $0x20] sm:$0xff pattern:$0x75316420]  ;;  %v894_v1 = vsel %vm7743_vm9, %v893_v59, %v889_v40  ;;  %v954_v4 = vrot.slane %v951_v60, 4 }
  0xf1   : > { %715 = vst [vmem:[#allocation1 + $0x21] ss:$2 sm:$0xff] %v706_v27  ;;  %v899_v8 = vmul.f32 %v894_v1, %v5266_v5 }
  0xf2   : > { %v5325_v36 = vld.sshfl [vmem:[#allocation1] sm:$0xff pattern:$0x75316420]  ;;  %v5327_v37 = vld.sshfl [vmem:[#allocation1 + $0x8] sm:$0xff pattern:$0x75316420]  ;;  %v957_v9 = vsel %vm7754_vm10, %v954_v4, %v951_v60 }
  0xf3   : > { %775 = vst [vmem:[#allocation1] ss:$2 sm:$0xff] %v769_v30  ;;  %v963_v16 = vmul.f32 %v957_v9, %v5260_v58  ;;  %v1138_v9 = vld [vmem:[#allocation2 + $0x10] sm:$0xf] }
  0xf5   : > { %v5332_v43 = vld.sshfl [vmem:[#allocation1 + $0x10] sm:$0xff pattern:$0x75316420]  ;;  %v5335_v45 = vld.sshfl [vmem:[#allocation1 + $0x18] sm:$0xff pattern:$0x75316420] }
  0xf6   : > { %590 = vrot.lane.b32.xlu2 %v585_v2, %s7790_s18  ;;  %777 = vst [vmem:[#allocation1 + $0x10] ss:$2 sm:$0xff] %v770_v38  ;;  %v874_v2 = vld [vmem:[#allocation2 + $0x10] sm:$0xf] }
  0xf7   : > { %592 = vrot.lane.b32.xlu0 %v586_v3, %s7790_s18  ;;  %594 = vrot.lane.b32.xlu1 %v587_v10, %s7790_s18  ;;  %v955_v3 = vrot.slane %v953_v56, 4  ;;  %v1020_v10 = vpop.permute.xlu2 %1019 }
  0xf8   : > { %v720_v47 = vld.sshfl [vmem:[#allocation1 + $0x20] sm:$0xff pattern:$0x75316420] }
  0xf9   : > { %779 = vst [vmem:[#allocation1 + $0x20] ss:$2 sm:$0xff] %v771_v41  ;;  %v958_v12 = vsel %vm358_vm0, %v954_v4, %v955_v3  ;;  %v965_v27 = vmul.f32 %v955_v3, %v938_v19 }
  0xfa   : > { %v5341_v52 = vld.sshfl [vmem:[#allocation1 + $0x8] sm:$0xff pattern:$0x75316420]  ;;  %v5343_v53 = vld.sshfl [vmem:[#allocation1] sm:$0xff pattern:$0x75316420]  ;;  %v959_v18 = vsel %vm7754_vm10, %v958_v12, %v953_v56 }
  0xfb   : > { %840 = vst [vmem:[#allocation1 + $0x1] ss:$2 sm:$0xff] %v833_v46  ;;  %v1153_v46 = vpop.permute.xlu1 %1152 }
  0xfd   : > { %v5350_v61 = vld.sshfl [vmem:[#allocation1 + $0x10] sm:$0xff pattern:$0x75316420]  ;;  %v5352_v62 = vld.sshfl [vmem:[#allocation1 + $0x18] sm:$0xff pattern:$0x75316420] }
  0xfe   : > { %596 = vrot.lane.b32.xlu2 %v5303_v11, %s7790_s18  ;;  %842 = vst [vmem:[#allocation1 + $0x11] ss:$2 sm:$0xff] %v834_v54  ;;  %v900_v11 = vmul.f32 %v891_v51, %v874_v2 }
  0xff   : > { %656 = vrot.lane.b32.xlu0 %v651_v20, %s7779_s16  ;;  %664 = vrot.lane.b32.xlu1 %v655_v31, %s7779_s16  ;;  %v1022_v20 = vrot.slane %v1020_v10, 4  ;;  %v1084_v29 = vpop.permute.xlu2 %1083 }
 0x100   : > { %v5357_v0 = vld.sshfl [vmem:[#allocation1 + $0x20] sm:$0xff pattern:$0x75316420]  ;;  %v1087_v38 = vrot.slane %v1084_v29, 4 }
 0x101   : > { %844 = vst [vmem:[#allocation1 + $0x21] ss:$2 sm:$0xff] %v835_v57  ;;  %v1025_v28 = vsel %vm358_vm0, %v1021_v22, %v1022_v20 }
 0x102   : > { %v5360_v6 = vld.sshfl [vmem:[#allocation1] sm:$0xff pattern:$0x75316420]  ;;  %v5362_v7 = vld.sshfl [vmem:[#allocation1 + $0x8] sm:$0xff pattern:$0x75316420]  ;;  %v1026_v34 = vsel %vm7753_vm11, %v1025_v28, %v1020_v10 }
 0x103   : > { %904 = vst [vmem:[#allocation1] ss:$2 sm:$0xff] %v898_v63  ;;  %v1031_v42 = vmul.f32 %v1026_v34, %v5266_v5 }
 0x105   : > { %v5369_v14 = vld.sshfl [vmem:[#allocation1 + $0x18] sm:$0xff pattern:$0x75316420]  ;;  %v5371_v15 = vld.sshfl [vmem:[#allocation1 + $0x10] sm:$0xff pattern:$0x75316420] }
 0x106   : > { %660 = vrot.lane.b32.xlu2 %v5314_v25, %s7779_s16  ;;  %906 = vst [vmem:[#allocation1 + $0x10] ss:$2 sm:$0xff] %v899_v8  ;;  %v964_v25 = vmul.f32 %v959_v18, %v5266_v5 }
 0x107   : > { %662 = vrot.lane.b32.xlu0 %v5316_v26, %s7779_s16  ;;  %658 = vrot.lane.b32.xlu1 %v5310_v21, %s7779_s16  ;;  %v1024_v21 = vsel %vm7753_vm11, %v1021_v22, %v1018_v13  ;;  %v1086_v26 = vpop.permute.xlu0 %1085 }
 0x108   : > { %v5378_v17 = vld.sshfl [vmem:[#allocation1 + $0x20] sm:$0xff pattern:$0x75316420]  ;;  %v1030_v32 = vmul.f32 %v1024_v21, %v5260_v58  ;;  %v1088_v39 = vrot.slane %v1086_v26, 4 }
 0x109   : > { %908 = vst [vmem:[#allocation1 + $0x20] ss:$2 sm:$0xff] %v900_v11 }
 0x10a   : > { %v5381_v23 = vld.sshfl [vmem:[#allocation1] sm:$0xff pattern:$0x75316420]  ;;  %v5383_v24 = vld.sshfl [vmem:[#allocation1 + $0x8] sm:$0xff pattern:$0x75316420]  ;;  %v1091_v44 = vsel %vm358_vm0, %v1087_v38, %v1088_v39  ;;  %v1098_v63 = vmul.f32 %v1088_v39, %v1071_v55 }
 0x10b   : > { %970 = vst [vmem:[#allocation1 + $0x1] ss:$2 sm:$0xff] %v963_v16  ;;  %v1092_v51 = vsel %vm7752_vm12, %v1091_v44, %v1086_v26 }
 0x10c   : > { %v1097_v60 = vmul.f32 %v1092_v51, %v5266_v5 }
 0x10d   : > { %v5389_v30 = vld.sshfl [vmem:[#allocation1 + $0x10] sm:$0xff pattern:$0x75316420]  ;;  %v5391_v31 = vld.sshfl [vmem:[#allocation1 + $0x18] sm:$0xff pattern:$0x75316420] }
 0x10e   : > { %729 = vrot.lane.b32.xlu2 %v720_v47, %s7788_s22  ;;  %972 = vst [vmem:[#allocation1 + $0x11] ss:$2 sm:$0xff] %v964_v25 }
 0x10f   : > { %725 = vrot.lane.b32.xlu0 %v5332_v43, %s7788_s22  ;;  %721 = vrot.lane.b32.xlu1 %v5325_v36, %s7788_s22  ;;  %v1090_v36 = vsel %vm7752_vm12, %v1087_v38, %v1084_v29  ;;  %v1032_v43 = vmul.f32 %v1022_v20, %v1005_v35  ;;  %v1151_v47 = vpop.permute.xlu0 %1150 }
 0x110   : > { %v5398_v33 = vld.sshfl [vmem:[#allocation1 + $0x20] sm:$0xff pattern:$0x75316420]  ;;  %v1096_v50 = vmul.f32 %v1090_v36, %v5260_v58  ;;  %v1154_v56 = vrot.slane %v1151_v47, 4 }
 0x111   : > { %974 = vst [vmem:[#allocation1 + $0x21] ss:$2 sm:$0xff] %v965_v27  ;;  %v5490_v27 = vld [vmem:[#allocation2 + $0x4] sm:$0xff] }
 0x112   : > { %v5401_v40 = vld.sshfl [vmem:[#allocation1 + $0x8] sm:$0xff pattern:$0x75316420]  ;;  %v5403_v41 = vld.sshfl [vmem:[#allocation1] sm:$0xff pattern:$0x75316420] }
 0x113   : > { %1036 = vst [vmem:[#allocation1] ss:$2 sm:$0xff] %v1030_v32 }
 0x115   : > { %v5410_v48 = vld.sshfl [vmem:[#allocation1 + $0x10] sm:$0xff pattern:$0x75316420]  ;;  %v5412_v49 = vld.sshfl [vmem:[#allocation1 + $0x18] sm:$0xff pattern:$0x75316420] }
 0x116   : > { %723 = vrot.lane.b32.xlu2 %v5327_v37, %s7788_s22  ;;  %1038 = vst [vmem:[#allocation1 + $0x10] ss:$2 sm:$0xff] %v1031_v42  ;;  %v1155_v37 = vrot.slane %v1153_v46, 4 }
 0x117   : > { %793 = vrot.lane.b32.xlu0 %v5357_v0, %s7781_s23  ;;  %727 = vrot.lane.b32.xlu1 %v5335_v45, %s7788_s22  ;;  %v1157_v45 = vsel %vm7750_vm13, %v1154_v56, %v1151_v47 }
 0x118   : > { %v979_v54 = vld.sshfl [vmem:[#allocation1 + $0x20] sm:$0xff pattern:$0x75316420]  ;;  %v1158_v0 = vsel %vm358_vm0, %v1154_v56, %v1155_v37  ;;  %v1163_v3 = vmul.f32 %v1157_v45, %v5260_v58 }
 0x119   : > { %1040 = vst [vmem:[#allocation1 + $0x20] ss:$2 sm:$0xff] %v1032_v43  ;;  %v1159_v4 = vsel %vm7750_vm13, %v1158_v0, %v1153_v46 }
 0x11a   : > { %v5420_v57 = vld.sshfl [vmem:[#allocation1] sm:$0xff pattern:$0x75316420]  ;;  %v5422_v59 = vld.sshfl [vmem:[#allocation1 + $0x8] sm:$0xff pattern:$0x75316420]  ;;  %v1164_v11 = vmul.f32 %v1159_v4, %v5266_v5 }
 0x11b   : > { %1103 = vst [vmem:[#allocation1 + $0x1] ss:$2 sm:$0xff] %v1096_v50  ;;  %v5458_v5 = vld [vmem:[#allocation2 + $0xc] sm:$0xff] }
 0x11d   : > { %v5429_v1 = vld.sshfl [vmem:[#allocation1 + $0x18] sm:$0xff pattern:$0x75316420]  ;;  %v5431_v2 = vld.sshfl [vmem:[#allocation1 + $0x10] sm:$0xff pattern:$0x75316420] }
 0x11e   : > { %785 = vrot.lane.b32.xlu2 %v5343_v53, %s7781_s23  ;;  %1105 = vst [vmem:[#allocation1 + $0x11] ss:$2 sm:$0xff] %v1097_v60 }
 0x11f   : > { %787 = vrot.lane.b32.xlu0 %v5341_v52, %s7781_s23  ;;  %789 = vrot.lane.b32.xlu1 %v5350_v61, %s7781_s23  ;;  %v1165_v52 = vmul.f32 %v1155_v37, %v1138_v9 }
 0x120   : > { %v5439_v8 = vld.sshfl [vmem:[#allocation1 + $0x20] sm:$0xff pattern:$0x75316420] }
 0x121   : > { %1107 = vst [vmem:[#allocation1 + $0x21] ss:$2 sm:$0xff] %v1098_v63 }
 0x122   : > { %v5441_v53 = vld.sshfl [vmem:[#allocation1 + $0x8] sm:$0xff pattern:$0x75316420]  ;;  %v5443_v10 = vld.sshfl [vmem:[#allocation1] sm:$0xff pattern:$0x75316420] }
 0x123   : > { %1169 = vst [vmem:[#allocation1] ss:$2 sm:$0xff] %v1163_v3 }
 0x125   : > { %v5448_v61 = vld.sshfl [vmem:[#allocation1 + $0x10] sm:$0xff pattern:$0x75316420]  ;;  %v5450_v58 = vld.sshfl [vmem:[#allocation1 + $0x18] sm:$0xff pattern:$0x75316420] }
 0x126   : > { %791 = vrot.lane.b32.xlu2 %v5352_v62, %s7781_s23  ;;  %1171 = vst [vmem:[#allocation1 + $0x10] ss:$2 sm:$0xff] %v1164_v11 }
 0x127   : > { %850 = vrot.lane.b32.xlu0 %v5360_v6, %s7792_s13  ;;  %858 = vrot.lane.b32.xlu1 %v5378_v17, %s7792_s13 }
 0x128   : > { %v395_v12 = vpop.permute.xlu2 %394  ;;  %v5456_v13 = vld.sshfl [vmem:[#allocation1 + $0x20] sm:$0xff pattern:$0x75316420] }
 0x129   : > { %1173 = vst [vmem:[#allocation1 + $0x20] ss:$2 sm:$0xff] %v1165_v52 }
 0x12a   : > { %v1175_v26 = vld.sshfl [vmem:[#allocation1 + $0x8] sm:$0xff pattern:$0x75316420] }
 0x12d   : > { %v5462_v62 = vld.sshfl [vmem:[#allocation1 + $0x10] sm:$0xff pattern:$0x75316420]  ;;  %v5464_v16 = vld.sshfl [vmem:[#allocation1 + $0x18] sm:$0xff pattern:$0x75316420] }
 0x12e   : > { %854 = vrot.lane.b32.xlu2 %v5371_v15, %s7792_s13  ;;  %1209 = vst [vmem:[#allocation1 + $0x11] ss:$2 sm:$0xff] %v5458_v5 }
 0x12f   : > { %856 = vrot.lane.b32.xlu0 %v5369_v14, %s7792_s13  ;;  %852 = vrot.lane.b32.xlu1 %v5362_v7, %s7792_s13 }
 0x130   : > { %v397_v6 = vpop.permute.xlu2 %396  ;;  %v1178_v0 = vld.sshfl [vmem:[#allocation1 + $0x20] sm:$0xff pattern:$0x75316420] }
 0x131   : > { %v403_v17 = vsel %vm7743_vm9, %v395_v12, %v397_v6 }
 0x132   : > { %411 = vst [vmem:[#allocation4 + $0xd8] sm:$0xf] %v403_v17 }
 0x135   : > { %v1212_v15 = vld.sshfl [vmem:[#allocation1 + $0x10] sm:$0xff pattern:$0x75316420]  ;;  %v1213_v18 = vld.sshfl [vmem:[#allocation1 + $0x18] sm:$0xff pattern:$0x75316420] }
 0x136   : > { %922 = vrot.lane.b32.xlu2 %v5398_v33, %s7763_s1  ;;  %1220 = vst [vmem:[#allocation4 + $0x190] sm:$0xf0] %v1212_v15 }
 0x137   : > { %918 = vrot.lane.b32.xlu0 %v5389_v30, %s7763_s1  ;;  %914 = vrot.lane.b32.xlu1 %v5381_v23, %s7763_s1  ;;  %v391_v14 = vpop.permute.xlu1 %390  ;;  %1221 = vst [vmem:[#allocation4 + $0xb8] sm:$0xf0] %v1213_v18 }
 0x138   : > { %v462_v7 = vpop.permute.xlu2 %461 }
 0x13e   : > { %916 = vrot.lane.b32.xlu2 %v5383_v24, %s7763_s1  ;;  %v5488_v24 = vld.sshfl [vmem:[#allocation1] sm:$0xff pattern:$0x75316420] }
 0x13f   : > { %988 = vrot.lane.b32.xlu0 %v979_v54, %s7746_s11  ;;  %920 = vrot.lane.b32.xlu1 %v5391_v31, %s7763_s1  ;;  %v393_v19 = vpop.permute.xlu1 %392  ;;  %1207 = vst [vmem:[#allocation1 + $0x1] ss:$2 sm:$0xff] %v5490_v27 }
 0x140   : > { %v401_v20 = vsel %vm7743_vm9, %v391_v14, %v393_v19  ;;  %v402_v22 = vsel %vm7743_vm9, %v393_v19, %v395_v12  ;;  %v532_v25 = vpop.permute.xlu2 %531 }
 0x141   : > { %v399_v23 = vpop.permute.xlu0 %398  ;;  %409 = vst [vmem:[#allocation4 + $0xb0] sm:$0xf] %v401_v20 }
 0x142   : > { %v404_v21 = vsel %vm7743_vm9, %v397_v6, %v399_v23  ;;  %410 = vst [vmem:[#allocation4 + $0x1b0] sm:$0xf] %v402_v22  ;;  %vm7851_vm9 = vcmask 7168  }
 0x143   : > { %412 = vst [vmem:[#allocation4 + $0x18] sm:$0xf] %v404_v21 }
 0x146   : > { %980 = vrot.lane.b32.xlu2 %v5403_v41, %s7746_s11  ;;  %v1210_v31 = vld.sshfl [vmem:[#allocation1] sm:$0xff pattern:$0x75316420]  ;;  %v1211_v32 = vld.sshfl [vmem:[#allocation1 + $0x8] sm:$0xff pattern:$0x75316420] }
 0x147   : > { %982 = vrot.lane.b32.xlu0 %v5401_v40, %s7746_s11  ;;  %984 = vrot.lane.b32.xlu1 %v5410_v48, %s7746_s11  ;;  %1218 = vst [vmem:[#allocation4 + $0xe8] sm:$0xf0] %v1210_v31 }
 0x148   : > { %v526_v28 = vpop.permute.xlu2 %525  ;;  %1219 = vst [vmem:[#allocation4 + $0xf8] sm:$0xf0] %v1211_v32 }
 0x149   : > { %v458_v29 = vpop.permute.xlu0 %457  ;;  %v466_v30 = vpop.permute.xlu1 %465 }
 0x14e   : > { %986 = vrot.lane.b32.xlu2 %v5412_v49, %s7746_s11 }
 0x14f   : > { %1046 = vrot.lane.b32.xlu0 %v5420_v57, %s7744_s14  ;;  %1054 = vrot.lane.b32.xlu1 %v5439_v8, %s7744_s14  ;;  %v1226_v57 = vld [vmem:[#allocation9 + $0x26] ss:$8 sm:$0xf] }
 0x150   : > { %v591_v33 = vpop.permute.xlu2 %590  ;;  %v1229_v63 = vperm.slane %v1226_v57, 1  ;;  %v1231_v9 = vperm.slane %v1226_v57, 3 }
 0x151   : > { %v464_v34 = vpop.permute.xlu0 %463  ;;  %v460_v35 = vpop.permute.xlu1 %459 }
 0x152   : > { %v470_v38 = vsel %vm7742_vm8, %v462_v7, %v464_v34  ;;  %v471_v39 = vsel %vm7742_vm8, %v464_v34, %v466_v30  ;;  %v468_v40 = vsel %vm7742_vm8, %v458_v29, %v460_v35  ;;  %v469_v41 = vsel %vm7742_vm8, %v460_v35, %v462_v7 }
 0x153   : > { %478 = vst [vmem:[#allocation4 + $0xd8] sm:$0xf0] %v470_v38  ;;  %v1232_v3 = vrot.slane %v1229_v63, 4  ;;  %v1233_v11 = vrot.slane %v1231_v9, 4  ;;  %vm7751_vm8 = vcmask 56320  }
 0x154   : > { %479 = vst [vmem:[#allocation4 + $0x18] sm:$0xf0] %v471_v39 }
 0x155   : > { %476 = vst [vmem:[#allocation4 + $0xb0] sm:$0xf0] %v468_v40 }
 0x156   : > { %477 = vst [vmem:[#allocation4 + $0x1b0] sm:$0xf0] %v469_v41  ;;  %1050 = vrot.lane.b32.xlu2 %v5431_v2, %s7744_s14  ;;  %v1228_v2 = vperm.slane %v1226_v57, 0 }
 0x157   : > { %1052 = vrot.lane.b32.xlu0 %v5429_v1, %s7744_s14  ;;  %1048 = vrot.lane.b32.xlu1 %v5422_v59, %s7744_s14 }
 0x158   : > { %v597_v42 = vpop.permute.xlu2 %596 }
 0x159   : > { %v528_v36 = vpop.permute.xlu0 %527  ;;  %v524_v43 = vpop.permute.xlu1 %523 }
 0x15a   : > { %v535_v44 = vsel %vm7849_vm7, %v526_v28, %v528_v36  ;;  %v534_v46 = vsel %vm7849_vm7, %v524_v43, %v526_v28 }
 0x15b   : > { %543 = vst [vmem:[#allocation4 + $0x168] sm:$0xf] %v535_v44 }
 0x15c   : > { %542 = vst [vmem:[#allocation4 + $0x50] sm:$0xf] %v534_v46 }
 0x15e   : > { %1121 = vrot.lane.b32.xlu2 %v5456_v13, %s7759_s21 }
 0x15f   : > { %1117 = vrot.lane.b32.xlu0 %v5448_v61, %s7759_s21  ;;  %1113 = vrot.lane.b32.xlu1 %v5443_v10, %s7759_s21  ;;  %v1230_v10 = vperm.slane %v1226_v57, 2 }
 0x160   : > { %v661_v47 = vpop.permute.xlu2 %660 }
 0x161   : > { %v599_v48 = vpop.permute.xlu0 %598  ;;  %v530_v49 = vpop.permute.xlu1 %529  ;;  %v1235_v17 = vsel %vm358_vm0, %v1230_v10, %v1233_v11 }
 0x162   : > { %v604_v50 = vsel %vm7846_vm6, %v597_v42, %v599_v48  ;;  %v536_v51 = vsel %vm7849_vm7, %v528_v36, %v530_v49  ;;  %v537_v54 = vsel %vm7849_vm7, %v530_v49, %v532_v25 }
 0x163   : > { %612 = vst [vmem:[#allocation4 + $0x48] sm:$0xf0] %v604_v50 }
 0x164   : > { %544 = vst [vmem:[#allocation4 + $0x130] sm:$0xf] %v536_v51 }
 0x165   : > { %545 = vst [vmem:[#allocation4 + $0x48] sm:$0xf] %v537_v54 }
 0x166   : > { %1115 = vrot.lane.b32.xlu2 %v5441_v53, %s7759_s21  ;;  %v1234_v53 = vsel %vm358_vm0, %v1228_v2, %v1232_v3 }
 0x167   : > { %1181 = vrot.lane.b32.xlu0 %v1175_v26, %s7757_s20  ;;  %1119 = vrot.lane.b32.xlu1 %v5450_v58, %s7759_s21 }
 0x168   : > { %v730_v55 = vpop.permute.xlu2 %729 }
 0x169   : > { %v593_v37 = vpop.permute.xlu0 %592  ;;  %v595_v56 = vpop.permute.xlu1 %594 }
 0x16a   : > { %v601_v59 = vsel %vm7846_vm6, %v591_v33, %v593_v37  ;;  %v602_v60 = vsel %vm7846_vm6, %v593_v37, %v595_v56  ;;  %v603_v45 = vsel %vm7846_vm6, %v595_v56, %v597_v42 }
 0x16b   : > { %609 = vst [vmem:[#allocation4 + $0x50] sm:$0xf0] %v601_v59 }
 0x16c   : > { %610 = vst [vmem:[#allocation4 + $0x168] sm:$0xf0] %v602_v60 }
 0x16d   : > { %611 = vst [vmem:[#allocation4 + $0x130] sm:$0xf0] %v603_v45 }
 0x16e   : > { %1179 = vrot.lane.b32.xlu2 %v5488_v24, %s7757_s20 }
 0x16f   : > { %1187 = vrot.lane.b32.xlu0 %v1178_v0, %s7757_s20  ;;  %1183 = vrot.lane.b32.xlu1 %v5462_v62, %s7757_s20 }
 0x170   : > { %v724_v1 = vpop.permute.xlu2 %723 }
 0x171   : > { %v657_v4 = vpop.permute.xlu0 %656  ;;  %v665_v8 = vpop.permute.xlu1 %664 }
 0x176   : > { %1185 = vrot.lane.b32.xlu2 %v5464_v16, %s7757_s20 }
 0x177   : > { %1236 = vrot.lane.b32.xlu1 %v1234_v53, %s7757_s20 }
 0x178   : > { %v786_v52 = vpop.permute.xlu2 %785 }
 0x179   : > { %v663_v61 = vpop.permute.xlu0 %662  ;;  %v659_v58 = vpop.permute.xlu1 %658 }
 0x17a   : > { %v668_v12 = vsel %vm7850_vm5, %v661_v47, %v663_v61  ;;  %v669_v13 = vsel %vm7850_vm5, %v663_v61, %v665_v8  ;;  %v666_v62 = vsel %vm7850_vm5, %v657_v4, %v659_v58  ;;  %v667_v6 = vsel %vm7850_vm5, %v659_v58, %v661_v47 }
 0x17b   : > { %676 = vst [vmem:[#allocation4 + $0x118] sm:$0xf] %v668_v12 }
 0x17c   : > { %677 = vst [vmem:[#allocation4 + $0x98] sm:$0xf] %v669_v13 }
 0x17d   : > { %674 = vst [vmem:[#allocation4 + $0x180] sm:$0xf] %v666_v62  ;;  %v1224_v62 = vld [vmem:[#allocation2 + $0x14] sm:$0xf] }
 0x17e   : > { %675 = vst [vmem:[#allocation4 + $0x110] sm:$0xf] %v667_v6  ;;  %1238 = vrot.lane.b32.xlu2 %v1235_v17, %s7757_s20  ;;  %s7905_s20 = smov 1  }
 0x180   : > { %v792_v16 = vpop.permute.xlu2 %791 }
 0x181   : > { %v726_v15 = vpop.permute.xlu0 %725  ;;  %v722_v18 = vpop.permute.xlu1 %721 }
 0x182   : > { %v732_v14 = vsel %vm566_vm4, %v724_v1, %v726_v15  ;;  %v731_v7 = vsel %vm566_vm4, %v722_v18, %v724_v1 }
 0x183   : > { %740 = vst [vmem:[#allocation4 + $0x110] sm:$0xf0] %v732_v14 }
 0x184   : > { %739 = vst [vmem:[#allocation4 + $0x180] sm:$0xf0] %v731_v7 }
 0x188   : > { %v855_v19 = vpop.permute.xlu2 %854 }
 0x189   : > { %v794_v20 = vpop.permute.xlu0 %793  ;;  %v728_v22 = vpop.permute.xlu1 %727 }
 0x18a   : > { %v798_v25 = vsel %vm500_vm3, %v792_v16, %v794_v20  ;;  %v733_v23 = vsel %vm566_vm4, %v726_v15, %v728_v22  ;;  %v734_v21 = vsel %vm566_vm4, %v728_v22, %v730_v55 }
 0x18b   : > { %806 = vst [vmem:[#allocation4 + $0x60] sm:$0xf] %v798_v25 }
 0x18c   : > { %741 = vst [vmem:[#allocation4 + $0x118] sm:$0xf0] %v733_v23 }
 0x18d   : > { %742 = vst [vmem:[#allocation4 + $0x98] sm:$0xf0] %v734_v21 }
 0x190   : > { %v923_v26 = vpop.permute.xlu2 %922 }
 0x191   : > { %v788_v24 = vpop.permute.xlu0 %787  ;;  %v790_v28 = vpop.permute.xlu1 %789 }
 0x192   : > { %v795_v29 = vsel %vm500_vm3, %v786_v52, %v788_v24  ;;  %v796_v30 = vsel %vm500_vm3, %v788_v24, %v790_v28  ;;  %v797_v31 = vsel %vm500_vm3, %v790_v28, %v792_v16 }
 0x193   : > { %803 = vst [vmem:[#allocation4 + $0x120] sm:$0xf] %v795_v29 }
 0x194   : > { %804 = vst [vmem:[#allocation4 + $0x150] sm:$0xf] %v796_v30 }
 0x195   : > { %805 = vst [vmem:[#allocation4 + $0x108] sm:$0xf] %v797_v31 }
 0x198   : > { %v917_v32 = vpop.permute.xlu2 %916 }
 0x199   : > { %v851_v33 = vpop.permute.xlu0 %850  ;;  %v859_v34 = vpop.permute.xlu1 %858 }
 0x1a0   : > { %v981_v35 = vpop.permute.xlu2 %980 }
 0x1a1   : > { %v857_v38 = vpop.permute.xlu0 %856  ;;  %v853_v39 = vpop.permute.xlu1 %852 }
 0x1a2   : > { %v862_v40 = vsel %vm433_vm2, %v855_v19, %v857_v38  ;;  %v863_v41 = vsel %vm433_vm2, %v857_v38, %v859_v34  ;;  %v860_v42 = vsel %vm433_vm2, %v851_v33, %v853_v39  ;;  %v861_v36 = vsel %vm433_vm2, %v853_v39, %v855_v19  ;;  %v1290_v33 = vld [vmem:[#allocation9 + $0x27] ss:$8 sm:$0xf] }
 0x1a3   : > { %870 = vst [vmem:[#allocation4 + $0x108] sm:$0xf0] %v862_v40  ;;  %v1293_v34 = vperm.slane %v1290_v33, 1  ;;  %v1292_v40 = vperm.slane %v1290_v33, 0 }
 0x1a4   : > { %871 = vst [vmem:[#allocation4 + $0x60] sm:$0xf0] %v863_v41 }
 0x1a5   : > { %868 = vst [vmem:[#allocation4 + $0x120] sm:$0xf0] %v860_v42  ;;  %v1296_v41 = vrot.slane %v1293_v34, 4  ;;  %v1295_v42 = vperm.slane %v1290_v33, 3 }
 0x1a6   : > { %869 = vst [vmem:[#allocation4 + $0x150] sm:$0xf0] %v861_v36 }
 0x1a7   : > { %v1298_v36 = vsel %vm358_vm0, %v1292_v40, %v1296_v41  ;;  %v1419_v41 = vld [vmem:[#allocation9 + $0x41] ss:$8 sm:$0xf] }
 0x1a8   : > { %v987_v43 = vpop.permute.xlu2 %986 }
 0x1a9   : > { %v919_v44 = vpop.permute.xlu0 %918  ;;  %v915_v46 = vpop.permute.xlu1 %914 }
 0x1aa   : > { %v925_v47 = vsel %vm367_vm1, %v917_v32, %v919_v44  ;;  %v924_v48 = vsel %vm367_vm1, %v915_v46, %v917_v32  ;;  %v1294_v46 = vperm.slane %v1290_v33, 2 }
 0x1ab   : > { %933 = vst [vmem:[#allocation4 + $0x188] sm:$0xf] %v925_v47  ;;  %v1297_v47 = vrot.slane %v1295_v42, 4  ;;  %v1422_v42 = vperm.slane %v1419_v41, 1 }
 0x1ac   : > { %932 = vst [vmem:[#allocation4 + $0xe0] sm:$0xf] %v924_v48 }
 0x1ad   : > { %v1299_v48 = vsel %vm358_vm0, %v1294_v46, %v1297_v47  ;;  %v1421_v46 = vperm.slane %v1419_v41, 0  ;;  %v1425_v47 = vrot.slane %v1422_v42, 4 }
 0x1b0   : > { %v1051_v49 = vpop.permute.xlu2 %1050 }
 0x1b1   : > { %v989_v50 = vpop.permute.xlu0 %988  ;;  %v921_v51 = vpop.permute.xlu1 %920 }
 0x1b2   : > { %v994_v54 = vsel %vm990_vm14, %v987_v43, %v989_v50  ;;  %v926_v55 = vsel %vm367_vm1, %v919_v44, %v921_v51  ;;  %v927_v37 = vsel %vm367_vm1, %v921_v51, %v923_v26 }
 0x1b3   : > { %1002 = vst [vmem:[#allocation4 + $0x140] sm:$0xf0] %v994_v54 }
 0x1b4   : > { %934 = vst [vmem:[#allocation4 + $0x138] sm:$0xf] %v926_v55 }
 0x1b5   : > { %935 = vst [vmem:[#allocation4 + $0x140] sm:$0xf] %v927_v37 }
 0x1b8   : > { %v1122_v56 = vpop.permute.xlu2 %1121 }
 0x1b9   : > { %v983_v57 = vpop.permute.xlu0 %982  ;;  %v985_v59 = vpop.permute.xlu1 %984 }
 0x1ba   : > { %v991_v60 = vsel %vm990_vm14, %v981_v35, %v983_v57  ;;  %v992_v45 = vsel %vm990_vm14, %v983_v57, %v985_v59  ;;  %v993_v63 = vsel %vm990_vm14, %v985_v59, %v987_v43 }
 0x1bb   : > { %999 = vst [vmem:[#allocation4 + $0xe0] sm:$0xf0] %v991_v60 }
 0x1bc   : > { %1000 = vst [vmem:[#allocation4 + $0x188] sm:$0xf0] %v992_v45 }
 0x1bd   : > { %1001 = vst [vmem:[#allocation4 + $0x138] sm:$0xf0] %v993_v63 }
 0x1c0   : > { %v1116_v0 = vpop.permute.xlu2 %1115 }
 0x1c1   : > { %v1047_v1 = vpop.permute.xlu0 %1046  ;;  %v1055_v2 = vpop.permute.xlu1 %1054 }
 0x1c8   : > { %v1180_v3 = vpop.permute.xlu2 %1179 }
 0x1c9   : > { %v1053_v4 = vpop.permute.xlu0 %1052  ;;  %v1049_v8 = vpop.permute.xlu1 %1048 }
 0x1ca   : > { %v1059_v9 = vsel %vm1056_vm15, %v1051_v49, %v1053_v4  ;;  %v1060_v53 = vsel %vm1056_vm15, %v1053_v4, %v1055_v2  ;;  %v1057_v10 = vsel %vm1056_vm15, %v1047_v1, %v1049_v8  ;;  %v1058_v11 = vsel %vm1056_vm15, %v1049_v8, %v1051_v49 }
 0x1cb   : > { %1067 = vst [vmem:[#allocation4 + $0x1b8] sm:$0xf] %v1059_v9 }
 0x1cc   : > { %1068 = vst [vmem:[#allocation4 + $0x28] sm:$0xf] %v1060_v53 }
 0x1cd   : > { %1065 = vst [vmem:[#allocation4 + $0x80] sm:$0xf] %v1057_v10 }
 0x1ce   : > { %1066 = vst [vmem:[#allocation4 + $0x1a8] sm:$0xf] %v1058_v11 }
 0x1d0   : > { %v1186_v52 = vpop.permute.xlu2 %1185 }
 0x1d1   : > { %v1118_v61 = vpop.permute.xlu0 %1117  ;;  %v1114_v58 = vpop.permute.xlu1 %1113 }
 0x1d2   : > { %v1125_v12 = vsel %vm7751_vm8, %v1116_v0, %v1118_v61  ;;  %v1124_v13 = vsel %vm7751_vm8, %v1114_v58, %v1116_v0 }
 0x1d3   : > { %1133 = vst [vmem:[#allocation4 + $0x1a8] sm:$0xf0] %v1125_v12 }
 0x1d4   : > { %1132 = vst [vmem:[#allocation4 + $0x80] sm:$0xf0] %v1124_v13 }
 0x1d8   : > { %v1239_v6 = vpop.permute.xlu2 %1238 }
 0x1d9   : > { %v1182_v17 = vpop.permute.xlu0 %1181  ;;  %v1120_v16 = vpop.permute.xlu1 %1119  ;;  %v1241_v15 = vrot.slane %v1239_v6, 4 }
 0x1da   : > { %v1190_v18 = vsel %vm7851_vm9, %v1180_v3, %v1182_v17  ;;  %v1126_v14 = vsel %vm7751_vm8, %v1118_v61, %v1120_v16  ;;  %v1127_v7 = vsel %vm7751_vm8, %v1120_v16, %v1122_v56  ;;  %v1288_v3 = vld [vmem:[#allocation2 + $0x14] sm:$0xf] }
 0x1db   : > { %1198 = vst [vmem:[#allocation4 + $0xe8] sm:$0xf] %v1190_v18  ;;  %v1250_v19 = vmul.f32 %v1241_v15, %v1224_v62 }
 0x1dc   : > { %1134 = vst [vmem:[#allocation4 + $0x1b8] sm:$0xf0] %v1126_v14 }
 0x1dd   : > { %1135 = vst [vmem:[#allocation4 + $0x28] sm:$0xf0] %v1127_v7 }
 0x1de   : > { %1258 = vst [vmem:[#allocation1 + $0x20] ss:$2 sm:$0xff] %v1250_v19 }
 0x1e1   : > { %v1188_v20 = vpop.permute.xlu0 %1187  ;;  %v1184_v22 = vpop.permute.xlu1 %1183 }
 0x1e2   : > { %v1193_v25 = vsel %vm7851_vm9, %v1186_v52, %v1188_v20  ;;  %v1191_v23 = vsel %vm7851_vm9, %v1182_v17, %v1184_v22  ;;  %v1192_v21 = vsel %vm7851_vm9, %v1184_v22, %v1186_v52  ;;  %v1355_v52 = vld [vmem:[#allocation9 + $0x40] ss:$8 sm:$0xf] }
 0x1e3   : > { %1201 = vst [vmem:[#allocation4 + $0xb8] sm:$0xf] %v1193_v25  ;;  %v1358_v58 = vperm.slane %v1355_v52, 1  ;;  %v1360_v12 = vperm.slane %v1355_v52, 3  ;;  %v1359_v16 = vperm.slane %v1355_v52, 2 }
 0x1e4   : > { %1199 = vst [vmem:[#allocation4 + $0xf8] sm:$0xf] %v1191_v23 }
 0x1e5   : > { %1200 = vst [vmem:[#allocation4 + $0x190] sm:$0xf] %v1192_v21  ;;  %v1263_v43 = vld.sshfl [vmem:[#allocation1 + $0x20] sm:$0xff pattern:$0x75316420]  ;;  %v1361_v17 = vrot.slane %v1358_v58, 4 }
 0x1e9   : > { %v1237_v26 = vpop.permute.xlu1 %1236 }
 0x1ea   : > { %v1240_v24 = vrot.slane %v1237_v26, 4 }
 0x1ec   : > { %v1242_v28 = vsel %vm7851_vm9, %v1240_v24, %v1237_v26  ;;  %v1243_v29 = vsel %vm358_vm0, %v1240_v24, %v1241_v15  ;;  %v1362_v15 = vrot.slane %v1360_v12, 4 }
 0x1ed   : > { %v1244_v30 = vsel %vm7851_vm9, %v1243_v29, %v1239_v6  ;;  %v1248_v31 = vmul.f32 %v1242_v28, %v5490_v27  ;;  %v1357_v6 = vperm.slane %v1355_v52, 0  ;;  %v1353_v29 = vld [vmem:[#allocation2 + $0x14] sm:$0xf] }
 0x1ee   : > { %v1249_v32 = vmul.f32 %v1244_v30, %v5458_v5  ;;  %v1364_v14 = vsel %vm358_vm0, %v1359_v16, %v1362_v15 }
 0x1ef   : > { %1254 = vst [vmem:[#allocation1] ss:$2 sm:$0xff] %v1248_v31  ;;  %v1363_v18 = vsel %vm358_vm0, %v1357_v6, %v1361_v17  ;;  %v1548_v17 = vld [vmem:[#allocation9 + $0x43] ss:$8 sm:$0xf] }
 0x1f0   : > { %1256 = vst [vmem:[#allocation1 + $0x10] ss:$2 sm:$0xff] %v1249_v32  ;;  %v1551_v16 = vperm.slane %v1548_v17, 1 }
 0x1f6   : > { %v1260_v35 = vld.sshfl [vmem:[#allocation1 + $0x8] sm:$0xff pattern:$0x75316420]  ;;  %v1259_v38 = vld.sshfl [vmem:[#allocation1] sm:$0xff pattern:$0x75316420] }
 0x1f7   : > { %1266 = vrot.lane.b32.xlu1 %v1260_v35, %s7755_s17  ;;  %1264 = vrot.lane.b32.xlu0 %v1259_v38, %s7755_s17  ;;  %v1261_v39 = vld.sshfl [vmem:[#allocation1 + $0x10] sm:$0xff pattern:$0x75316420]  ;;  %v1262_v44 = vld.sshfl [vmem:[#allocation1 + $0x18] sm:$0xff pattern:$0x75316420] }
 0x1f8   : > { %1268 = vrot.lane.b32.xlu2 %v1261_v39, %s7755_s17 }
 0x1ff   : > { %1272 = vrot.lane.b32.xlu1 %v1263_v43, %s7755_s17  ;;  %1270 = vrot.lane.b32.xlu0 %v1262_v44, %s7755_s17  ;;  %s7904_s17 = smov 7  }
 0x200   : > { %1300 = vrot.lane.b32.xlu2 %v1298_v36, %s7759_s21 }
 0x207   : > { %1302 = vrot.lane.b32.xlu0 %v1299_v48, %s7759_s21  ;;  %v1424_v48 = vperm.slane %v1419_v41, 3  ;;  %s7906_s21 = smov 127  }
 0x252   : > { %v1269_v49 = vpop.permute.xlu2 %1268 }
 0x25a   : > { %v1301_v50 = vpop.permute.xlu2 %1300 }
 0x25b   : > { %v1304_v51 = vrot.slane %v1301_v50, 4 }
 0x25d   : > { %v1306_v54 = vsel %vm7751_vm8, %v1304_v51, %v1301_v50 }
 0x25e   : > { %v1312_v55 = vmul.f32 %v1306_v54, %v5490_v27  ;;  %v1423_v54 = vperm.slane %v1419_v41, 2 }
 0x260   : > { %1319 = vst [vmem:[#allocation1 + $0x1] ss:$2 sm:$0xff] %v1312_v55  ;;  %v1426_v55 = vrot.slane %v1424_v48, 4 }
 0x267   : > { %v1325_v37 = vld.sshfl [vmem:[#allocation1 + $0x8] sm:$0xff pattern:$0x75316420]  ;;  %v1324_v56 = vld.sshfl [vmem:[#allocation1] sm:$0xff pattern:$0x75316420] }
 0x268   : > { %1331 = vrot.lane.b32.xlu2 %v1325_v37, %s7748_s10  ;;  %1329 = vrot.lane.b32.xlu1 %v1324_v56, %s7748_s10  ;;  %v1428_v37 = vsel %vm358_vm0, %v1423_v54, %v1426_v55  ;;  %v1742_v54 = vld [vmem:[#allocation9 + $0x46] ss:$8 sm:$0xf] }
 0x269   : > { %v1267_v57 = vpop.permute.xlu1 %1266  ;;  %v1265_v59 = vpop.permute.xlu0 %1264  ;;  %v1744_v55 = vperm.slane %v1742_v54, 0 }
 0x26a   : > { %v1275_v60 = vsel %vm7750_vm13, %v1267_v57, %v1269_v49  ;;  %v1274_v45 = vsel %vm7750_vm13, %v1265_v59, %v1267_v57  ;;  %v1417_v59 = vld [vmem:[#allocation2 + $0x14] sm:$0xf] }
 0x26b   : > { %1283 = vst [vmem:[#allocation4 + $0xc0] sm:$0xf] %v1275_v60 }
 0x26c   : > { %1282 = vst [vmem:[#allocation4 + $0x90] sm:$0xf] %v1274_v45 }
 0x271   : > { %v1273_v63 = vpop.permute.xlu1 %1272  ;;  %v1271_v0 = vpop.permute.xlu0 %1270 }
 0x272   : > { %v1276_v1 = vsel %vm7750_vm13, %v1269_v49, %v1271_v0  ;;  %v1277_v2 = vsel %vm7750_vm13, %v1271_v0, %v1273_v63  ;;  %v1427_v49 = vsel %vm358_vm0, %v1421_v46, %v1425_v47  ;;  %vm7890_vm13 = vcmask 596992  }
 0x273   : > { %1284 = vst [vmem:[#allocation4 + $0x178] sm:$0xf] %v1276_v1 }
 0x274   : > { %1285 = vst [vmem:[#allocation4 + $0xc8] sm:$0xf] %v1277_v2 }
 0x279   : > { %v1303_v4 = vpop.permute.xlu0 %1302 }
 0x27a   : > { %v1305_v8 = vrot.slane %v1303_v4, 4 }
 0x27c   : > { %v1307_v9 = vsel %vm358_vm0, %v1304_v51, %v1305_v8  ;;  %v1314_v53 = vmul.f32 %v1305_v8, %v1288_v3 }
 0x27d   : > { %v1308_v10 = vsel %vm7751_vm8, %v1307_v9, %v1303_v4  ;;  %vm7891_vm8 = vcmask 588800  }
 0x27e   : > { %v1313_v11 = vmul.f32 %v1308_v10, %v5458_v5  ;;  %1323 = vst [vmem:[#allocation1 + $0x21] ss:$2 sm:$0xff] %v1314_v53 }
 0x280   : > { %1321 = vst [vmem:[#allocation1 + $0x11] ss:$2 sm:$0xff] %v1313_v11 }
 0x285   : > { %v1328_v61 = vld.sshfl [vmem:[#allocation1 + $0x20] sm:$0xff pattern:$0x75316420] }
 0x286   : > { %1337 = vrot.lane.b32.xlu2 %v1328_v61, %s7748_s10 }
 0x287   : > { %v1326_v13 = vld.sshfl [vmem:[#allocation1 + $0x10] sm:$0xff pattern:$0x75316420]  ;;  %v1327_v62 = vld.sshfl [vmem:[#allocation1 + $0x18] sm:$0xff pattern:$0x75316420] }
 0x288   : > { %1333 = vrot.lane.b32.xlu0 %v1326_v13, %s7748_s10  ;;  %1335 = vrot.lane.b32.xlu1 %v1327_v62, %s7748_s10  ;;  %v1484_v13 = vld [vmem:[#allocation9 + $0x42] ss:$8 sm:$0xf]  ;;  %s7889_s10 = smov 73  }
 0x289   : > { %v1489_v62 = vperm.slane %v1484_v13, 3  ;;  %v1487_v6 = vperm.slane %v1484_v13, 1 }
 0x290   : > { %1365 = vrot.lane.b32.xlu0 %v1363_v18, %s7744_s14  ;;  %1367 = vrot.lane.b32.xlu1 %v1364_v14, %s7744_s14  ;;  %s7887_s14 = smov 71  }
 0x2c2   : > { %v1332_v7 = vpop.permute.xlu2 %1331 }
 0x2da   : > { %v1330_v19 = vpop.permute.xlu1 %1329 }
 0x2db   : > { %v1339_v20 = vsel %vm7752_vm12, %v1330_v19, %v1332_v7  ;;  %v1491_v19 = vrot.slane %v1489_v62, 4 }
 0x2dc   : > { %1347 = vst [vmem:[#allocation4 + $0x90] sm:$0xf0] %v1339_v20  ;;  %v1486_v20 = vperm.slane %v1484_v13, 0 }
 0x2e0   : > { %v1338_v22 = vpop.permute.xlu2 %1337 }
 0x2fa   : > { %v1334_v25 = vpop.permute.xlu0 %1333  ;;  %v1336_v23 = vpop.permute.xlu1 %1335 }
 0x2fb   : > { %v1340_v21 = vsel %vm7752_vm12, %v1332_v7, %v1334_v25  ;;  %v1341_v26 = vsel %vm7752_vm12, %v1334_v25, %v1336_v23  ;;  %v1342_v24 = vsel %vm7752_vm12, %v1336_v23, %v1338_v22  ;;  %v1488_v7 = vperm.slane %v1484_v13, 2  ;;  %vm7892_vm12 = vmmov %vm7890_vm13 }
 0x2fc   : > { %1348 = vst [vmem:[#allocation4 + $0xc0] sm:$0xf0] %v1340_v21  ;;  %v1490_v22 = vrot.slane %v1487_v6, 4  ;;  %v1550_v25 = vperm.slane %v1548_v17, 0  ;;  %v1554_v23 = vrot.slane %v1551_v16, 4 }
 0x2fd   : > { %1349 = vst [vmem:[#allocation4 + $0x178] sm:$0xf0] %v1341_v26  ;;  %v1493_v21 = vsel %vm358_vm0, %v1488_v7, %v1491_v19  ;;  %v5669_v6 = vld [vmem:[#allocation9 + $0x61] ss:$8 sm:$0xf] }
 0x2fe   : > { %1350 = vst [vmem:[#allocation4 + $0xc8] sm:$0xf0] %v1342_v24  ;;  %v1492_v26 = vsel %vm358_vm0, %v1486_v20, %v1490_v22  ;;  %v1553_v24 = vperm.slane %v1548_v17, 3  ;;  %v5677_v22 = vld [vmem:[#allocation9 + $0x62] ss:$8 sm:$0xf] }
 0x302   : > { %v1366_v28 = vpop.permute.xlu0 %1365  ;;  %v1368_v30 = vpop.permute.xlu1 %1367 }
 0x303   : > { %v1369_v31 = vrot.slane %v1366_v28, 4  ;;  %v1370_v32 = vrot.slane %v1368_v30, 4 }
 0x305   : > { %v1371_v33 = vsel %vm1056_vm15, %v1369_v31, %v1366_v28  ;;  %v1372_v34 = vsel %vm358_vm0, %v1369_v31, %v1370_v32  ;;  %v1379_v35 = vmul.f32 %v1370_v32, %v1353_v29  ;;  %v1613_v28 = vld [vmem:[#allocation9 + $0x44] ss:$8 sm:$0xf]  ;;  %v1556_v29 = vsel %vm358_vm0, %v1550_v25, %v1554_v23 }
 0x306   : > { %v1377_v38 = vmul.f32 %v1371_v33, %v5490_v27  ;;  %v1373_v39 = vsel %vm1056_vm15, %v1372_v34, %v1368_v30  ;;  %v1616_v30 = vperm.slane %v1613_v28, 1  ;;  %v1552_v31 = vperm.slane %v1548_v17, 2 }
 0x307   : > { %v1378_v40 = vmul.f32 %v1373_v39, %v5458_v5  ;;  %1387 = vst [vmem:[#allocation1 + $0x20] ss:$2 sm:$0xff] %v1379_v35  ;;  %v1555_v32 = vrot.slane %v1553_v24, 4  ;;  %v1615_v33 = vperm.slane %v1613_v28, 0  ;;  %v1617_v41 = vperm.slane %v1613_v28, 2 }
 0x308   : > { %1383 = vst [vmem:[#allocation1] ss:$2 sm:$0xff] %v1377_v38  ;;  %v1619_v34 = vrot.slane %v1616_v30, 4  ;;  %v1618_v38 = vperm.slane %v1613_v28, 3  ;;  %v1940_v17 = vperm.slane %v5669_v6, 3  ;;  %v2005_v25 = vperm.slane %v5677_v22, 3 }
 0x309   : > { %1385 = vst [vmem:[#allocation1 + $0x10] ss:$2 sm:$0xff] %v1378_v40  ;;  %v1557_v35 = vsel %vm358_vm0, %v1552_v31, %v1555_v32  ;;  %v2004_v23 = vperm.slane %v5677_v22, 2 }
 0x30a   : > { %v1621_v39 = vsel %vm358_vm0, %v1615_v33, %v1619_v34  ;;  %v1620_v42 = vrot.slane %v1618_v38, 4  ;;  %v1482_v33 = vld [vmem:[#allocation2 + $0x14] sm:$0xf] }
 0x30e   : > { %v1392_v50 = vld.sshfl [vmem:[#allocation1 + $0x20] sm:$0xff pattern:$0x75316420] }
 0x30f   : > { %v1389_v36 = vld.sshfl [vmem:[#allocation1 + $0x8] sm:$0xff pattern:$0x75316420]  ;;  %v1388_v43 = vld.sshfl [vmem:[#allocation1] sm:$0xff pattern:$0x75316420] }
 0x310   : > { %1395 = vrot.lane.b32.xlu0 %v1389_v36, %s7761_s15  ;;  %1393 = vrot.lane.b32.xlu2 %v1388_v43, %s7761_s15  ;;  %v1390_v44 = vld.sshfl [vmem:[#allocation1 + $0x10] sm:$0xff pattern:$0x75316420]  ;;  %v1391_v51 = vld.sshfl [vmem:[#allocation1 + $0x18] sm:$0xff pattern:$0x75316420]  ;;  %v1622_v43 = vsel %vm358_vm0, %v1617_v41, %v1620_v42 }
 0x311   : > { %1397 = vrot.lane.b32.xlu1 %v1390_v44, %s7761_s15  ;;  %v1677_v36 = vld [vmem:[#allocation9 + $0x45] ss:$8 sm:$0xf] }
 0x312   : > { %v1682_v44 = vperm.slane %v1677_v36, 3  ;;  %v1681_v47 = vperm.slane %v1677_v36, 2 }
 0x314   : > { %v1684_v48 = vrot.slane %v1682_v44, 4 }
 0x318   : > { %1401 = vrot.lane.b32.xlu0 %v1392_v50, %s7761_s15  ;;  %1399 = vrot.lane.b32.xlu2 %v1391_v51, %s7761_s15  ;;  %v1679_v50 = vperm.slane %v1677_v36, 0  ;;  %v1680_v51 = vperm.slane %v1677_v36, 1  ;;  %s7903_s15 = smov 120  }
 0x319   : > { %1429 = vrot.lane.b32.xlu1 %v1427_v49, %s7746_s11  ;;  %v1686_v49 = vsel %vm358_vm0, %v1681_v47, %v1684_v48 }
 0x320   : > { %1431 = vrot.lane.b32.xlu2 %v1428_v37, %s7746_s11  ;;  %v1745_v37 = vperm.slane %v1742_v54, 1  ;;  %s7888_s11 = smov 72  }
 0x36a   : > { %v1394_v56 = vpop.permute.xlu2 %1393 }
 0x372   : > { %v1400_v57 = vpop.permute.xlu2 %1399 }
 0x37a   : > { %v1432_v60 = vpop.permute.xlu2 %1431 }
 0x37b   : > { %v1434_v45 = vrot.slane %v1432_v60, 4 }
 0x37d   : > { %v1443_v63 = vmul.f32 %v1434_v45, %v1417_v59  ;;  %v1747_v59 = vperm.slane %v1742_v54, 3 }
 0x37f   : > { %1452 = vst [vmem:[#allocation1 + $0x21] ss:$2 sm:$0xff] %v1443_v63 }
 0x382   : > { %v1396_v0 = vpop.permute.xlu0 %1395 }
 0x383   : > { %v1403_v1 = vsel %vm7753_vm11, %v1394_v56, %v1396_v0  ;;  %v1398_v2 = vpop.permute.xlu1 %1397  ;;  %v1806_v56 = vld [vmem:[#allocation9 + $0x47] ss:$8 sm:$0xf] }
 0x384   : > { %1411 = vst [vmem:[#allocation4] sm:$0xf] %v1403_v1  ;;  %v1404_v3 = vsel %vm7753_vm11, %v1396_v0, %v1398_v2  ;;  %v1405_v4 = vsel %vm7753_vm11, %v1398_v2, %v1400_v57  ;;  %v1746_v1 = vperm.slane %v1742_v54, 2  ;;  %v1749_v2 = vrot.slane %v1747_v59, 4 }
 0x385   : > { %1412 = vst [vmem:[#allocation4 + $0x68] sm:$0xf] %v1404_v3  ;;  %v1808_v3 = vperm.slane %v1806_v56, 0 }
 0x386   : > { %1413 = vst [vmem:[#allocation4 + $0x148] sm:$0xf] %v1405_v4  ;;  %v1457_v46 = vld.sshfl [vmem:[#allocation1 + $0x20] sm:$0xff pattern:$0x75316420] }
 0x38a   : > { %v1402_v8 = vpop.permute.xlu0 %1401 }
 0x38b   : > { %v1406_v9 = vsel %vm7753_vm11, %v1400_v57, %v1402_v8  ;;  %v1430_v53 = vpop.permute.xlu1 %1429  ;;  %v1683_v57 = vrot.slane %v1680_v51, 4  ;;  %v1751_v8 = vsel %vm358_vm0, %v1746_v1, %v1749_v2  ;;  %vm7893_vm11 = vmmov %vm7892_vm12 }
 0x38c   : > { %1414 = vst [vmem:[#allocation4 + $0x8] sm:$0xf] %v1406_v9  ;;  %v1433_v10 = vrot.slane %v1430_v53, 4 }
 0x38d   : > { %v1685_v63 = vsel %vm358_vm0, %v1679_v50, %v1683_v57 }
 0x38e   : > { %v1435_v11 = vsel %vm990_vm14, %v1433_v10, %v1430_v53  ;;  %v1436_v52 = vsel %vm358_vm0, %v1433_v10, %v1434_v45  ;;  %v1809_v45 = vperm.slane %v1806_v56, 1  ;;  %v1871_v53 = vld [vmem:[#allocation9 + $0x60] ss:$8 sm:$0xf]  ;;  %v1810_v10 = vperm.slane %v1806_v56, 2 }
 0x38f   : > { %v1437_v61 = vsel %vm990_vm14, %v1436_v52, %v1432_v60  ;;  %v1441_v58 = vmul.f32 %v1435_v11, %v5490_v27  ;;  %v1748_v60 = vrot.slane %v1745_v37, 4  ;;  %v1811_v11 = vperm.slane %v1806_v56, 3 }
 0x390   : > { %v1442_v12 = vmul.f32 %v1437_v61, %v5458_v5  ;;  %v1812_v4 = vrot.slane %v1809_v45, 4  ;;  %v1873_v52 = vperm.slane %v1871_v53, 0  ;;  %v1874_v61 = vperm.slane %v1871_v53, 1 }
 0x391   : > { %1448 = vst [vmem:[#allocation1 + $0x1] ss:$2 sm:$0xff] %v1441_v58  ;;  %v1750_v0 = vsel %vm358_vm0, %v1744_v55, %v1748_v60  ;;  %v1813_v58 = vrot.slane %v1811_v11, 4  ;;  %v1876_v16 = vperm.slane %v1871_v53, 3 }
 0x392   : > { %1450 = vst [vmem:[#allocation1 + $0x11] ss:$2 sm:$0xff] %v1442_v12  ;;  %v1814_v9 = vsel %vm358_vm0, %v1808_v3, %v1812_v4  ;;  %v1877_v12 = vrot.slane %v1874_v61, 4 }
 0x393   : > { %v1815_v13 = vsel %vm358_vm0, %v1810_v10, %v1813_v58  ;;  %v1878_v7 = vrot.slane %v1876_v16, 4  ;;  %v1938_v10 = vperm.slane %v5669_v6, 1  ;;  %v1937_v58 = vperm.slane %v5669_v6, 0 }
 0x394   : > { %v1879_v62 = vsel %vm358_vm0, %v1873_v52, %v1877_v12 }
 0x395   : > { %v1941_v12 = vrot.slane %v1938_v10, 4 }
 0x398   : > { %v1454_v15 = vld.sshfl [vmem:[#allocation1 + $0x8] sm:$0xff pattern:$0x75316420]  ;;  %v1453_v18 = vld.sshfl [vmem:[#allocation1] sm:$0xff pattern:$0x75316420] }
 0x399   : > { %1460 = vrot.lane.b32.xlu1 %v1454_v15, %s7777_s9  ;;  %1458 = vrot.lane.b32.xlu0 %v1453_v18, %s7777_s9  ;;  %v1455_v14 = vld.sshfl [vmem:[#allocation1 + $0x10] sm:$0xff pattern:$0x75316420]  ;;  %v1456_v40 = vld.sshfl [vmem:[#allocation1 + $0x18] sm:$0xff pattern:$0x75316420] }
 0x39a   : > { %1462 = vrot.lane.b32.xlu2 %v1455_v14, %s7777_s9  ;;  %v1939_v15 = vperm.slane %v5669_v6, 2  ;;  %v1942_v18 = vrot.slane %v1940_v17, 4  ;;  %v1875_v14 = vperm.slane %v1871_v53, 2  ;;  %v1675_v6 = vld [vmem:[#allocation2 + $0x14] sm:$0xf] }
 0x39c   : > { %v1944_v19 = vsel %vm358_vm0, %v1939_v15, %v1942_v18  ;;  %v1880_v20 = vsel %vm358_vm0, %v1875_v14, %v1878_v7  ;;  %v1943_v15 = vsel %vm358_vm0, %v1937_v58, %v1941_v12  ;;  %v2003_v18 = vperm.slane %v5677_v22, 1 }
 0x3a1   : > { %1496 = vrot.lane.b32.xlu1 %v1493_v21, %s7763_s1  ;;  %1494 = vrot.lane.b32.xlu0 %v1492_v26, %s7763_s1  ;;  %v2007_v21 = vrot.slane %v2005_v25, 4 }
 0x3a2   : > { %1558 = vrot.lane.b32.xlu2 %v1556_v29, %s7792_s13 }
 0x3a3   : > { %v2009_v26 = vsel %vm358_vm0, %v2004_v23, %v2007_v21  ;;  %v2002_v21 = vperm.slane %v5677_v22, 0 }
 0x3a9   : > { %1464 = vrot.lane.b32.xlu1 %v1456_v40, %s7777_s9  ;;  %1560 = vrot.lane.b32.xlu0 %v1557_v35, %s7792_s13 }
 0x3aa   : > { %1623 = vrot.lane.b32.xlu2 %v1621_v39, %s7781_s23 }
 0x3b1   : > { %1466 = vrot.lane.b32.xlu1 %v1457_v46, %s7777_s9  ;;  %1625 = vrot.lane.b32.xlu0 %v1622_v43, %s7781_s23 }
 0x3b2   : > { %1687 = vrot.lane.b32.xlu2 %v1685_v63, %s7788_s22 }
 0x3b9   : > { %1689 = vrot.lane.b32.xlu0 %v1686_v49, %s7788_s22  ;;  %1752 = vrot.lane.b32.xlu1 %v1750_v0, %s7779_s16  ;;  %v1546_v49 = vld [vmem:[#allocation2 + $0x14] sm:$0xf] }
 0x3ba   : > { %1754 = vrot.lane.b32.xlu2 %v1751_v8, %s7779_s16 }
 0x3c1   : > { %1816 = vrot.lane.b32.xlu1 %v1814_v9, %s7790_s18 }
 0x3c2   : > { %1818 = vrot.lane.b32.xlu2 %v1815_v13, %s7790_s18  ;;  %v1611_v13 = vld [vmem:[#allocation2 + $0x14] sm:$0xf] }
 0x3c9   : > { %1881 = vrot.lane.b32.xlu1 %v1879_v62, %s7887_s14 }
 0x3ca   : > { %1883 = vrot.lane.b32.xlu2 %v1880_v20, %s7887_s14 }
 0x3d1   : > { %1947 = vrot.lane.b32.xlu1 %v1944_v19, %s7888_s11 }
 0x3d9   : > { %2012 = vrot.lane.b32.xlu1 %v2009_v26, %s7889_s10  ;;  %v2006_v26 = vrot.slane %v2003_v18, 4  ;;  %v1869_v18 = vld [vmem:[#allocation2 + $0x14] sm:$0xf] }
 0x3f4   : > { %v1463_v24 = vpop.permute.xlu2 %1462 }
 0x3fc   : > { %v1559_v32 = vpop.permute.xlu2 %1558 }
 0x3fd   : > { %v1562_v36 = vrot.slane %v1559_v32, 4 }
 0x3ff   : > { %v1564_v47 = vsel %vm433_vm2, %v1562_v36, %v1559_v32 }
 0x400   : > { %v1570_v55 = vmul.f32 %v1564_v47, %v5490_v27 }
 0x404   : > { %v1624_v1 = vpop.permute.xlu2 %1623 }
 0x405   : > { %v1627_v3 = vrot.slane %v1624_v1, 4 }
 0x407   : > { %v1629_v9 = vsel %vm500_vm3, %v1627_v3, %v1624_v1 }
 0x408   : > { %v1635_v53 = vmul.f32 %v1629_v9, %v5490_v27  ;;  %v1804_v9 = vld [vmem:[#allocation2 + $0x14] sm:$0xf] }
 0x40b   : > { %v1461_v28 = vpop.permute.xlu1 %1460  ;;  %v1459_v29 = vpop.permute.xlu0 %1458 }
 0x40c   : > { %v1469_v30 = vsel %vm7754_vm10, %v1461_v28, %v1463_v24  ;;  %v1468_v31 = vsel %vm7754_vm10, %v1459_v29, %v1461_v28  ;;  %v1688_v28 = vpop.permute.xlu2 %1687 }
 0x40d   : > { %1477 = vst [vmem:[#allocation4 + $0x68] sm:$0xf0] %v1469_v30  ;;  %v1691_v29 = vrot.slane %v1688_v28, 4 }
 0x40e   : > { %1476 = vst [vmem:[#allocation4] sm:$0xf0] %v1468_v31  ;;  %v2008_v31 = vsel %vm358_vm0, %v2002_v21, %v2006_v26 }
 0x413   : > { %v1497_v34 = vpop.permute.xlu1 %1496  ;;  %v1495_v35 = vpop.permute.xlu0 %1494 }
 0x414   : > { %v1499_v38 = vrot.slane %v1497_v34, 4  ;;  %v1498_v39 = vrot.slane %v1495_v35, 4 }
 0x416   : > { %v1508_v40 = vmul.f32 %v1499_v38, %v1482_v33  ;;  %v1500_v41 = vsel %vm367_vm1, %v1498_v39, %v1495_v35  ;;  %v1501_v42 = vsel %vm358_vm0, %v1498_v39, %v1499_v38  ;;  %v1693_v33 = vsel %vm566_vm4, %v1691_v29, %v1688_v28 }
 0x417   : > { %v1502_v43 = vsel %vm367_vm1, %v1501_v42, %v1497_v34  ;;  %v1506_v44 = vmul.f32 %v1500_v41, %v5490_v27  ;;  %v1699_v35 = vmul.f32 %v1693_v33, %v5490_v27  ;;  %v1755_v41 = vpop.permute.xlu2 %1754 }
 0x418   : > { %1516 = vst [vmem:[#allocation1 + $0x20] ss:$2 sm:$0xff] %v1508_v40  ;;  %v1507_v46 = vmul.f32 %v1502_v43, %v5458_v5  ;;  %v1740_v40 = vld [vmem:[#allocation2 + $0x14] sm:$0xf]  ;;  %v1757_v42 = vrot.slane %v1755_v41, 4 }
 0x419   : > { %1512 = vst [vmem:[#allocation1] ss:$2 sm:$0xff] %v1506_v44 }
 0x41a   : > { %1514 = vst [vmem:[#allocation1 + $0x10] ss:$2 sm:$0xff] %v1507_v46  ;;  %v1766_v44 = vmul.f32 %v1757_v42, %v1740_v40 }
 0x41b   : > { %v1465_v48 = vpop.permute.xlu1 %1464  ;;  %v1561_v50 = vpop.permute.xlu0 %1560 }
 0x41c   : > { %v1470_v51 = vsel %vm7754_vm10, %v1463_v24, %v1465_v48  ;;  %v1563_v54 = vrot.slane %v1561_v50, 4 }
 0x41d   : > { %1478 = vst [vmem:[#allocation4 + $0x148] sm:$0xf0] %v1470_v51 }
 0x41e   : > { %v1565_v37 = vsel %vm358_vm0, %v1562_v36, %v1563_v54  ;;  %v1572_v56 = vmul.f32 %v1563_v54, %v1546_v49 }
 0x41f   : > { %v1566_v57 = vsel %vm433_vm2, %v1565_v37, %v1561_v50  ;;  %v5695_v59 = vld.sshfl [vmem:[#allocation1 + $0x20] sm:$0xff pattern:$0x75316420] }
 0x420   : > { %v1571_v60 = vmul.f32 %v1566_v57, %v5458_v5  ;;  %v1517_v45 = vld.sshfl [vmem:[#allocation1] sm:$0xff pattern:$0x75316420]  ;;  %v1518_v63 = vld.sshfl [vmem:[#allocation1 + $0x8] sm:$0xff pattern:$0x75316420] }
 0x421   : > { %1522 = vrot.lane.b32.xlu0 %v1517_v45, %s7889_s10  ;;  %v1519_v0 = vld.sshfl [vmem:[#allocation1 + $0x10] sm:$0xff pattern:$0x75316420]  ;;  %1577 = vst [vmem:[#allocation1 + $0x1] ss:$2 sm:$0xff] %v1570_v55  ;;  %v1819_v45 = vpop.permute.xlu2 %1818 }
 0x422   : > { %1526 = vrot.lane.b32.xlu2 %v1519_v0, %s7889_s10  ;;  %v1520_v2 = vld.sshfl [vmem:[#allocation1 + $0x18] sm:$0xff pattern:$0x75316420]  ;;  %1581 = vst [vmem:[#allocation1 + $0x21] ss:$2 sm:$0xff] %v1572_v56  ;;  %v1821_v0 = vrot.slane %v1819_v45, 4 }
 0x423   : > { %v1467_v4 = vpop.permute.xlu1 %1466  ;;  %1579 = vst [vmem:[#allocation1 + $0x11] ss:$2 sm:$0xff] %v1571_v60  ;;  %v1626_v61 = vpop.permute.xlu0 %1625 }
 0x424   : > { %v1471_v8 = vsel %vm7754_vm10, %v1465_v48, %v1467_v4  ;;  %v1628_v62 = vrot.slane %v1626_v61, 4  ;;  %vm7895_vm10 = vmmov %vm7891_vm8 }
 0x425   : > { %1479 = vst [vmem:[#allocation4 + $0x8] sm:$0xf0] %v1471_v8 }
 0x426   : > { %v1630_v17 = vsel %vm358_vm0, %v1627_v3, %v1628_v62  ;;  %v1637_v16 = vmul.f32 %v1628_v62, %v1611_v13 }
 0x427   : > { %v1631_v7 = vsel %vm500_vm3, %v1630_v17, %v1626_v61  ;;  %v1830_v61 = vmul.f32 %v1821_v0, %v1804_v9 }
 0x428   : > { %v1582_v11 = vld.sshfl [vmem:[#allocation1] sm:$0xff pattern:$0x75316420]  ;;  %v1583_v52 = vld.sshfl [vmem:[#allocation1 + $0x8] sm:$0xff pattern:$0x75316420]  ;;  %v1636_v19 = vmul.f32 %v1631_v7, %v5458_v5 }
 0x429   : > { %1524 = vrot.lane.b32.xlu0 %v1518_v63, %s7889_s10  ;;  %1587 = vrot.lane.b32.xlu1 %v1582_v11, %s7888_s11  ;;  %1641 = vst [vmem:[#allocation1] ss:$2 sm:$0xff] %v1635_v53  ;;  %v1586_v14 = vld.sshfl [vmem:[#allocation1 + $0x20] sm:$0xff pattern:$0x75316420]  ;;  %v1884_v3 = vpop.permute.xlu2 %1883 }
 0x42a   : > { %1528 = vrot.lane.b32.xlu2 %v1520_v2, %s7889_s10  ;;  %1645 = vst [vmem:[#allocation1 + $0x20] ss:$2 sm:$0xff] %v1637_v16  ;;  %v1585_v20 = vld.sshfl [vmem:[#allocation1 + $0x18] sm:$0xff pattern:$0x75316420]  ;;  %v1886_v53 = vrot.slane %v1884_v3, 4 }
 0x42b   : > { %v1584_v25 = vld.sshfl [vmem:[#allocation1 + $0x10] sm:$0xff pattern:$0x75316420]  ;;  %v1690_v23 = vpop.permute.xlu0 %1689  ;;  %v1753_v50 = vpop.permute.xlu1 %1752 }
 0x42c   : > { %1643 = vst [vmem:[#allocation1 + $0x10] ss:$2 sm:$0xff] %v1636_v19  ;;  %v1692_v24 = vrot.slane %v1690_v23, 4  ;;  %v1756_v51 = vrot.slane %v1753_v50, 4 }
 0x42e   : > { %v1701_v30 = vmul.f32 %v1692_v24, %v1675_v6  ;;  %v1694_v39 = vsel %vm358_vm0, %v1691_v29, %v1692_v24  ;;  %v1758_v54 = vsel %vm7850_vm5, %v1756_v51, %v1753_v50  ;;  %v1759_v56 = vsel %vm358_vm0, %v1756_v51, %v1757_v42  ;;  %v1933_v24 = vld [vmem:[#allocation2 + $0x14] sm:$0xf] }
 0x42f   : > { %v1695_v22 = vsel %vm566_vm4, %v1694_v39, %v1690_v23  ;;  %v1764_v55 = vmul.f32 %v1758_v54, %v5490_v27  ;;  %v1760_v57 = vsel %vm7850_vm5, %v1759_v56, %v1755_v41 }
 0x430   : > { %v1647_v32 = vld.sshfl [vmem:[#allocation1 + $0x8] sm:$0xff pattern:$0x75316420]  ;;  %v1646_v38 = vld.sshfl [vmem:[#allocation1] sm:$0xff pattern:$0x75316420]  ;;  %v1700_v36 = vmul.f32 %v1695_v22, %v5458_v5 }
 0x431   : > { %1945 = vrot.lane.b32.xlu0 %v1943_v15, %s7888_s11  ;;  %1593 = vrot.lane.b32.xlu1 %v1585_v20, %s7888_s11  ;;  %v1650_v34 = vld.sshfl [vmem:[#allocation1 + $0x20] sm:$0xff pattern:$0x75316420]  ;;  %1706 = vst [vmem:[#allocation1 + $0x1] ss:$2 sm:$0xff] %v1699_v35  ;;  %v1895_v20 = vmul.f32 %v1886_v53, %v1869_v18 }
 0x432   : > { %1589 = vrot.lane.b32.xlu2 %v1583_v52, %s7888_s11  ;;  %1710 = vst [vmem:[#allocation1 + $0x21] ss:$2 sm:$0xff] %v1701_v30  ;;  %v1998_v22 = vld [vmem:[#allocation2 + $0x14] sm:$0xf] }
 0x433   : > { %v1649_v46 = vld.sshfl [vmem:[#allocation1 + $0x18] sm:$0xff pattern:$0x75316420]  ;;  %v1648_v47 = vld.sshfl [vmem:[#allocation1 + $0x10] sm:$0xff pattern:$0x75316420]  ;;  %v1817_v63 = vpop.permute.xlu1 %1816 }
 0x434   : > { %1708 = vst [vmem:[#allocation1 + $0x11] ss:$2 sm:$0xff] %v1700_v36  ;;  %v1820_v1 = vrot.slane %v1817_v63, 4 }
 0x436   : > { %v1823_v2 = vsel %vm358_vm0, %v1820_v1, %v1821_v0  ;;  %v1822_v11 = vsel %vm7846_vm6, %v1820_v1, %v1817_v63 }
 0x437   : > { %v1824_v4 = vsel %vm7846_vm6, %v1823_v2, %v1819_v45  ;;  %v1828_v12 = vmul.f32 %v1822_v11, %v5490_v27 }
 0x438   : > { %v1711_v48 = vld.sshfl [vmem:[#allocation1] sm:$0xff pattern:$0x75316420]  ;;  %v1712_v37 = vld.sshfl [vmem:[#allocation1 + $0x8] sm:$0xff pattern:$0x75316420]  ;;  %v1829_v52 = vmul.f32 %v1824_v4, %v5458_v5 }
 0x439   : > { %2010 = vrot.lane.b32.xlu0 %v2008_v31, %s7889_s10  ;;  %1653 = vrot.lane.b32.xlu1 %v1647_v32, %s7887_s14  ;;  %v5726_v43 = vld.sshfl [vmem:[#allocation1 + $0x20] sm:$0xff pattern:$0x75316420]  ;;  %1770 = vst [vmem:[#allocation1] ss:$2 sm:$0xff] %v1764_v55 }
 0x43a   : > { %1595 = vrot.lane.b32.xlu2 %v1586_v14, %s7888_s11  ;;  %1774 = vst [vmem:[#allocation1 + $0x20] ss:$2 sm:$0xff] %v1766_v44 }
 0x43b   : > { %v1713_v49 = vld.sshfl [vmem:[#allocation1 + $0x10] sm:$0xff pattern:$0x75316420]  ;;  %v1714_v60 = vld.sshfl [vmem:[#allocation1 + $0x18] sm:$0xff pattern:$0x75316420]  ;;  %v1882_v8 = vpop.permute.xlu1 %1881 }
 0x43c   : > { %v1885_v10 = vrot.slane %v1882_v8, 4 }
 0x43e   : > { %v1888_v58 = vsel %vm358_vm0, %v1885_v10, %v1886_v53  ;;  %v1887_v7 = vsel %vm7849_vm7, %v1885_v10, %v1882_v8 }
 0x43f   : > { %v1889_v16 = vsel %vm7849_vm7, %v1888_v58, %v1884_v3  ;;  %v1893_v6 = vmul.f32 %v1887_v7, %v5490_v27 }
 0x440   : > { %v5757_v15 = vld.sshfl [vmem:[#allocation1] sm:$0xff pattern:$0x75316420]  ;;  %v5759_v14 = vld.sshfl [vmem:[#allocation1 + $0x8] sm:$0xff pattern:$0x75316420]  ;;  %v1894_v19 = vmul.f32 %v1889_v16, %v5458_v5 }
 0x441   : > { %1530 = vrot.lane.b32.xlu0 %v5695_v59, %s7889_s10  ;;  %1659 = vrot.lane.b32.xlu1 %v1650_v34, %s7887_s14  ;;  %v1765_v59 = vmul.f32 %v1760_v57, %v5458_v5  ;;  %v5754_v17 = vld.sshfl [vmem:[#allocation1 + $0x20] sm:$0xff pattern:$0x75316420]  ;;  %1835 = vst [vmem:[#allocation1 + $0x1] ss:$2 sm:$0xff] %v1828_v12 }
 0x442   : > { %1655 = vrot.lane.b32.xlu2 %v1648_v47, %s7887_s14  ;;  %1839 = vst [vmem:[#allocation1 + $0x21] ss:$2 sm:$0xff] %v1830_v61 }
 0x443   : > { %1772 = vst [vmem:[#allocation1 + $0x10] ss:$2 sm:$0xff] %v1765_v59 }
 0x448   : > { %v5770_v30 = vld.sshfl [vmem:[#allocation1] sm:$0xff pattern:$0x75316420]  ;;  %v5772_v31 = vld.sshfl [vmem:[#allocation1 + $0x8] sm:$0xff pattern:$0x75316420] }
 0x449   : > { %1591 = vrot.lane.b32.xlu0 %v1584_v25, %s7888_s11  ;;  %1720 = vrot.lane.b32.xlu1 %v1713_v49, %s7790_s18  ;;  %v1948_v25 = vpop.permute.xlu1 %1947  ;;  %v5768_v26 = vld.sshfl [vmem:[#allocation1 + $0x20] sm:$0xff pattern:$0x75316420]  ;;  %1899 = vst [vmem:[#allocation1] ss:$2 sm:$0xff] %v1893_v6 }
 0x44a   : > { %1716 = vrot.lane.b32.xlu2 %v1711_v48, %s7790_s18  ;;  %v5750_v13 = vld.sshfl [vmem:[#allocation1 + $0x10] sm:$0xff pattern:$0x75316420]  ;;  %v5752_v62 = vld.sshfl [vmem:[#allocation1 + $0x18] sm:$0xff pattern:$0x75316420] }
 0x44b   : > { %1837 = vst [vmem:[#allocation1 + $0x11] ss:$2 sm:$0xff] %v1829_v52  ;;  %v1950_v28 = vrot.slane %v1948_v25, 4 }
 0x44c   : > { %1903 = vst [vmem:[#allocation1 + $0x20] ss:$2 sm:$0xff] %v1895_v20 }
 0x44d   : > { %v1959_v32 = vmul.f32 %v1950_v28, %v1933_v24 }
 0x450   : > { %v1904_v1 = vld.sshfl [vmem:[#allocation1] sm:$0xff pattern:$0x75316420]  ;;  %v5789_v2 = vld.sshfl [vmem:[#allocation1 + $0x8] sm:$0xff pattern:$0x75316420] }
 0x451   : > { %1651 = vrot.lane.b32.xlu0 %v1646_v38, %s7887_s14  ;;  %v2013_v34 = vpop.permute.xlu1 %2012 }
 0x452   : > { %1722 = vrot.lane.b32.xlu2 %v1714_v60, %s7790_s18  ;;  %v5764_v23 = vld.sshfl [vmem:[#allocation1 + $0x10] sm:$0xff pattern:$0x75316420]  ;;  %v5766_v21 = vld.sshfl [vmem:[#allocation1 + $0x18] sm:$0xff pattern:$0x75316420] }
 0x453   : > { %1901 = vst [vmem:[#allocation1 + $0x10] ss:$2 sm:$0xff] %v1894_v19  ;;  %v5775_v35 = vld.sshfl [vmem:[#allocation1 + $0x20] sm:$0xff pattern:$0x75316420]  ;;  %v2015_v38 = vrot.slane %v2013_v34, 4 }
 0x454   : > { %1968 = vst [vmem:[#allocation1 + $0x21] ss:$2 sm:$0xff] %v1959_v32 }
 0x455   : > { %v2024_v41 = vmul.f32 %v2015_v38, %v1998_v22 }
 0x459   : > { %1657 = vrot.lane.b32.xlu0 %v1649_v46, %s7887_s14 }
 0x45a   : > { %v1906_v33 = vld.sshfl [vmem:[#allocation1 + $0x10] sm:$0xff pattern:$0x75316420]  ;;  %v1907_v3 = vld.sshfl [vmem:[#allocation1 + $0x18] sm:$0xff pattern:$0x75316420] }
 0x45b   : > { %1913 = vrot.lane.b32.xlu2 %v1906_v33, %s7781_s23  ;;  %v5778_v42 = vld.sshfl [vmem:[#allocation1 + $0x20] sm:$0xff pattern:$0x75316420] }
 0x45c   : > { %2032 = vst [vmem:[#allocation1 + $0x20] ss:$2 sm:$0xff] %v2024_v41 }
 0x461   : > { %1718 = vrot.lane.b32.xlu0 %v1712_v37, %s7790_s18 }
 0x463   : > { %v2037_v22 = vld.sshfl [vmem:[#allocation1 + $0x20] sm:$0xff pattern:$0x75316420] }
 0x47c   : > { %v1527_v29 = vpop.permute.xlu2 %1526 }
 0x484   : > { %v1529_v39 = vpop.permute.xlu2 %1528 }
 0x485   : > { %v1534_v40 = vsel %vm7890_vm13, %v1527_v29, %v1529_v39  ;;  %vm7894_vm13 = vmmov %vm7891_vm8 }
 0x486   : > { %1542 = vst [vmem:[#allocation4 + $0xd0] sm:$0xf] %v1534_v40 }
 0x48c   : > { %v1590_v44 = vpop.permute.xlu2 %1589 }
 0x493   : > { %v1523_v36 = vpop.permute.xlu0 %1522 }
 0x494   : > { %v1596_v51 = vpop.permute.xlu2 %1595 }
 0x49b   : > { %v1588_v46 = vpop.permute.xlu1 %1587  ;;  %v1525_v47 = vpop.permute.xlu0 %1524 }
 0x49c   : > { %v1597_v48 = vsel %vm7891_vm8, %v1588_v46, %v1590_v44  ;;  %v1532_v49 = vsel %vm7892_vm12, %v1523_v36, %v1525_v47  ;;  %v1533_v50 = vsel %vm7893_vm11, %v1525_v47, %v1527_v29  ;;  %v1656_v60 = vpop.permute.xlu2 %1655 }
 0x49d   : > { %1605 = vst [vmem:[#allocation4 + $0x40] sm:$0xf0] %v1597_v48 }
 0x49e   : > { %1540 = vst [vmem:[#allocation4 + $0x40] sm:$0xf] %v1532_v49  ;;  %v5868_v49 = vld [vmem:[#allocation9 + $0x1] ss:$8 sm:$0xf] }
 0x49f   : > { %1541 = vst [vmem:[#allocation4 + $0xa8] sm:$0xf] %v1533_v50  ;;  %v2553_v50 = vperm.slane %v5868_v49, 0 }
 0x4a3   : > { %v1594_v54 = vpop.permute.xlu1 %1593  ;;  %v1946_v55 = vpop.permute.xlu0 %1945 }
 0x4a4   : > { %v1600_v37 = vsel %vm7894_vm13, %v1594_v54, %v1596_v51  ;;  %v1949_v56 = vrot.slane %v1946_v55, 4  ;;  %v1717_v18 = vpop.permute.xlu2 %1716  ;;  %vm7899_vm13 = vmmov %vm7891_vm8 }
 0x4a5   : > { %1608 = vst [vmem:[#allocation4 + $0x1a0] sm:$0xf0] %v1600_v37 }
 0x4a6   : > { %v1951_v57 = vsel %vm7895_vm10, %v1949_v56, %v1946_v55  ;;  %v1952_v59 = vsel %vm358_vm0, %v1949_v56, %v1950_v28  ;;  %vm7896_vm10 = vmmov %vm7893_vm11 }
 0x4a7   : > { %v1953_v45 = vsel %vm7891_vm8, %v1952_v59, %v1948_v25  ;;  %v1957_v63 = vmul.f32 %v1951_v57, %v5490_v27  ;;  %vm7897_vm11 = vmmov %vm7896_vm10  ;;  %v2556_v57 = vperm.slane %v5868_v49, 3 }
 0x4a8   : > { %v1958_v0 = vmul.f32 %v1953_v45, %v5458_v5  ;;  %vm7898_vm12 = vmmov %vm7896_vm10 }
 0x4a9   : > { %1964 = vst [vmem:[#allocation1 + $0x1] ss:$2 sm:$0xff] %v1957_v63 }
 0x4aa   : > { %1966 = vst [vmem:[#allocation1 + $0x11] ss:$2 sm:$0xff] %v1958_v0 }
 0x4ab   : > { %v2011_v4 = vpop.permute.xlu0 %2010  ;;  %v1654_v8 = vpop.permute.xlu1 %1653 }
 0x4ac   : > { %v2014_v9 = vrot.slane %v2011_v4, 4  ;;  %v1662_v53 = vsel %vm7849_vm7, %v1654_v8, %v1656_v60 }
 0x4ad   : > { %1670 = vst [vmem:[#allocation4 + $0x100] sm:$0xf] %v1662_v53 }
 0x4ae   : > { %v2016_v10 = vsel %vm7896_vm10, %v2014_v9, %v2011_v4  ;;  %v2017_v11 = vsel %vm358_vm0, %v2014_v9, %v2015_v38 }
 0x4af   : > { %v2018_v52 = vsel %vm7897_vm11, %v2017_v11, %v2013_v34  ;;  %v2022_v61 = vmul.f32 %v2016_v10, %v5490_v27 }
 0x4b0   : > { %v2023_v58 = vmul.f32 %v2018_v52, %v5458_v5  ;;  %v1969_v12 = vld.sshfl [vmem:[#allocation1] sm:$0xff pattern:$0x75316420]  ;;  %v1970_v16 = vld.sshfl [vmem:[#allocation1 + $0x8] sm:$0xff pattern:$0x75316420]  ;;  %v5802_v5 = vpop.permute.xlu2 %1722 }
 0x4b1   : > { %v1972_v7 = vld.sshfl [vmem:[#allocation1 + $0x18] sm:$0xff pattern:$0x75316420]  ;;  %v1971_v19 = vld.sshfl [vmem:[#allocation1 + $0x10] sm:$0xff pattern:$0x75316420] }
 0x4b2   : > { %1980 = vrot.lane.b32.xlu2 %v1972_v7, %s7792_s13  ;;  %2030 = vst [vmem:[#allocation1 + $0x10] ss:$2 sm:$0xff] %v2023_v58 }
 0x4b3   : > { %v1531_v20 = vpop.permute.xlu0 %1530  ;;  %2028 = vst [vmem:[#allocation1] ss:$2 sm:$0xff] %v2022_v61  ;;  %v1660_v25 = vpop.permute.xlu1 %1659 }
 0x4b4   : > { %v1535_v6 = vsel %vm7898_vm12, %v1529_v39, %v1531_v20  ;;  %vm7956_vm12 = vmmov %vm7891_vm8 }
 0x4b5   : > { %1543 = vst [vmem:[#allocation4 + $0x1a0] sm:$0xf] %v1535_v6  ;;  %v5909_v6 = vld [vmem:[#allocation9 + $0x4] ss:$8 sm:$0xf] }
 0x4b9   : > { %v2036_v24 = vld.sshfl [vmem:[#allocation1 + $0x18] sm:$0xff pattern:$0x75316420]  ;;  %v2035_v28 = vld.sshfl [vmem:[#allocation1 + $0x10] sm:$0xff pattern:$0x75316420] }
 0x4ba   : > { %1786 = vrot.lane.b32.xlu2 %v5752_v62, %s7779_s16  ;;  %2044 = vrot.lane.b32.xlu1 %v2036_v24, %s7763_s1  ;;  %v2034_v39 = vld.sshfl [vmem:[#allocation1 + $0x8] sm:$0xff pattern:$0x75316420]  ;;  %v2033_v46 = vld.sshfl [vmem:[#allocation1] sm:$0xff pattern:$0x75316420] }
 0x4bb   : > { %2042 = vrot.lane.b32.xlu0 %v2035_v28, %s7763_s1  ;;  %v1592_v27 = vpop.permute.xlu0 %1591  ;;  %v1721_v33 = vpop.permute.xlu1 %1720  ;;  %v2730_v24 = vperm.slane %v5909_v6, 0 }
 0x4bc   : > { %v1598_v29 = vsel %vm7899_vm13, %v1590_v44, %v1592_v27  ;;  %v1599_v32 = vsel %vm7891_vm8, %v1592_v27, %v1594_v54  ;;  %v1728_v34 = vsel %vm7846_vm6, %v1721_v33, %v5802_v5  ;;  %vm7967_vm8 = vmmov %vm7897_vm11 }
 0x4bd   : > { %1606 = vst [vmem:[#allocation4 + $0xa8] sm:$0xf0] %v1598_v29 }
 0x4be   : > { %1607 = vst [vmem:[#allocation4 + $0xd0] sm:$0xf0] %v1599_v32 }
 0x4bf   : > { %1736 = vst [vmem:[#allocation4 + $0x160] sm:$0xf0] %v1728_v34 }
 0x4c2   : > { %1917 = vrot.lane.b32.xlu2 %v5775_v35, %s7781_s23  ;;  %1978 = vrot.lane.b32.xlu1 %v1971_v19, %s7792_s13 }
 0x4c3   : > { %1915 = vrot.lane.b32.xlu0 %v1907_v3, %s7781_s23  ;;  %v1652_v62 = vpop.permute.xlu0 %1651 }
 0x4c4   : > { %v1661_v38 = vsel %vm7849_vm7, %v1652_v62, %v1654_v8  ;;  %v5889_v8 = vld [vmem:[#allocation9 + $0x2] ss:$8 sm:$0xf]  ;;  %v2733_v62 = vperm.slane %v5909_v6, 3 }
 0x4c5   : > { %1669 = vst [vmem:[#allocation4 + $0x10] sm:$0xf] %v1661_v38  ;;  %v2614_v9 = vperm.slane %v5889_v8, 2  ;;  %v2099_v38 = vld [vmem:[#allocation4 + $0xd0] sm:$0xff] }
 0x4ca   : > { %1784 = vrot.lane.b32.xlu1 %v5750_v13, %s7779_s16  ;;  %2040 = vrot.lane.b32.xlu2 %v2034_v39, %s7763_s1 }
 0x4cb   : > { %2046 = vrot.lane.b32.xlu0 %v2037_v22, %s7763_s1  ;;  %v1658_v40 = vpop.permute.xlu0 %1657  ;;  %v2095_v22 = vld [vmem:[#allocation4 + $0x148] sm:$0xff] }
 0x4cc   : > { %v1663_v35 = vsel %vm7849_vm7, %v1656_v60, %v1658_v40  ;;  %v1664_v41 = vsel %vm7849_vm7, %v1658_v40, %v1660_v25 }
 0x4cd   : > { %1671 = vst [vmem:[#allocation4 + $0x160] sm:$0xf] %v1663_v35 }
 0x4ce   : > { %1672 = vst [vmem:[#allocation4 + $0x20] sm:$0xf] %v1664_v41 }
 0x4d2   : > { %1851 = vrot.lane.b32.xlu1 %v5766_v21, %s7788_s22  ;;  %1909 = vrot.lane.b32.xlu2 %v1904_v1, %s7781_s23  ;;  %v5858_v21 = vld [vmem:[#allocation9] ss:$8 sm:$0xf] }
 0x4d3   : > { %1849 = vrot.lane.b32.xlu0 %v5764_v23, %s7788_s22  ;;  %v1719_v13 = vpop.permute.xlu0 %1718  ;;  %v5851_v23 = vpop.permute.xlu2 %1913  ;;  %v2496_v47 = vperm.slane %v5858_v21, 2 }
 0x4d4   : > { %v1726_v36 = vsel %vm7846_vm6, %v1717_v18, %v1719_v13  ;;  %v1727_v44 = vsel %vm7846_vm6, %v1719_v13, %v1721_v33  ;;  %v2103_v34 = vld [vmem:[#allocation4 + $0x160] sm:$0xff] }
 0x4d5   : > { %1734 = vst [vmem:[#allocation4 + $0x10] sm:$0xf0] %v1726_v36  ;;  %v2091_v36 = vld [vmem:[#allocation4 + $0x178] sm:$0xff] }
 0x4d6   : > { %1735 = vst [vmem:[#allocation4 + $0x100] sm:$0xf0] %v1727_v44 }
 0x4da   : > { %1976 = vrot.lane.b32.xlu2 %v1970_v16, %s7792_s13  ;;  %2038 = vrot.lane.b32.xlu1 %v2033_v46, %s7763_s1  ;;  %v5900_v16 = vld [vmem:[#allocation9 + $0x3] ss:$8 sm:$0xf] }
 0x4db   : > { %1982 = vrot.lane.b32.xlu0 %v5778_v42, %s7792_s13  ;;  %v2672_v18 = vperm.slane %v5900_v16, 1  ;;  %v2087_v46 = vld [vmem:[#allocation4 + $0x190] sm:$0xff] }
 0x4e2   : > { %1782 = vrot.lane.b32.xlu2 %v5759_v14, %s7779_s16  ;;  %1853 = vrot.lane.b32.xlu1 %v5768_v26, %s7788_s22  ;;  %v5053_v14 = vmov 0   ;;  %v2494_v26 = vperm.slane %v5858_v21, 0 }
 0x4e3   : > { %1788 = vrot.lane.b32.xlu0 %v5754_v17, %s7779_s16  ;;  %4624 = vset.pattern.permute.xlu1 %v5053_v14  ;;  %v2213_v17 = vld [vmem:[%s7900_s3] sm:$0xff] }
 0x4e4   : > { %4885 = vset.pattern.permute.xlu0 %v5053_v14  ;;  %v5922_v14 = vld [vmem:[#allocation9 + $0x5] ss:$8 sm:$0xf] }
 0x4ea   : > { %1974 = vrot.lane.b32.xlu1 %v1969_v12, %s7792_s13 }
 0x4eb   : > { %1911 = vrot.lane.b32.xlu0 %v5789_v2, %s7781_s23 }
 0x4f2   : > { %1780 = vrot.lane.b32.xlu1 %v5757_v15, %s7779_s16 }
 0x4f3   : > { %1724 = vrot.lane.b32.xlu0 %v5726_v43, %s7790_s18  ;;  %v2214_v43 = vld [vmem:[%s7901_s4] sm:$0xff] }
 0x4fa   : > { %1847 = vrot.lane.b32.xlu1 %v5772_v31, %s7788_s22  ;;  %v2495_v31 = vperm.slane %v5858_v21, 1 }
 0x4fb   : > { %1845 = vrot.lane.b32.xlu0 %v5770_v30, %s7788_s22 }
 0x502   : > { %2289 = vperm.xlu1 %4624, %v2213_v17   ;;  %v2555_v17 = vperm.slane %v5868_v49, 2 }
 0x504   : > { %2561 = vrot.lane.b32.xlu0 %v2555_v17, %s7792_s13  ;;  %v2086_v17 = vld [vmem:[#allocation4 + $0xf8] sm:$0xff] }
 0x50a   : > { %2298 = vperm.xlu1 %4624, %v2214_v43   ;;  %v2083_v43 = vld [vmem:[#allocation4 + $0x1b8] sm:$0xff] }
 0x50c   : > { %v5856_v15 = vpop.permute.xlu2 %1980 }
 0x512   : > { %2498 = vrot.lane.b32.xlu1 %v2494_v26, %s7763_s1 }
 0x514   : > { %v5862_v30 = vpop.permute.xlu2 %1786 }
 0x51a   : > { %2500 = vrot.lane.b32.xlu1 %v2495_v31, %s7763_s1 }
 0x51c   : > { %v1918_v42 = vpop.permute.xlu2 %1917 }
 0x522   : > { %2502 = vrot.lane.b32.xlu1 %v2496_v47, %s7763_s1 }
 0x524   : > { %v2041_v48 = vpop.permute.xlu2 %2040 }
 0x52a   : > { %2557 = vrot.lane.b32.xlu1 %v2553_v50, %s7792_s13  ;;  %v2075_v50 = vld [vmem:[#allocation4 + $0x108] sm:$0xff] }
 0x52c   : > { %v2045_v51 = vpop.permute.xlu1 %2044  ;;  %v5872_v54 = vpop.permute.xlu2 %1909 }
 0x52d   : > { %v2043_v55 = vpop.permute.xlu0 %2042 }
 0x52e   : > { %v2049_v37 = vsel %vm367_vm1, %v2041_v48, %v2043_v55  ;;  %v2050_v56 = vsel %vm367_vm1, %v2043_v55, %v2045_v51  ;;  %v2071_v55 = vld [vmem:[#allocation4 + $0x118] sm:$0xff] }
 0x52f   : > { %2057 = vst [vmem:[#allocation4 + $0xf0] sm:$0xf] %v2049_v37  ;;  %v5934_v37 = vld [vmem:[#allocation9 + $0x6] ss:$8 sm:$0xf] }
 0x530   : > { %2058 = vst [vmem:[#allocation4 + $0x30] sm:$0xf] %v2050_v56  ;;  %v2613_v56 = vperm.slane %v5889_v8, 1 }
 0x532   : > { %2563 = vrot.lane.b32.xlu1 %v2556_v57, %s7792_s13  ;;  %v2067_v57 = vld [vmem:[#allocation4 + $0x130] sm:$0xff]  ;;  %2618 = vrot.lane.b32.xlu0 %v2613_v56, %s7781_s23 }
 0x533   : > { %v2070_v56 = vld [vmem:[#allocation4 + $0x110] sm:$0xff] }
 0x534   : > { %v1979_v59 = vpop.permute.xlu1 %1978  ;;  %v5878_v60 = vpop.permute.xlu2 %1976 }
 0x535   : > { %v1986_v45 = vsel %vm433_vm2, %v1979_v59, %v5856_v15  ;;  %v1985_v63 = vsel %vm433_vm2, %v5878_v60, %v1979_v59  ;;  %v1916_v0 = vpop.permute.xlu0 %1915  ;;  %v2849_v59 = vperm.slane %v5934_v37, 1 }
 0x536   : > { %1994 = vst [vmem:[#allocation4 + $0x88] sm:$0xf0] %v1986_v45  ;;  %v1921_v1 = vsel %vm500_vm3, %v5851_v23, %v1916_v0  ;;  %v1922_v2 = vsel %vm500_vm3, %v1916_v0, %v1918_v42  ;;  %v2114_v3 = vld [vmem:[#allocation4 + $0xf0] sm:$0xf] }
 0x537   : > { %1993 = vst [vmem:[#allocation4 + $0x38] sm:$0xf0] %v1985_v63  ;;  %4509 = vmatpush.msk.msra.mxu1 %vm358_vm0, %v2114_v3  ;;  %v2115_v4 = vld [vmem:[#allocation4 + $0x30] sm:$0xf] }
 0x538   : > { %1929 = vst [vmem:[#allocation4 + $0x88] sm:$0xf] %v1921_v1  ;;  %4511 = vmatpush.msk.msra.mxu2 %vm358_vm0, %v2115_v4  ;;  %v5946_v3 = vld [vmem:[#allocation9 + $0x7] ss:$8 sm:$0xf] }
 0x539   : > { %1930 = vst [vmem:[#allocation4 + $0x170] sm:$0xf] %v1922_v2  ;;  %v2497_v2 = vperm.slane %v5858_v21, 3  ;;  %v5951_v4 = vld [vmem:[%s7902_s2] sm:$0xff] }
 0x53a   : > { %2620 = vrot.lane.b32.xlu1 %v2614_v9, %s7781_s23  ;;  %v2671_v9 = vperm.slane %v5900_v16, 0 }
 0x53b   : > { %2504 = vrot.lane.b32.xlu2 %v2497_v2, %s7763_s1  ;;  %v2851_v2 = vperm.slane %v5934_v37, 3  ;;  %s7907_s1 = smov 121  }
 0x53c   : > { %v1785_v53 = vpop.permute.xlu1 %1784  ;;  %v5892_v10 = vpop.permute.xlu2 %1782  ;;  %2675 = vrot.lane.b32.xlu0 %v2671_v9, %s7788_s22  ;;  %v2789_v9 = vperm.slane %v5922_v14, 0 }
 0x53d   : > { %v1792_v11 = vsel %vm7850_vm5, %v1785_v53, %v5862_v30  ;;  %v1791_v52 = vsel %vm7850_vm5, %v5892_v10, %v1785_v53  ;;  %v2047_v61 = vpop.permute.xlu0 %2046 }
 0x53e   : > { %1800 = vst [vmem:[#allocation4 + $0xa0] sm:$0xf] %v1792_v11  ;;  %v2051_v58 = vsel %vm367_vm1, %v2045_v51, %v2047_v61  ;;  %v2554_v61 = vperm.slane %v5868_v49, 1  ;;  %v5968_v49 = vld [vmem:[#allocation9 + $0x20] ss:$8 sm:$0xf] }
 0x53f   : > { %1799 = vst [vmem:[#allocation4 + $0x78] sm:$0xf] %v1791_v52  ;;  %v2111_v12 = vld [vmem:[#allocation4 + $0x88] sm:$0xff] }
 0x540   : > { %2059 = vst [vmem:[#allocation4 + $0x198] sm:$0xf] %v2051_v58  ;;  %2176 = vmatpush.msra.mxu2 %v2111_v12  ;;  %v2674_v58 = vperm.slane %v5900_v16, 3  ;;  %v2100_v12 = vld [vmem:[#allocation4 + $0x1a0] sm:$0xff] }
 0x542   : > { %2677 = vrot.lane.b32.xlu1 %v2672_v18, %s7788_s22  ;;  %v2910_v18 = vperm.slane %v5946_v3, 3 }
 0x543   : > { %2559 = vrot.lane.b32.xlu2 %v2554_v61, %s7792_s13  ;;  %v6021_v61 = vld [vmem:[#allocation9 + $0x24] ss:$8 sm:$0xf] }
 0x544   : > { %v1852_v7 = vpop.permute.xlu1 %1851  ;;  %2681 = vrot.lane.b32.xlu0 %v2674_v58, %s7788_s22 }
 0x545   : > { %v5904_v19 = vpop.permute.xlu0 %1849 }
 0x546   : > { %v1857_v20 = vsel %vm566_vm4, %v5904_v19, %v1852_v7 }
 0x547   : > { %1865 = vst [vmem:[#allocation4 + $0xa0] sm:$0xf0] %v1857_v20  ;;  %v2116_v25 = vld [vmem:[#allocation4 + $0x198] sm:$0xf] }
 0x548   : > { %4513 = vmatpush.msk.msra.mxu3 %vm358_vm0, %v2116_v25 }
 0x54a   : > { %2734 = vrot.lane.b32.xlu1 %v2730_v24, %s7779_s16  ;;  %v2088_v24 = vld [vmem:[#allocation4 + $0xb8] sm:$0xff] }
 0x54c   : > { %v2039_v28 = vpop.permute.xlu1 %2038 }
 0x54d   : > { %v2048_v27 = vsel %vm367_vm1, %v2039_v28, %v2041_v48  ;;  %v1983_v29 = vpop.permute.xlu0 %1982  ;;  %v2612_v28 = vperm.slane %v5889_v8, 0 }
 0x54e   : > { %2056 = vst [vmem:[#allocation4 + $0x58] sm:$0xf] %v2048_v27  ;;  %v1987_v32 = vsel %vm433_vm2, %v5856_v15, %v1983_v29  ;;  %v2107_v33 = vld [vmem:[#allocation4 + $0xa0] sm:$0xff]  ;;  %v2791_v15 = vperm.slane %v5922_v14, 2  ;;  %v2101_v29 = vld [vmem:[#allocation4 + $0x10] sm:$0xff] }
 0x54f   : > { %1995 = vst [vmem:[#allocation4 + $0x170] sm:$0xf0] %v1987_v32  ;;  %2177 = vmatpush.msra.mxu2 %v2107_v33  ;;  %v2102_v27 = vld [vmem:[#allocation4 + $0x100] sm:$0xff]  ;;  %v2084_v32 = vld [vmem:[#allocation4 + $0x28] sm:$0xff]  ;;  %v2968_v33 = vperm.slane %v5968_v49, 2  ;;  %2616 = vrot.lane.b32.xlu2 %v2612_v28, %s7781_s23 }
 0x550   : > { %v6045_v28 = vld [vmem:[#allocation9 + $0x61] ss:$8 sm:$0xf] }
 0x551   : > { %2178 = vmatpush.msra.mxu2 %v2103_v34  ;;  %v2098_v34 = vld [vmem:[#allocation4 + $0xa8] sm:$0xff] }
 0x552   : > { %2740 = vrot.lane.b32.xlu1 %v2733_v62, %s7779_s16  ;;  %v2097_v62 = vld [vmem:[#allocation4 + $0x40] sm:$0xff] }
 0x553   : > { %2179 = vmatpush.msra.mxu2 %v2099_v38  ;;  %v2080_v38 = vld [vmem:[#allocation4 + $0x140] sm:$0xff] }
 0x554   : > { %v1854_v39 = vpop.permute.xlu1 %1853 }
 0x555   : > { %v1858_v40 = vsel %vm566_vm4, %v1852_v7, %v1854_v39  ;;  %2180 = vmatpush.msra.mxu2 %v2095_v22  ;;  %v1789_v35 = vpop.permute.xlu0 %1788  ;;  %v2113_v41 = vld [vmem:[#allocation4 + $0x58] sm:$0xf]  ;;  %v2096_v7 = vld [vmem:[#allocation4 + $0x8] sm:$0xff]  ;;  %v2732_v39 = vperm.slane %v5909_v6, 2 }
 0x556   : > { %1866 = vst [vmem:[#allocation4 + $0x158] sm:$0xf0] %v1858_v40  ;;  %v1793_v13 = vsel %vm7850_vm5, %v5862_v30, %v1789_v35  ;;  %4507 = vmatpush.msk.msra.mxu0 %vm358_vm0, %v2113_v41  ;;  %v2112_v44 = vld [vmem:[#allocation4 + $0x170] sm:$0xff]  ;;  %v2079_v30 = vld [vmem:[#allocation4 + $0x138] sm:$0xff]  ;;  %vm2117_vm0 = vcmask 883712   ;;  %v2094_v22 = vld [vmem:[#allocation4 + $0x68] sm:$0xff] }
 0x557   : > { %1801 = vst [vmem:[#allocation4 + $0x158] sm:$0xf] %v1793_v13  ;;  %2181 = vmatpush.msra.mxu2 %v2091_v36  ;;  %2196 = vmatpush.msra.mxu3 %v2112_v44  ;;  %v2093_v40 = vld [vmem:[#allocation4] sm:$0xff]  ;;  %v2089_v13 = vld [vmem:[#allocation4 + $0x90] sm:$0xff]  ;;  %v2072_v36 = vld [vmem:[#allocation4 + $0x98] sm:$0xff]  ;;  %v2615_v44 = vperm.slane %v5889_v8, 3 }
 0x558   : > { %v2076_v35 = vld [vmem:[#allocation4 + $0x60] sm:$0xff]  ;;  %2738 = vrot.lane.b32.xlu0 %v2732_v39, %s7779_s16  ;;  %v2790_v8 = vperm.slane %v5922_v14, 1 }
 0x559   : > { %2182 = vmatpush.msra.mxu2 %v2087_v46  ;;  %v2090_v41 = vld [vmem:[#allocation4 + $0xc0] sm:$0xff]  ;;  %2622 = vrot.lane.b32.xlu2 %v2615_v44, %s7781_s23 }
 0x55a   : > { %2797 = vrot.lane.b32.xlu1 %v2791_v15, %s7790_s18  ;;  %v5977_v46 = vld [vmem:[#allocation9 + $0x21] ss:$8 sm:$0xf] }
 0x55b   : > { %2183 = vmatpush.msra.mxu2 %v2083_v43  ;;  %v2085_v43 = vld [vmem:[#allocation4 + $0xe8] sm:$0xff]  ;;  %v3025_v58 = vperm.slane %v5977_v46, 0 }
 0x55c   : > { %v1975_v26 = vpop.permute.xlu1 %1974  ;;  %v2068_v15 = vld [vmem:[#allocation4 + $0x48] sm:$0xff] }
 0x55d   : > { %v1984_v31 = vsel %vm433_vm2, %v1975_v26, %v5878_v60  ;;  %2184 = vmatpush.msra.mxu2 %v2079_v30  ;;  %v1912_v42 = vpop.permute.xlu0 %1911  ;;  %v2082_v26 = vld [vmem:[#allocation4 + $0x1a8] sm:$0xff]  ;;  %v3026_v30 = vperm.slane %v5977_v46, 1 }
 0x55e   : > { %1992 = vst [vmem:[#allocation4 + $0x128] sm:$0xf0] %v1984_v31  ;;  %v1919_v47 = vsel %vm500_vm3, %v5872_v54, %v1912_v42  ;;  %v1920_v48 = vsel %vm500_vm3, %v1912_v42, %v5851_v23  ;;  %v2108_v51 = vld [vmem:[#allocation4 + $0x158] sm:$0xff]  ;;  %v2081_v31 = vld [vmem:[#allocation4 + $0x80] sm:$0xff] }
 0x55f   : > { %1927 = vst [vmem:[#allocation4 + $0x128] sm:$0xf] %v1919_v47  ;;  %2185 = vmatpush.msra.mxu2 %v2075_v50  ;;  %2197 = vmatpush.msra.mxu3 %v2108_v51  ;;  %v2063_v23 = vld [vmem:[#allocation4 + $0xd8] sm:$0xff]  ;;  %v2078_v47 = vld [vmem:[#allocation4 + $0x188] sm:$0xff]  ;;  %v2074_v50 = vld [vmem:[#allocation4 + $0x150] sm:$0xff] }
 0x560   : > { %1928 = vst [vmem:[#allocation4 + $0x38] sm:$0xf] %v1920_v48  ;;  %v2064_v42 = vld [vmem:[#allocation4 + $0x18] sm:$0xff]  ;;  %v2077_v48 = vld [vmem:[#allocation4 + $0xe0] sm:$0xff]  ;;  %2795 = vrot.lane.b32.xlu0 %v2790_v8, %s7790_s18 }
 0x561   : > { %2186 = vmatpush.msra.mxu2 %v2071_v55  ;;  %v2073_v51 = vld [vmem:[#allocation4 + $0x120] sm:$0xff]  ;;  %v2673_v55 = vperm.slane %v5900_v16, 2  ;;  %v2731_v16 = vperm.slane %v5909_v6, 1 }
 0x562   : > { %2854 = vrot.lane.b32.xlu1 %v2849_v59, %s7887_s14  ;;  %v2069_v59 = vld [vmem:[#allocation4 + $0x180] sm:$0xff] }
 0x563   : > { %2187 = vmatpush.msra.mxu2 %v2067_v57  ;;  %v5987_v57 = vld [vmem:[#allocation9 + $0x22] ss:$8 sm:$0xf]  ;;  %2679 = vrot.lane.b32.xlu2 %v2673_v55, %s7788_s22 }
 0x564   : > { %v1781_v54 = vpop.permute.xlu1 %1780 }
 0x565   : > { %v1790_v60 = vsel %vm7850_vm5, %v1781_v54, %v5892_v10  ;;  %2188 = vmatpush.msra.mxu2 %v2063_v23  ;;  %v1725_v45 = vpop.permute.xlu0 %1724  ;;  %v2066_v54 = vld [vmem:[#allocation4 + $0x168] sm:$0xff]  ;;  %v2065_v23 = vld [vmem:[#allocation4 + $0x50] sm:$0xff] }
 0x566   : > { %1798 = vst [vmem:[#allocation4 + $0x70] sm:$0xf] %v1790_v60  ;;  %v1729_v63 = vsel %vm7846_vm6, %v5802_v5, %v1725_v45  ;;  %v2109_v0 = vld [vmem:[#allocation4 + $0x128] sm:$0xff]  ;;  %v2907_v5 = vperm.slane %v5946_v3, 0  ;;  %4512 = vmatmul.msk.f32.vlgmr.msra.gmra.mxu2 %vm2117_vm0, %v5951_v4  ;;  %v3084_v60 = vperm.slane %v5987_v57, 0  ;;  %v2062_v45 = vld [vmem:[#allocation4 + $0x1b0] sm:$0xff] }
 0x567   : > { %1737 = vst [vmem:[#allocation4 + $0x20] sm:$0xf0] %v1729_v63  ;;  %2136 = vmatpush.msra.mxu0 %v2109_v0  ;;  %v2110_v1 = vld [vmem:[#allocation4 + $0x38] sm:$0xff]  ;;  %v2848_v63 = vperm.slane %v5934_v37, 0  ;;  %v2061_v0 = vld [vmem:[#allocation4 + $0xb0] sm:$0xff] }
 0x568   : > { %2156 = vmatpush.msra.mxu1 %v2110_v1  ;;  %v3087_v1 = vperm.slane %v5987_v57, 3 }
 0x569   : > { %2852 = vrot.lane.b32.xlu0 %v2848_v63, %s7887_s14 }
 0x56a   : > { %2911 = vrot.lane.b32.xlu1 %v2907_v5, %s7888_s11  ;;  %v6005_v5 = vld [vmem:[#allocation9 + $0x27] ss:$8 sm:$0xf] }
 0x56b   : > { %2736 = vrot.lane.b32.xlu2 %v2731_v16, %s7779_s16  ;;  %v3328_v6 = vperm.slane %v6005_v5, 0 }
 0x56c   : > { %v1848_v21 = vpop.permute.xlu1 %1847 }
 0x56d   : > { %v1856_v53 = vsel %vm566_vm4, %v1848_v21, %v5904_v19  ;;  %v1846_v10 = vpop.permute.xlu0 %1845  ;;  %v2092_v19 = vld [vmem:[#allocation4 + $0xc8] sm:$0xff] }
 0x56e   : > { %1864 = vst [vmem:[#allocation4 + $0x78] sm:$0xf0] %v1856_v53  ;;  %v1855_v11 = vsel %vm566_vm4, %v1846_v10, %v1848_v21  ;;  %v2104_v52 = vld [vmem:[#allocation4 + $0x20] sm:$0xff]  ;;  %v2792_v21 = vperm.slane %v5922_v14, 3  ;;  %v3202_v14 = vperm.slane %v6021_v61, 0 }
 0x56f   : > { %1863 = vst [vmem:[#allocation4 + $0x70] sm:$0xf0] %v1855_v11  ;;  %2198 = vmatpush.msra.mxu3 %v2104_v52  ;;  %v6013_v53 = vld [vmem:[#allocation9 + $0x26] ss:$8 sm:$0xf]  ;;  %v2967_v11 = vperm.slane %v5968_v49, 1 }
 0x570   : > { %v3269_v10 = vperm.slane %v6013_v53, 0  ;;  %v2850_v52 = vperm.slane %v5934_v37, 2  ;;  %v3271_v63 = vperm.slane %v6013_v53, 2 }
 0x571   : > { %2199 = vmatpush.msra.mxu3 %v2100_v12  ;;  %2858 = vrot.lane.b32.xlu0 %v2851_v2, %s7887_s14  ;;  %v2908_v12 = vperm.slane %v5946_v3, 1  ;;  %v3204_v2 = vperm.slane %v6021_v61, 2 }
 0x572   : > { %2917 = vrot.lane.b32.xlu1 %v2910_v18, %s7888_s11  ;;  %v6029_v18 = vld [vmem:[#allocation9 + $0x23] ss:$8 sm:$0xf] }
 0x573   : > { %2200 = vmatpush.msra.mxu3 %v2096_v7  ;;  %2793 = vrot.lane.b32.xlu2 %v2789_v9, %s7790_s18  ;;  %v3143_v37 = vperm.slane %v6029_v18, 0  ;;  %v3028_v7 = vperm.slane %v5977_v46, 3 }
 0x575   : > { %2201 = vmatpush.msra.mxu3 %v2092_v19  ;;  %v2106_v20 = vld [vmem:[#allocation4 + $0x78] sm:$0xff]  ;;  %v2966_v19 = vperm.slane %v5968_v49, 0 }
 0x576   : > { %v2105_v25 = vld [vmem:[#allocation4 + $0x70] sm:$0xff]  ;;  %2157 = vmatpush.msra.mxu1 %v2106_v20 }
 0x577   : > { %2137 = vmatpush.msra.mxu0 %v2105_v25  ;;  %2202 = vmatpush.msra.mxu3 %v2088_v24  ;;  %v6037_v20 = vld [vmem:[#allocation9 + $0x62] ss:$8 sm:$0xf]  ;;  %v3086_v25 = vperm.slane %v5987_v57, 2  ;;  %v2969_v24 = vperm.slane %v5968_v49, 3  ;;  %v3331_v49 = vperm.slane %v6005_v5, 3 }
 0x578   : > { %2158 = vmatpush.msra.mxu1 %v2102_v27  ;;  %v3918_v27 = vperm.slane %v6045_v28, 0 }
 0x579   : > { %2138 = vmatpush.msra.mxu0 %v2101_v29  ;;  %2203 = vmatpush.msra.mxu3 %v2084_v32  ;;  %v3330_v29 = vperm.slane %v6005_v5, 2  ;;  %v6050_v32 = vpop.permute.xlu1 %2289 }
 0x57a   : > { %2159 = vmatpush.msra.mxu1 %v2098_v34  ;;  %2974 = vrot.lane.b32.xlu1 %v2968_v33, %s7889_s10  ;;  %v3027_v33 = vperm.slane %v5977_v46, 2 }
 0x57b   : > { %2139 = vmatpush.msra.mxu0 %v2097_v62  ;;  %2204 = vmatpush.msra.mxu3 %v2080_v38 }
 0x57c   : > { %2160 = vmatpush.msra.mxu1 %v2094_v22  ;;  %2799 = vrot.lane.b32.xlu2 %v2792_v21, %s7790_s18 }
 0x57d   : > { %2140 = vmatpush.msra.mxu0 %v2093_v40  ;;  %2205 = vmatpush.msra.mxu3 %v2076_v35  ;;  %v6068_v40 = vpop.permute.xlu0 %2561 }
 0x57e   : > { %2161 = vmatpush.msra.mxu1 %v2090_v41 }
 0x57f   : > { %2141 = vmatpush.msra.mxu0 %v2089_v13  ;;  %2206 = vmatpush.msra.mxu3 %v2072_v36 }
 0x580   : > { %2162 = vmatpush.msra.mxu1 %v2086_v17 }
 0x581   : > { %2142 = vmatpush.msra.mxu0 %v2085_v43  ;;  %2207 = vmatpush.msra.mxu3 %v2068_v15  ;;  %v6057_v34 = vpop.permute.xlu1 %2298 }
 0x582   : > { %2163 = vmatpush.msra.mxu1 %v2082_v26  ;;  %3031 = vrot.lane.b32.xlu1 %v3026_v30, %s7777_s9 }
 0x583   : > { %2143 = vmatpush.msra.mxu0 %v2081_v31  ;;  %2208 = vmatpush.msra.mxu3 %v2064_v42 }
 0x584   : > { %2164 = vmatpush.msra.mxu1 %v2078_v47  ;;  %4514 = vmatmul.msk.f32.vlgmr.msra.gmra.mxu3 %vm2117_vm0, %v5951_v4 }
 0x585   : > { %2144 = vmatpush.msra.mxu0 %v2077_v48  ;;  %2856 = vrot.lane.b32.xlu2 %v2850_v52, %s7887_s14  ;;  %v3270_v52 = vperm.slane %v6013_v53, 1 }
 0x586   : > { %2165 = vmatpush.msra.mxu1 %v2074_v50 }
 0x587   : > { %2145 = vmatpush.msra.mxu0 %v2073_v51 }
 0x588   : > { %2166 = vmatpush.msra.mxu1 %v2070_v56 }
 0x589   : > { %2146 = vmatpush.msra.mxu0 %v2069_v59  ;;  %v6060_v62 = vpop.permute.xlu1 %2498 }
 0x58a   : > { %2167 = vmatpush.msra.mxu1 %v2066_v54  ;;  %3088 = vrot.lane.b32.xlu1 %v3084_v60, %s7903_s15 }
 0x58b   : > { %2147 = vmatpush.msra.mxu0 %v2065_v23 }
 0x58c   : > { %2168 = vmatpush.msra.mxu1 %v2062_v45 }
 0x58d   : > { %2148 = vmatpush.msra.mxu0 %v2061_v0  ;;  %4510 = vmatmul.msk.f32.vlgmr.msra.gmra.mxu1 %vm2117_vm0, %v5951_v4  ;;  %v3085_v0 = vperm.slane %v5987_v57, 1 }
 0x58e   : > { %4508 = vmatmul.msk.f32.vlgmr.msra.gmra.mxu0 %vm2117_vm0, %v5951_v4  ;;  %v2909_v4 = vperm.slane %v5946_v3, 2  ;;  %2913 = vrot.lane.b32.xlu2 %v2908_v12, %s7888_s11  ;;  %v3977_v3 = vperm.slane %v6037_v20, 0 }
 0x590   : > { %2915 = vrot.lane.b32.xlu0 %v2909_v4, %s7888_s11  ;;  %v6124_v4 = vld [vmem:[#allocation9 + $0x60] ss:$8 sm:$0xf] }
 0x591   : > { %v6062_v38 = vpop.permute.xlu1 %2500  ;;  %v3861_v57 = vperm.slane %v6124_v4, 2 }
 0x592   : > { %3094 = vrot.lane.b32.xlu1 %v3087_v1, %s7903_s15 }
 0x595   : > { %v6072_v41 = vpop.permute.xlu2 %2504 }
 0x596   : > { %2970 = vrot.lane.b32.xlu2 %v2966_v19, %s7889_s10  ;;  %v3203_v19 = vperm.slane %v6021_v61, 1 }
 0x598   : > { %2972 = vrot.lane.b32.xlu0 %v2967_v11, %s7889_s10  ;;  %v3145_v11 = vperm.slane %v6029_v18, 2 }
 0x599   : > { %v6064_v39 = vpop.permute.xlu1 %2502 }
 0x59a   : > { %3332 = vrot.lane.b32.xlu1 %v3328_v6, %s7904_s17  ;;  %v3329_v6 = vperm.slane %v6005_v5, 1  ;;  %v6138_v5 = vld [vmem:[#allocation9 + $0x47] ss:$8 sm:$0xf] }
 0x59d   : > { %v6097_v48 = vpop.permute.xlu2 %2559 }
 0x59e   : > { %2976 = vrot.lane.b32.xlu2 %v2969_v24, %s7889_s10 }
 0x5a0   : > { %3029 = vrot.lane.b32.xlu0 %v3025_v58, %s7777_s9  ;;  %v3801_v58 = vperm.slane %v6138_v5, 1 }
 0x5a1   : > { %v6066_v22 = vpop.permute.xlu1 %2557 }
 0x5a2   : > { %3273 = vrot.lane.b32.xlu1 %v3269_v10, %s7905_s20 }
 0x5a4   : > { %v6074_v13 = vpop.permute.xlu0 %2618 }
 0x5a6   : > { %3033 = vrot.lane.b32.xlu2 %v3027_v33, %s7777_s9 }
 0x5a8   : > { %3035 = vrot.lane.b32.xlu0 %v3028_v7, %s7777_s9  ;;  %s7940_s9 = smov 55  }
 0x5a9   : > { %v6070_v35 = vpop.permute.xlu1 %2563  ;;  %v6104_v54 = vpop.permute.xlu2 %2616 }
 0x5aa   : > { %3206 = vrot.lane.b32.xlu1 %v3202_v14, %s7906_s21 }
 0x5ae   : > { %v6100_v56 = vpop.permute.xlu0 %2675 }
 0x5af   : > { %7909 = vst [vmem:[#allocation21_spill] sm:$0xff] %v6100_v56 }
 0x5b0   : > { %3092 = vrot.lane.b32.xlu0 %v3086_v25, %s7903_s15  ;;  %v3920_v25 = vperm.slane %v6045_v28, 2 }
 0x5b1   : > { %v6078_v44 = vpop.permute.xlu1 %2620 }
 0x5b2   : > { %3147 = vrot.lane.b32.xlu1 %v3143_v37, %s7907_s1  ;;  %7908 = vst [vmem:[#allocation20_spill] sm:$0xff] %v6078_v44  ;;  %v3979_v37 = vperm.slane %v6037_v20, 2 }
 0x5b3   : > { %v6110_v45 = vpop.permute.xlu2 %2622 }
 0x5b6   : > { %v6106_v23 = vpop.permute.xlu0 %2681 }
 0x5b8   : > { %3336 = vrot.lane.b32.xlu0 %v3330_v29, %s7904_s17 }
 0x5b9   : > { %v6102_v59 = vpop.permute.xlu1 %2677 }
 0x5ba   : > { %3981 = vrot.lane.b32.xlu1 %v3977_v3, %s7889_s10 }
 0x5bd   : > { %v6121_v9 = vpop.permute.xlu2 %2679 }
 0x5c1   : > { %v6108_v60 = vpop.permute.xlu1 %2734 }
 0x5c2   : > { %3922 = vrot.lane.b32.xlu1 %v3918_v27, %s7888_s11  ;;  %7910 = vst [vmem:[#allocation22_spill] sm:$0xff] %v6108_v60  ;;  %v3144_v27 = vperm.slane %v6029_v18, 1 }
 0x5c5   : > { %v6136_v14 = vpop.permute.xlu2 %2736 }
 0x5c6   : > { %7915 = vst [vmem:[#allocation27_spill] sm:$0xff] %v6136_v14 }
 0x5c9   : > { %v6117_v1 = vpop.permute.xlu1 %2740 }
 0x5ca   : > { %3338 = vrot.lane.b32.xlu1 %v3331_v49, %s7904_s17  ;;  %v6114_v16 = vpop.permute.xlu0 %2738  ;;  %7912 = vst [vmem:[#allocation24_spill] sm:$0xff] %v6117_v1  ;;  %v3860_v49 = vperm.slane %v6124_v4, 1 }
 0x5cb   : > { %7911 = vst [vmem:[#allocation23_spill] sm:$0xff] %v6114_v16 }
 0x5cd   : > { %v6151_v3 = vpop.permute.xlu2 %2793 }
 0x5ce   : > { %7918 = vst [vmem:[#allocation30_spill] sm:$0xff] %v6151_v3 }
 0x5d1   : > { %v6132_v10 = vpop.permute.xlu1 %2797 }
 0x5d2   : > { %v6128_v21 = vpop.permute.xlu0 %2795  ;;  %3867 = vrot.lane.b32.xlu1 %v3861_v57, %s7887_s14  ;;  %7914 = vst [vmem:[#allocation26_spill] sm:$0xff] %v6132_v10 }
 0x5d3   : > { %7913 = vst [vmem:[#allocation25_spill] sm:$0xff] %v6128_v21 }
 0x5d6   : > { %v6162_v33 = vpop.permute.xlu2 %2799 }
 0x5d7   : > { %7921 = vst [vmem:[#allocation33_spill] sm:$0xff] %v6162_v33 }
 0x5d9   : > { %v6147_v7 = vpop.permute.xlu1 %2854 }
 0x5da   : > { %3806 = vrot.lane.b32.xlu1 %v3801_v58, %s7790_s18  ;;  %7917 = vst [vmem:[#allocation29_spill] sm:$0xff] %v6147_v7 }
 0x5db   : > { %v6144_v12 = vpop.permute.xlu0 %2852 }
 0x5dc   : > { %7916 = vst [vmem:[#allocation28_spill] sm:$0xff] %v6144_v12 }
 0x5e1   : > { %v6158_v29 = vpop.permute.xlu1 %2911 }
 0x5e2   : > { %7920 = vst [vmem:[#allocation32_spill] sm:$0xff] %v6158_v29 }
 0x5e3   : > { %v6155_v24 = vpop.permute.xlu0 %2858 }
 0x5e4   : > { %7919 = vst [vmem:[#allocation31_spill] sm:$0xff] %v6155_v24 }
 0x5e9   : > { %v6076_v36 = vpop.f32.mrf.mxu2 }
 0x5ea   : > { %v2229_v31 = vmul.f32 %v6076_v36, %v6076_v36 }
 0x607   : > { %v6086_v15 = vpop.f32.mrf.mxu3 }
 0x608   : > { %v2230_v47 = vmul.f32 %v6086_v15, %v6086_v15 }
 0x60a   : > { %v6080_v46 = vpop.f32.mrf.mxu1 }
 0x60b   : > { %v6082_v17 = vpop.f32.mrf.mxu0  ;;  %v2228_v43 = vmul.f32 %v6080_v46, %v6080_v46 }
 0x60c   : > { %v2227_v26 = vmul.f32 %v6082_v17, %v6082_v17  ;;  %v2215_v30 = vadd.f32 %v6080_v46, %v6082_v17 }
 0x60e   : > { %v2231_v42 = vadd.f32 %v2228_v43, %v2227_v26  ;;  %v2216_v8 = vadd.f32 %v2215_v30, %v6076_v36  ;;  %v3978_v43 = vperm.slane %v6037_v20, 1  ;;  %v6166_v26 = vpop.permute.xlu0 %2915  ;;  %v6169_v30 = vpop.permute.xlu1 %2917 }
 0x60f   : > { %7922 = vst [vmem:[#allocation34_spill] sm:$0xff] %v6166_v26 }
 0x610   : > { %v2232_v50 = vadd.f32 %v2231_v42, %v2229_v31  ;;  %v2217_v51 = vadd.f32 %v2216_v8, %v6086_v15  ;;  %7923 = vst [vmem:[#allocation35_spill] sm:$0xff] %v6169_v30  ;;  %v3800_v31 = vperm.slane %v6138_v5, 0  ;;  %v6173_v42 = vpop.permute.xlu2 %2856  ;;  %v3919_v8 = vperm.slane %v6045_v28, 1 }
 0x611   : > { %7924 = vst [vmem:[#allocation36_spill] sm:$0xff] %v6173_v42 }
 0x612   : > { %2218 = vadd.xlane.f32.xlu2 %v2217_v51  ;;  %v2233_v55 = vadd.f32 %v2232_v50, %v2230_v47  ;;  %v6179_v50 = vld [vmem:[#allocation9 + $0x46] ss:$8 sm:$0xf] }
 0x613   : > { %v3742_v57 = vperm.slane %v6179_v50, 1 }
 0x614   : > { %2234 = vadd.xlane.f32.xlu0 %v2233_v55  ;;  %v3741_v55 = vperm.slane %v6179_v50, 0 }
 0x615   : > { %3747 = vrot.lane.b32.xlu1 %v3742_v57, %s7779_s16 }
 0x616   : > { %v6177_v47 = vpop.permute.xlu0 %2972  ;;  %v6182_v51 = vpop.permute.xlu1 %2974 }
 0x617   : > { %7925 = vst [vmem:[#allocation37_spill] sm:$0xff] %v6177_v47 }
 0x618   : > { %7926 = vst [vmem:[#allocation38_spill] sm:$0xff] %v6182_v51 }
 0x628   : > { %3277 = vrot.lane.b32.xlu0 %v3271_v63, %s7905_s20  ;;  %v6185_v63 = vpop.permute.xlu2 %2913 }
 0x629   : > { %7927 = vst [vmem:[#allocation39_spill] sm:$0xff] %v6185_v63 }
 0x62a   : > { %3090 = vrot.lane.b32.xlu2 %v3085_v0, %s7903_s15  ;;  %v6188_v0 = vpop.permute.xlu0 %3029 }
 0x62b   : > { %7928 = vst [vmem:[#allocation40_spill] sm:$0xff] %v6188_v0 }
 0x630   : > { %3210 = vrot.lane.b32.xlu0 %v3204_v2, %s7906_s21  ;;  %v6190_v2 = vpop.permute.xlu1 %3031 }
 0x631   : > { %7929 = vst [vmem:[#allocation41_spill] sm:$0xff] %v6190_v2 }
 0x632   : > { %3334 = vrot.lane.b32.xlu2 %v3329_v6, %s7904_s17  ;;  %v6192_v6 = vpop.permute.xlu2 %2970  ;;  %v6199_v58 = vpop.permute.xlu0 %3035 }
 0x633   : > { %7930 = vst [vmem:[#allocation42_spill] sm:$0xff] %v6192_v6 }
 0x634   : > { %7931 = vst [vmem:[#allocation43_spill] sm:$0xff] %v6199_v58 }
 0x638   : > { %3151 = vrot.lane.b32.xlu0 %v3145_v11, %s7907_s1  ;;  %v3980_v11 = vperm.slane %v6037_v20, 3  ;;  %v3272_v20 = vperm.slane %v6013_v53, 3  ;;  %v3802_v53 = vperm.slane %v6138_v5, 2 }
 0x63a   : > { %3275 = vrot.lane.b32.xlu2 %v3270_v52, %s7905_s20  ;;  %v3859_v52 = vperm.slane %v6124_v4, 0 }
 0x640   : > { %3985 = vrot.lane.b32.xlu0 %v3979_v37, %s7889_s10  ;;  %v6202_v37 = vld [vmem:[#allocation9 + $0x45] ss:$8 sm:$0xf] }
 0x642   : > { %3208 = vrot.lane.b32.xlu2 %v3203_v19, %s7906_s21  ;;  %v6204_v19 = vpop.permute.xlu1 %3088 }
 0x643   : > { %7932 = vst [vmem:[#allocation44_spill] sm:$0xff] %v6204_v19  ;;  %v3862_v19 = vperm.slane %v6124_v4, 3  ;;  %v6250_v4 = vld [vmem:[#allocation9 + $0x42] ss:$8 sm:$0xf] }
 0x648   : > { %3926 = vrot.lane.b32.xlu0 %v3920_v25, %s7888_s11  ;;  %v3205_v25 = vperm.slane %v6021_v61, 3  ;;  %v5054_v61 = vmov 4096.0  }
 0x649   : > { %4886 = vrcp.f32 %v5054_v61 }
 0x64a   : > { %3149 = vrot.lane.b32.xlu2 %v3144_v27, %s7907_s1  ;;  %v3683_v27 = vperm.slane %v6202_v37, 1  ;;  %3212 = vrot.lane.b32.xlu1 %v3205_v25, %s7906_s21 }
 0x650   : > { %3865 = vrot.lane.b32.xlu0 %v3860_v49, %s7887_s14  ;;  %v6209_v49 = vpop.permute.xlu2 %2976 }
 0x651   : > { %7933 = vst [vmem:[#allocation45_spill] sm:$0xff] %v6209_v49 }
 0x652   : > { %3983 = vrot.lane.b32.xlu2 %v3978_v43, %s7889_s10  ;;  %v6213_v43 = vpop.permute.xlu0 %3092 }
 0x653   : > { %7934 = vst [vmem:[#allocation46_spill] sm:$0xff] %v6213_v43 }
 0x658   : > { %3804 = vrot.lane.b32.xlu0 %v3800_v31, %s7790_s18  ;;  %v3684_v31 = vperm.slane %v6202_v37, 2  ;;  %v6223_v57 = vpop.permute.xlu2 %3033 }
 0x659   : > { %7936 = vst [vmem:[#allocation48_spill] sm:$0xff] %v6223_v57 }
 0x65a   : > { %3924 = vrot.lane.b32.xlu2 %v3919_v8, %s7888_s11  ;;  %v3146_v8 = vperm.slane %v6029_v18, 3  ;;  %3690 = vrot.lane.b32.xlu1 %v3684_v31, %s7788_s22  ;;  %v6228_v25 = vpop.permute.xlu0 %3336 }
 0x65b   : > { %7937 = vst [vmem:[#allocation49_spill] sm:$0xff] %v6228_v25 }
 0x660   : > { %3745 = vrot.lane.b32.xlu0 %v3741_v55, %s7779_s16  ;;  %v6218_v55 = vpop.permute.xlu1 %3094 }
 0x661   : > { %7935 = vst [vmem:[#allocation47_spill] sm:$0xff] %v6218_v55 }
 0x662   : > { %3863 = vrot.lane.b32.xlu2 %v3859_v52, %s7887_s14  ;;  %v4887_v52 = vpop.eup %4886 }
 0x663   : > { %v2244_v61 = vmul.f32 4096.0, %v4887_v52  ;;  %vm2248_vm10 = vweird.f32 %v4887_v52 }
 0x665   : > { %v2245_v25 = vsub.f32 1.0, %v2244_v61 }
 0x667   : > { %v2246_v58 = vmul.f32 %v4887_v52, %v2245_v25 }
 0x668   : > { %3987 = vrot.lane.b32.xlu0 %v3980_v11, %s7889_s10  ;;  %v6226_v11 = vld [vmem:[#allocation9 + $0x44] ss:$8 sm:$0xf]  ;;  %v6233_v43 = vpop.permute.xlu1 %3332 }
 0x669   : > { %v3623_v18 = vperm.slane %v6226_v11, 0  ;;  %7938 = vst [vmem:[#allocation50_spill] sm:$0xff] %v6233_v43  ;;  %v3682_v43 = vperm.slane %v6202_v37, 0  ;;  %v2247_v57 = vadd.f32 %v4887_v52, %v2246_v58  ;;  %v3506_v58 = vperm.slane %v6250_v4, 1 }
 0x66a   : > { %3279 = vrot.lane.b32.xlu2 %v3272_v20, %s7905_s20  ;;  %v3743_v20 = vperm.slane %v6179_v50, 2 }
 0x66b   : > { %3627 = vrot.lane.b32.xlu1 %v3623_v18, %s7781_s23  ;;  %v2249_v25 = vsel %vm2248_vm10, %v4887_v52, %v2247_v57  ;;  %v6272_v52 = vld [vmem:[#allocation9 + $0x41] ss:$8 sm:$0xf] }
 0x670   : > { %3688 = vrot.lane.b32.xlu0 %v3683_v27, %s7788_s22  ;;  %v3625_v27 = vperm.slane %v6226_v11, 2 }
 0x672   : > { %3808 = vrot.lane.b32.xlu2 %v3802_v53, %s7790_s18 }
 0x673   : > { %3869 = vrot.lane.b32.xlu1 %v3862_v19, %s7887_s14 }
 0x678   : > { %3153 = vrot.lane.b32.xlu0 %v3146_v8, %s7907_s1  ;;  %v6238_v8 = vld [vmem:[#allocation9 + $0x43] ss:$8 sm:$0xf] }
 0x679   : > { %v3565_v6 = vperm.slane %v6238_v8, 1 }
 0x67a   : > { %3749 = vrot.lane.b32.xlu2 %v3743_v20, %s7779_s16  ;;  %v6245_v20 = vpop.permute.xlu1 %3273 }
 0x680   : > { %3631 = vrot.lane.b32.xlu0 %v3625_v27, %s7781_s23 }
 0x682   : > { %3686 = vrot.lane.b32.xlu2 %v3682_v43, %s7788_s22 }
 0x685   : > { %v2219_v31 = vpop.xlane.xlu2 %2218 }
 0x686   : > { %v2220_v53 = vrot.slane %v2219_v31, 4 }
 0x687   : > { %v2235_v55 = vpop.xlane.xlu0 %2234 }
 0x688   : > { %v2221_v0 = vadd.f32 %v2220_v53, %v2219_v31  ;;  %v2236_v51 = vrot.slane %v2235_v55, 4  ;;  %3570 = vrot.lane.b32.xlu0 %v3565_v6, %s7792_s13  ;;  %v3921_v6 = vperm.slane %v6045_v28, 3  ;;  %v3624_v28 = vperm.slane %v6226_v11, 1 }
 0x68a   : > { %v2222_v47 = vrot.slane %v2221_v0, 2  ;;  %v2237_v18 = vadd.f32 %v2236_v51, %v2235_v55  ;;  %3928 = vrot.lane.b32.xlu2 %v3921_v6, %s7888_s11  ;;  %v3385_v6 = vld [vmem:[#allocation9 + $0x40] ss:$8 sm:$0xf] }
 0x68c   : > { %v2238_v27 = vrot.slane %v2237_v18, 2  ;;  %v2223_v2 = vadd.f32 %v2222_v47, %v2221_v0  ;;  %v3566_v47 = vperm.slane %v6238_v8, 2  ;;  %v3505_v0 = vperm.slane %v6250_v4, 0 }
 0x68d   : > { %v6247_v61 = vpop.permute.xlu2 %3090 }
 0x68e   : > { %7939 = vst [vmem:[#allocation51_spill] sm:$0xff] %v6247_v61  ;;  %v2224_v31 = vrot.slane %v2223_v2, 1  ;;  %v2239_v53 = vadd.f32 %v2238_v27, %v2237_v18  ;;  %3572 = vrot.lane.b32.xlu1 %v3566_v47, %s7792_s13  ;;  %v3744_v18 = vperm.slane %v6179_v50, 3  ;;  %v3446_v50 = vperm.slane %v6272_v52, 0 }
 0x690   : > { %v2225_v51 = vadd.f32 %v2224_v31, %v2223_v2  ;;  %v2240_v55 = vrot.slane %v2239_v53, 1  ;;  %3509 = vrot.lane.b32.xlu0 %v3505_v0, %s7940_s9  ;;  %v6260_v2 = vpop.permute.xlu1 %3206 }
 0x691   : > { %7942 = vst [vmem:[#allocation53_spill] sm:$0xff] %v6260_v2  ;;  %v3447_v2 = vperm.slane %v6272_v52, 1 }
 0x692   : > { %4530 = vpush %v2225_v51  ;;  %v2241_v19 = vadd.f32 %v2240_v55, %v2239_v53  ;;  %3629 = vrot.lane.b32.xlu2 %v3624_v28, %s7781_s23  ;;  %v3448_v53 = vperm.slane %v6272_v52, 2  ;;  %v3564_v55 = vperm.slane %v6238_v8, 0  ;;  %s7950_s23 = smov 8  }
 0x694   : > { %4532 = vpush %v2241_v19  ;;  %v3685_v19 = vperm.slane %v6202_v37, 3  ;;  %v3507_v37 = vperm.slane %v6250_v4, 2 }
 0x695   : > { %4534 = vpush %v2249_v25  ;;  %v6257_v43 = vpop.permute.xlu2 %3334  ;;  %v3388_v25 = vperm.slane %v3385_v6, 1 }
 0x696   : > { %7941 = vst [vmem:[#allocation52_spill] sm:$0xff] %v6257_v43  ;;  %3511 = vrot.lane.b32.xlu1 %v3506_v58, %s7940_s9  ;;  %v3803_v58 = vperm.slane %v6138_v5, 3  ;;  %v3387_v43 = vperm.slane %v3385_v6, 0 }
 0x698   : > { %3751 = vrot.lane.b32.xlu0 %v3744_v18, %s7779_s16  ;;  %v6281_v51 = vpop.permute.xlu1 %3147  ;;  %s7946_s16 = smov 9  }
 0x699   : > { %7944 = vst [vmem:[#allocation55_spill] sm:$0xff] %v6281_v51 }
 0x69a   : > { %v6265_v27 = vpop.permute.xlu0 %3277  ;;  %3568 = vrot.lane.b32.xlu2 %v3564_v55, %s7792_s13  ;;  %v3567_v55 = vperm.slane %v6238_v8, 3  ;;  %v3390_v8 = vperm.slane %v3385_v6, 3 }
 0x69d   : > { %v6270_v57 = vpop.permute.xlu2 %3275 }
 0x69e   : > { %v6277_v31 = vsel %vm7851_vm9, %v6270_v57, %v6265_v27  ;;  %3450 = vrot.lane.b32.xlu1 %v3446_v50, %s7946_s16 }
 0x69f   : > { %7943 = vst [vmem:[#allocation54_spill] sm:$0xff] %v6277_v31 }
 0x6a0   : > { %3454 = vrot.lane.b32.xlu0 %v3448_v53, %s7946_s16  ;;  %v6293_v18 = vpop.permute.xlu1 %3981  ;;  %v3389_v53 = vperm.slane %v3385_v6, 2  ;;  %v3626_v6 = vperm.slane %v6226_v11, 3 }
 0x6a1   : > { %7948 = vst [vmem:[#allocation58_spill] sm:$0xff] %v6293_v18 }
 0x6a2   : > { %v6284_v47 = vpop.permute.xlu0 %3210  ;;  %3810 = vrot.lane.b32.xlu2 %v3803_v58, %s7790_s18  ;;  %v3508_v58 = vperm.slane %v6250_v4, 3 }
 0x6a3   : > { %7945 = vst [vmem:[#allocation56_spill] sm:$0xff] %v6284_v47 }
 0x6a5   : > { %v6289_v0 = vpop.permute.xlu2 %3208 }
 0x6a6   : > { %7947 = vst [vmem:[#allocation57_spill] sm:$0xff] %v6289_v0  ;;  %3692 = vrot.lane.b32.xlu1 %v3685_v19, %s7788_s22 }
 0x6a8   : > { %3393 = vrot.lane.b32.xlu0 %v3388_v25, %s7950_s23  ;;  %v6306_v5 = vpop.permute.xlu1 %3922 }
 0x6a9   : > { %7952 = vst [vmem:[#allocation61_spill] sm:$0xff] %v6306_v5 }
 0x6aa   : > { %v6295_v28 = vpop.permute.xlu0 %3151  ;;  %3513 = vrot.lane.b32.xlu2 %v3507_v37, %s7940_s9 }
 0x6ab   : > { %7949 = vst [vmem:[#allocation59_spill] sm:$0xff] %v6295_v28 }
 0x6ad   : > { %v6300_v50 = vpop.permute.xlu2 %3149 }
 0x6ae   : > { %7951 = vst [vmem:[#allocation60_spill] sm:$0xff] %v6300_v50  ;;  %3395 = vrot.lane.b32.xlu1 %v3389_v53, %s7950_s23 }
 0x6b0   : > { %3574 = vrot.lane.b32.xlu0 %v3567_v55, %s7792_s13  ;;  %v6326_v37 = vpop.permute.xlu1 %3338 }
 0x6b1   : > { %7958 = vst [vmem:[#allocation66_spill] sm:$0xff] %v6326_v37  ;;  %v3352_v4 = vmul.f32 0.0, %v6326_v37 }
 0x6b2   : > { %v3986_v47 = vpop.permute.xlu0 %3985  ;;  %3452 = vrot.lane.b32.xlu2 %v3447_v2, %s7946_s16 }
 0x6b5   : > { %v6309_v19 = vpop.permute.xlu2 %3983 }
 0x6b6   : > { %7953 = vst [vmem:[#allocation62_spill] sm:$0xff] %v6309_v19  ;;  %v6313_v25 = vsel %vm7897_vm11, %v6309_v19, %v3986_v47  ;;  %3515 = vrot.lane.b32.xlu1 %v3508_v58, %s7940_s9  ;;  %vm7972_vm11 = vmmov %vm7956_vm12 }
 0x6b7   : > { %7954 = vst [vmem:[#allocation63_spill] sm:$0xff] %v6313_v25 }
 0x6b8   : > { %3397 = vrot.lane.b32.xlu0 %v3390_v8, %s7950_s23  ;;  %v6359_v61 = vpop.permute.xlu1 %3867 }
 0x6b9   : > { %7966 = vst [vmem:[#allocation73_spill] sm:$0xff] %v6359_v61 }
 0x6ba   : > { %v3927_v0 = vpop.permute.xlu0 %3926  ;;  %3391 = vrot.lane.b32.xlu2 %v3387_v43, %s7950_s23 }
 0x6bd   : > { %v6320_v53 = vpop.permute.xlu2 %3924 }
 0x6be   : > { %7955 = vst [vmem:[#allocation64_spill] sm:$0xff] %v6320_v53  ;;  %v6324_v55 = vsel %vm7956_vm12, %v6320_v53, %v3927_v0 }
 0x6bf   : > { %7957 = vst [vmem:[#allocation65_spill] sm:$0xff] %v6324_v55 }
 0x6c0   : > { %3366 = vrot.lane.b32.xlu0 %v3352_v4, %s7907_s1 }
 0x6c2   : > { %v6329_v28 = vpop.permute.xlu0 %3865  ;;  %3633 = vrot.lane.b32.xlu2 %v3626_v6, %s7962_s19 }
 0x6c3   : > { %7959 = vst [vmem:[#allocation67_spill] sm:$0xff] %v6329_v28  ;;  %s4531_s22 = spop %4530  ;;  %v3449_v28 = vperm.slane %v6272_v52, 3 }
 0x6c5   : > { %s4533_s18 = spop %4532  ;;  %v6338_v2 = vpop.permute.xlu2 %3863 }
 0x6c6   : > { %s6333_s13 = spop %4534  ;;  %7960 = vst [vmem:[#allocation68_spill] sm:$0xff] %v6338_v2 }
 0x6c7   : > { %s6336_s0 = smul.f32 %s6333_s13, %s4531_s22  ;;  %s4400_s22 = scalar_lea.sflag [#allocation8], %s5192_s25 }
 0x6c8   : > { %s2260_s2 = smul.f32 %s6333_s13, %s4533_s18 }
 0x6c9   : > { %s2261_s3 = smul.f32 %s6336_s0, %s6336_s0 }
 0x6ca   : > { %v6344_v58 = vpop.permute.xlu0 %3804  ;;  %3456 = vrot.lane.b32.xlu2 %v3449_v28, %s7946_s16 }
 0x6cb   : > { %s2262_s4 = ssub.f32 %s2260_s2, %s2261_s3  ;;  %7961 = vst [vmem:[#allocation69_spill] sm:$0xff] %v6344_v58  ;;  %s7975_s2 = smov 56  }
 0x6cd   : > { %s2263_s28 = smax.f32 %s5055_s29, %s2262_s4  ;;  %v3280_v43 = vpop.permute.xlu2 %3279  ;;  %s8006_s4 = smov 64  }
 0x6ce   : > { %s2269_s30 = sadd.f32 1e-05, %s2263_s28  ;;  %v6350_v4 = vsel %vm7851_vm9, %v6265_v27, %v3280_v43  ;;  %v3293_v2 = vmul.f32 0.0, %v3280_v43  ;;  %s8013_s28 = smov 63  }
 0x6cf   : > { %7963 = vst [vmem:[#allocation70_spill] sm:$0xff] %v6350_v4 }
 0x6d0   : > { %v2270_v8 = vstv %s2269_s30  ;;  %3307 = vrot.lane.b32.xlu0 %v3293_v2, %s7906_s21  ;;  %s8126_s30 = smov 119  }
 0x6d1   : > { %4888 = vrsqrt.f32 %v2270_v8  ;;  %vm2277_vm0 = vweird.f32 %v2270_v8 }
 0x6d2   : > { %v6354_v11 = vpop.permute.xlu0 %3745 }
 0x6d3   : > { %7964 = vst [vmem:[#allocation71_spill] sm:$0xff] %v6354_v11 }
 0x6d5   : > { %v6357_v37 = vpop.permute.xlu2 %3808 }
 0x6d6   : > { %7965 = vst [vmem:[#allocation72_spill] sm:$0xff] %v6357_v37 }
 0x6d7   : > { %v4889_v58 = vpop.eup %4888 }
 0x6d8   : > { %v2272_v6 = vmul.f32 %v4889_v58, %v2270_v8  ;;  %vm2278_vm13 = vweird.f32 %v4889_v58 }
 0x6d9   : > { %vm2279_vm10 = vmor %vm2277_vm0, %vm2278_vm13 }
 0x6da   : > { %v2273_v51 = vmul.f32 %v4889_v58, %v2272_v6  ;;  %v3988_v43 = vpop.permute.xlu0 %3987 }
 0x6db   : > { %v6362_v4 = vsel %vm7967_vm8, %v3986_v47, %v3988_v43  ;;  %v4001_v52 = vmul.f32 0.0, %v3988_v43 }
 0x6dc   : > { %v2274_v50 = vmul.f32 0.5, %v2273_v51  ;;  %7968 = vst [vmem:[#allocation74_spill] sm:$0xff] %v6362_v4  ;;  %v6367_v51 = vpop.permute.xlu1 %3806 }
 0x6dd   : > { %v6364_v2 = vpop.permute.xlu2 %3749  ;;  %4015 = vrot.lane.b32.xlu2 %v4001_v52, %s7940_s9  ;;  %7970 = vst [vmem:[#allocation76_spill] sm:$0xff] %v6367_v51 }
 0x6de   : > { %v2275_v27 = vsub.f32 1.5, %v2274_v50  ;;  %7969 = vst [vmem:[#allocation75_spill] sm:$0xff] %v6364_v2 }
 0x6e0   : > { %v2276_v11 = vmul.f32 %v4889_v58, %v2275_v27 }
 0x6e2   : > { %v2280_v28 = vsel %vm2279_vm10, %v4889_v58, %v2276_v11  ;;  %v6377_v8 = vpop.permute.xlu0 %3688 }
 0x6e3   : > { %4536 = vpush %v2280_v28 }
 0x6e4   : > { %v6374_v43 = vpop.permute.xlu1 %3747  ;;  %7976 = vst [vmem:[#allocation80_spill] sm:$0xff] %v6377_v8 }
 0x6e5   : > { %v6369_v6 = vpop.permute.xlu2 %3686  ;;  %7974 = vst [vmem:[#allocation79_spill] sm:$0xff] %v6374_v43 }
 0x6e6   : > { %7971 = vst [vmem:[#allocation77_spill] sm:$0xff] %v6369_v6 }
 0x6ea   : > { %v6381_v58 = vpop.permute.xlu0 %3153 }
 0x6eb   : > { %7978 = vst [vmem:[#allocation82_spill] sm:$0xff] %v6381_v58 }
 0x6ec   : > { %v6379_v27 = vpop.permute.xlu1 %3212 }
 0x6ed   : > { %v3929_v50 = vpop.permute.xlu2 %3928  ;;  %7977 = vst [vmem:[#allocation81_spill] sm:$0xff] %v6379_v27 }
 0x6ee   : > { %v6372_v37 = vsel %vm7972_vm11, %v3927_v0, %v3929_v50  ;;  %v3942_v47 = vmul.f32 0.0, %v3929_v50  ;;  %v2264_v50 = vstv %s6336_s0  ;;  %s7992_s0 = smov 65  }
 0x6ef   : > { %7973 = vst [vmem:[#allocation78_spill] sm:$0xff] %v6372_v37  ;;  %v2265_v43 = vsub.f32 %v6082_v17, %v2264_v50  ;;  %v2267_v37 = vsub.f32 %v6076_v36, %v2264_v50  ;;  %v2268_v51 = vsub.f32 %v6086_v15, %v2264_v50 }
 0x6f0   : > { %3956 = vrot.lane.b32.xlu0 %v3942_v47, %s7975_s2  ;;  %v2266_v47 = vsub.f32 %v6080_v46, %v2264_v50 }
 0x6f2   : > { %v6387_v28 = vpop.permute.xlu0 %3631 }
 0x6f3   : > { %7981 = vst [vmem:[#allocation85_spill] sm:$0xff] %v6387_v28 }
 0x6f4   : > { %v6383_v11 = vpop.permute.xlu1 %3690 }
 0x6f5   : > { %7979 = vst [vmem:[#allocation83_spill] sm:$0xff] %v6383_v11  ;;  %v6385_v52 = vpop.permute.xlu2 %3629 }
 0x6f6   : > { %7980 = vst [vmem:[#allocation84_spill] sm:$0xff] %v6385_v52 }
 0x6fa   : > { %v6398_v28 = vpop.permute.xlu0 %3570 }
 0x6fc   : > { %v6389_v2 = vpop.permute.xlu1 %3627 }
 0x6fd   : > { %7982 = vst [vmem:[#allocation86_spill] sm:$0xff] %v6389_v2  ;;  %v6391_v0 = vpop.permute.xlu2 %3568 }
 0x704   : > { %v6404_v27 = vpop.permute.xlu1 %3869 }
 0x705   : > { %7983 = vst [vmem:[#allocation87_spill] sm:$0xff] %v6404_v27  ;;  %v6406_v36 = vpop.permute.xlu2 %3810 }
 0x706   : > { %7984 = vst [vmem:[#allocation88_spill] sm:$0xff] %v6406_v36 }
 0x70c   : > { %v6453_v49 = vpop.permute.xlu1 %3572 }
 0x70d   : > { %v6455_v30 = vpop.permute.xlu2 %3513 }
 0x714   : > { %s4537_s3 = spop %4536 }
 0x715   : > { %v2282_v4 = vstv %s4537_s3 }
 0x716   : > { %v2283_v11 = vmul.f32 %v2282_v4, %v2265_v43  ;;  %v2284_v6 = vmul.f32 %v2282_v4, %v2266_v47  ;;  %v2285_v52 = vmul.f32 %v2282_v4, %v2267_v37  ;;  %v2286_v8 = vmul.f32 %v2282_v4, %v2268_v51 }
 0x718   : > { %v2292_v2 = vmul.f32 %v6050_v32, %v2283_v11  ;;  %v2293_v61 = vmul.f32 %v6050_v32, %v2284_v6  ;;  %v2294_v17 = vmul.f32 %v6050_v32, %v2285_v52  ;;  %v2295_v46 = vmul.f32 %v6050_v32, %v2286_v8 }
 0x71a   : > { %v6409_v15 = vadd.f32 %v6057_v34, %v2292_v2  ;;  %v6412_v37 = vadd.f32 %v6057_v34, %v2293_v61  ;;  %v6415_v4 = vadd.f32 %v6057_v34, %v2294_v17  ;;  %v6418_v51 = vadd.f32 %v6057_v34, %v2295_v46  ;;  %v6446_v17 = vpop.permute.xlu0 %3509 }
 0x71c   : > { %v6421_v6 = vmul.f32 0.70710677, %v6409_v15  ;;  %v6424_v32 = vmul.f32 0.70710677, %v6412_v37  ;;  %v6427_v43 = vmul.f32 0.70710677, %v6415_v4 }
 0x71d   : > { %v6430_v2 = vmul.f32 0.70710677, %v6418_v51 }
 0x71e   : > { %v2313_v61 = vmul.f32 %v6421_v6, %v6421_v6  ;;  %v2353_v8 = vmul.f32 %v6424_v32, %v6424_v32  ;;  %v2393_v34 = vmul.f32 %v6427_v43, %v6427_v43 }
 0x71f   : > { %v2433_v11 = vmul.f32 %v6430_v2, %v6430_v2 }
 0x720   : > { %v6440_v52 = vmin.f32 %v2313_v61, 16.0  ;;  %v6442_v50 = vmin.f32 %v2353_v8, 16.0  ;;  %v6444_v47 = vmin.f32 %v2393_v34, 16.0 }
 0x721   : > { %v6448_v46 = vmin.f32 %v2433_v11, 16.0 }
 0x722   : > { %v2315_v27 = vmul.f32 2.1237322e-06, %v6440_v52  ;;  %v2326_v36 = vmul.f32 3.8918573e-05, %v6440_v52  ;;  %v2355_v58 = vmul.f32 2.1237322e-06, %v6442_v50 }
 0x723   : > { %v2366_v61 = vmul.f32 3.8918573e-05, %v6442_v50  ;;  %v2395_v8 = vmul.f32 2.1237322e-06, %v6444_v47  ;;  %v2406_v34 = vmul.f32 3.8918573e-05, %v6444_v47 }
 0x724   : > { %v2316_v26 = vadd.f32 0.00028619796, %v2315_v27  ;;  %v2327_v12 = vadd.f32 0.001143296, %v2326_v36  ;;  %v2356_v11 = vadd.f32 0.00028619796, %v2355_v58 }
 0x725   : > { %v2367_v10 = vadd.f32 0.001143296, %v2366_v61  ;;  %v2396_v29 = vadd.f32 0.00028619796, %v2395_v8  ;;  %v2407_v63 = vadd.f32 0.001143296, %v2406_v34 }
 0x726   : > { %v2317_v3 = vmul.f32 %v2316_v26, %v6440_v52  ;;  %v2328_v21 = vmul.f32 %v2327_v12, %v6440_v52  ;;  %v2357_v24 = vmul.f32 %v2356_v11, %v6442_v50  ;;  %v2435_v7 = vmul.f32 2.1237322e-06, %v6448_v46 }
 0x727   : > { %v2368_v42 = vmul.f32 %v2367_v10, %v6442_v50  ;;  %v2397_v33 = vmul.f32 %v2396_v29, %v6444_v47  ;;  %v2408_v1 = vmul.f32 %v2407_v63, %v6444_v47  ;;  %v2446_v27 = vmul.f32 3.8918573e-05, %v6448_v46  ;;  %v6471_v10 = vpop.permute.xlu0 %3751 }
 0x728   : > { %v2318_v58 = vadd.f32 0.0036580483, %v2317_v3  ;;  %v2329_v36 = vadd.f32 0.014752088, %v2328_v21  ;;  %v2358_v61 = vadd.f32 0.0036580483, %v2357_v24 }
 0x729   : > { %v2369_v8 = vadd.f32 0.014752088, %v2368_v42  ;;  %v2398_v34 = vadd.f32 0.0036580483, %v2397_v33  ;;  %v2409_v26 = vadd.f32 0.014752088, %v2408_v1 }
 0x72a   : > { %v2319_v12 = vmul.f32 %v2318_v58, %v6440_v52  ;;  %v2330_v11 = vmul.f32 %v2329_v36, %v6440_v52  ;;  %v2359_v16 = vmul.f32 %v2358_v61, %v6442_v50  ;;  %v2436_v56 = vadd.f32 0.00028619796, %v2435_v7  ;;  %7985 = vst [vmem:[#allocation89_spill] sm:$0xff] %v6471_v10  ;;  %v6477_v58 = vpop.permute.xlu1 %3511  ;;  %v6479_v36 = vpop.permute.xlu2 %3452 }
 0x72b   : > { %v2370_v29 = vmul.f32 %v2369_v8, %v6442_v50  ;;  %v2399_v63 = vmul.f32 %v2398_v34, %v6444_v47  ;;  %v2410_v3 = vmul.f32 %v2409_v26, %v6444_v47  ;;  %v2447_v21 = vadd.f32 0.001143296, %v2446_v27 }
 0x72c   : > { %v2320_v24 = vadd.f32 0.05243302, %v2319_v12  ;;  %v2331_v42 = vadd.f32 0.112945676, %v2330_v11  ;;  %v2360_v33 = vadd.f32 0.05243302, %v2359_v16  ;;  %v2437_v1 = vmul.f32 %v2436_v56, %v6448_v46 }
 0x72d   : > { %v2371_v61 = vadd.f32 0.112945676, %v2370_v29  ;;  %v2400_v7 = vadd.f32 0.05243302, %v2399_v63  ;;  %v2411_v25 = vadd.f32 0.112945676, %v2410_v3  ;;  %v2448_v10 = vmul.f32 %v2447_v21, %v6448_v46 }
 0x72e   : > { %v2321_v8 = vmul.f32 %v2320_v24, %v6440_v52  ;;  %v2332_v34 = vmul.f32 %v2331_v42, %v6440_v52  ;;  %v2361_v27 = vmul.f32 %v2360_v33, %v6442_v50  ;;  %v2438_v55 = vadd.f32 0.0036580483, %v2437_v1 }
 0x72f   : > { %v2372_v26 = vmul.f32 %v2371_v61, %v6442_v50  ;;  %v2412_v16 = vmul.f32 %v2411_v25, %v6444_v47  ;;  %v2449_v56 = vadd.f32 0.014752088, %v2448_v10  ;;  %v2401_v11 = vmul.f32 %v2400_v7, %v6444_v47 }
 0x730   : > { %v2333_v12 = vadd.f32 0.4994258, %v2332_v34  ;;  %v2322_v29 = vadd.f32 0.18741608, %v2321_v8  ;;  %v2362_v18 = vadd.f32 0.18741608, %v2361_v27  ;;  %v2439_v10 = vmul.f32 %v2438_v55, %v6448_v46  ;;  %v6493_v34 = vpop.permute.xlu0 %3454 }
 0x731   : > { %v2373_v63 = vadd.f32 0.4994258, %v2372_v26  ;;  %v2413_v3 = vadd.f32 0.4994258, %v2412_v16  ;;  %v2450_v21 = vmul.f32 %v2449_v56, %v6448_v46  ;;  %v2402_v25 = vadd.f32 0.18741608, %v2401_v11 }
 0x732   : > { %v2334_v24 = vmul.f32 %v2333_v12, %v6440_v52  ;;  %v2323_v1 = vmul.f32 %v2322_v29, %v6440_v52  ;;  %v2363_v26 = vmul.f32 %v2362_v18, %v6442_v50  ;;  %v6499_v27 = vpop.permute.xlu1 %3450  ;;  %v6501_v16 = vpop.permute.xlu2 %3391  ;;  %v2440_v55 = vadd.f32 0.05243302, %v2439_v10 }
 0x733   : > { %v2374_v42 = vmul.f32 %v2373_v63, %v6442_v50  ;;  %v2414_v33 = vmul.f32 %v2413_v3, %v6444_v47  ;;  %v2451_v61 = vadd.f32 0.112945676, %v2450_v21  ;;  %v2403_v12 = vmul.f32 %v2402_v25, %v6444_v47 }
 0x734   : > { %v2335_v19 = vadd.f32 1.0, %v2334_v24  ;;  %v2324_v11 = vadd.f32 1.1283791, %v2323_v1  ;;  %v2364_v52 = vadd.f32 1.1283791, %v2363_v26  ;;  %v6507_v21 = vmul.f32 0.0, %v6060_v62 }
 0x735   : > { %v2375_v7 = vadd.f32 1.0, %v2374_v42  ;;  %v6496_v8 = vadd.f32 1.0, %v2414_v33  ;;  %v2452_v56 = vmul.f32 %v2451_v61, %v6448_v46  ;;  %v6512_v18 = vsel %vm367_vm1, %v6060_v62, %v6062_v38 }
 0x736   : > { %4890 = vrcp.f32 %v2335_v19  ;;  %v2345_v29 = vand.u32 2147483647, %v2335_v19  ;;  %v2404_v50 = vadd.f32 1.1283791, %v2403_v12  ;;  %v2441_v24 = vmul.f32 %v2440_v55, %v6448_v46 }
 0x737   : > { %4892 = vrcp.f32 %v2375_v7  ;;  %v2453_v63 = vadd.f32 0.4994258, %v2452_v56  ;;  %v2325_v42 = vmul.f32 %v2324_v11, %v6421_v6  ;;  %v6520_v25 = vsel %vm433_vm2, %v6391_v0, %v6398_v28 }
 0x738   : > { %4894 = vrcp.f32 %v6496_v8  ;;  %vm2341_vm12 = vweird.f32 %v2335_v19  ;;  %v2347_v10 = vand.u32 2147483648, %v2335_v19  ;;  %v2365_v1 = vmul.f32 %v2364_v52, %v6424_v32  ;;  %v6523_v26 = vpop.permute.xlu0 %3393 }
 0x739   : > { %v2454_v61 = vmul.f32 %v2453_v63, %v6448_v46  ;;  %vm6525_vm13 = vcmp.eq.f32.partialorder %v2345_v29, 8.507059e+37  ;;  %vm2381_vm8 = vweird.f32 %v2375_v7  ;;  %v2385_v63 = vand.u32 2147483647, %v2375_v7 }
 0x73a   : > { %v2387_v5 = vand.u32 2147483648, %v2375_v7  ;;  %v6532_v44 = vpop.permute.xlu1 %3692  ;;  %v6534_v32 = vpop.permute.xlu2 %3633  ;;  %v2348_v14 = vor.u32 1.1754944e-38, %v2347_v10  ;;  %vm2421_vm11 = vweird.f32 %v6496_v8  ;;  %v2442_v31 = vadd.f32 0.18741608, %v2441_v24 }
 0x73b   : > { %v6529_v6 = vadd.f32 1.0, %v2454_v61  ;;  %7988 = vst [vmem:[#allocation90_spill] sm:$0xff] %v6532_v44  ;;  %v2427_v61 = vand.u32 2147483648, %v6496_v8  ;;  %vm2386_vm9 = vcmp.eq.f32.partialorder %v2385_v63, 8.507059e+37 }
 0x73c   : > { %v4891_v3 = vpop.eup %4890  ;;  %7989 = vst [vmem:[#allocation91_spill] sm:$0xff] %v6534_v32 }
 0x73d   : > { %v4893_v47 = vpop.eup %4892  ;;  %v2337_v33 = vmul.f32 %v4891_v3, %v2335_v19  ;;  %vm2342_vm0 = vweird.f32 %v4891_v3  ;;  %4896 = vrcp.f32 %v6529_v6 }
 0x73e   : > { %v2377_v62 = vmul.f32 %v4893_v47, %v2375_v7  ;;  %v4895_v56 = vpop.eup %4894  ;;  %vm2382_vm10 = vweird.f32 %v4893_v47  ;;  %vm2343_vm6 = vmor %vm2341_vm12, %vm2342_vm0  ;;  %v2443_v7 = vmul.f32 %v2442_v31, %v6448_v46  ;;  %vm7996_vm0 = vcmask 523264  }
 0x73f   : > { %v2338_v12 = vsub.f32 1.0, %v2337_v33  ;;  %v2417_v53 = vmul.f32 %v4895_v56, %v6496_v8  ;;  %v2405_v33 = vmul.f32 %v2404_v50, %v6427_v43  ;;  %vm2422_vm7 = vweird.f32 %v4895_v56  ;;  %vm2383_vm5 = vmor %vm2381_vm8, %vm2382_vm10 }
 0x740   : > { %v2378_v11 = vsub.f32 1.0, %v2377_v62  ;;  %v2388_v50 = vor.u32 1.1754944e-38, %v2387_v5  ;;  %v3399_v5 = vsel %vm1056_vm15, %v6501_v16, %v6523_v26  ;;  %vm7991_vm8 = vcmask 7168  }
 0x741   : > { %v2339_v52 = vmul.f32 %v4891_v3, %v2338_v12  ;;  %v2418_v60 = vsub.f32 1.0, %v2417_v53  ;;  %v2425_v12 = vand.u32 2147483647, %v6496_v8  ;;  %v3459_v53 = vsel %vm990_vm14, %v6479_v36, %v6493_v34 }
 0x742   : > { %v2379_v29 = vmul.f32 %v4893_v47, %v2378_v11  ;;  %v2428_v11 = vor.u32 1.1754944e-38, %v2427_v61  ;;  %v6564_v61 = vpop.permute.xlu2 %3456  ;;  %vm8000_vm10 = vcmask 588800  }
 0x743   : > { %v2340_v62 = vadd.f32 %v4891_v3, %v2339_v52  ;;  %v2419_v32 = vmul.f32 %v4895_v56, %v2418_v60  ;;  %v4897_v52 = vpop.eup %4896  ;;  %vm2426_vm12 = vcmp.eq.f32.partialorder %v2425_v12, 8.507059e+37  ;;  %v2444_v12 = vadd.f32 1.1283791, %v2443_v7 }
 0x744   : > { %v2380_v44 = vadd.f32 %v4893_v47, %v2379_v29 }
 0x745   : > { %v2344_v43 = vsel %vm2343_vm6, %v4891_v3, %v2340_v62  ;;  %v2420_v19 = vadd.f32 %v4895_v56, %v2419_v32  ;;  %vm2423_vm6 = vmor %vm2421_vm11, %vm2422_vm7  ;;  %v2307_v62 = vmul.f32 0.5, %v6415_v4  ;;  %vm2461_vm7 = vweird.f32 %v6529_v6 }
 0x746   : > { %v2349_v10 = vsel %vm6525_vm13, %v2348_v14, %v2344_v43  ;;  %v2384_v24 = vsel %vm2383_vm5, %v4893_v47, %v2380_v44  ;;  %v2457_v14 = vmul.f32 %v4897_v52, %v6529_v6  ;;  %v6555_v44 = vpop.permute.xlu0 %3574  ;;  %v2305_v47 = vmul.f32 0.5, %v6409_v15 }
 0x747   : > { %v2350_v60 = vmul.f32 %v2349_v10, %v2325_v42  ;;  %v2389_v29 = vsel %vm2386_vm9, %v2388_v50, %v2384_v24  ;;  %v2424_v63 = vsel %vm2423_vm6, %v4895_v56, %v2420_v19  ;;  %v2306_v42 = vmul.f32 0.5, %v6412_v37  ;;  %v3396_v56 = vpop.permute.xlu1 %3395  ;;  %vm8009_vm6 = vmmov %vm7996_vm0 }
 0x748   : > { %v2390_v3 = vmul.f32 %v2389_v29, %v2365_v1  ;;  %v2429_v55 = vsel %vm2426_vm12, %v2428_v11, %v2424_v63  ;;  %v6562_v31 = vsel %vm433_vm2, %v6453_v49, %v6555_v44  ;;  %v2458_v1 = vsub.f32 1.0, %v2457_v14  ;;  %vm8011_vm12 = vmmov %vm7996_vm0 }
 0x749   : > { %v4515_v46 = vclamps-f32 %v2350_v60, 1.0  ;;  %v2430_v32 = vmul.f32 %v2429_v55, %v2405_v33  ;;  %v2465_v15 = vand.u32 2147483647, %v6529_v6  ;;  %v2467_v37 = vand.u32 2147483648, %v6529_v6 }
 0x74a   : > { %v4516_v8 = vclamps-f32 %v2390_v3, 1.0  ;;  %v2459_v50 = vmul.f32 %v4897_v52, %v2458_v1  ;;  %vm2462_vm5 = vweird.f32 %v4897_v52  ;;  %v3577_v33 = vsel %vm433_vm2, %v6398_v28, %v6453_v49 }
 0x74b   : > { %v4517_v43 = vclamps-f32 %v2430_v32, 1.0  ;;  %v3517_v24 = vsel %vm367_vm1, %v6446_v17, %v6477_v58  ;;  %v6579_v4 = vsel %vm990_vm14, %v6493_v34, %v6564_v61  ;;  %v2473_v11 = vadd.f32 1.0, %v4515_v46  ;;  %vm2463_vm9 = vmor %vm2461_vm7, %vm2462_vm5 }
 0x74c   : > { %v2474_v10 = vadd.f32 1.0, %v4516_v8  ;;  %v2460_v19 = vadd.f32 %v4897_v52, %v2459_v50  ;;  %v2445_v6 = vmul.f32 %v2444_v12, %v6430_v2  ;;  %vm2466_vm13 = vcmp.eq.f32.partialorder %v2465_v15, 8.507059e+37  ;;  %v8102_v15 = vld [vmem:[#allocation75_spill] sm:$0xff] }
 0x74d   : > { %v2475_v60 = vadd.f32 1.0, %v4517_v43  ;;  %v2468_v7 = vor.u32 1.1754944e-38, %v2467_v37  ;;  %v3518_v49 = vsel %vm367_vm1, %v6477_v58, %v6455_v30  ;;  %v3458_v63 = vsel %vm990_vm14, %v6499_v27, %v6479_v36 }
 0x74e   : > { %v6581_v29 = vmul.f32 %v2474_v10, %v2306_v42  ;;  %v2464_v28 = vsel %vm2463_vm9, %v4897_v52, %v2460_v19  ;;  %v2507_v2 = vsel %vm367_vm1, %v6062_v38, %v6064_v39  ;;  %v3400_v58 = vsel %vm1056_vm15, %v6523_v26, %v3396_v56 }
 0x74f   : > { %v6587_v3 = vmul.f32 %v2475_v60, %v2307_v62  ;;  %v2469_v14 = vsel %vm2466_vm13, %v2468_v7, %v2464_v28  ;;  %v6604_v55 = vmul.f32 %v2473_v11, %v2305_v47  ;;  %v2573_v36 = vmul.f32 0.0, %v6066_v22  ;;  %v6629_v12 = vpop.permute.xlu1 %3515  ;;  %vm8024_vm13 = vmmov %vm8000_vm10 }
 0x750   : > { %v6591_v34 = vmul.f32 %v6520_v25, %v6581_v29  ;;  %v6600_v42 = vmul.f32 %v3517_v24, %v6581_v29  ;;  %v2470_v52 = vmul.f32 %v2469_v14, %v2445_v6  ;;  %v2508_v38 = vsel %vm367_vm1, %v6064_v39, %v6072_v41 }
 0x751   : > { %7990 = vst [vmem:[#allocation92_spill] sm:$0xff] %v6587_v3  ;;  %v6607_v25 = vmul.f32 %v3577_v33, %v6587_v3  ;;  %v6610_v46 = vmul.f32 %v3518_v49, %v6587_v3  ;;  %v6617_v8 = vmul.f32 %v3458_v63, %v6581_v29  ;;  %v6620_v26 = vmul.f32 %v3459_v53, %v6587_v3 }
 0x752   : > { %v2565_v47 = vsel %vm433_vm2, %v6066_v22, %v6097_v48  ;;  %v4518_v32 = vclamps-f32 %v2470_v52, 1.0  ;;  %v2308_v39 = vmul.f32 0.5, %v6418_v51  ;;  %v6635_v53 = vmul.f32 %v3399_v5, %v6581_v29  ;;  %v6640_v22 = vpop.permute.xlu0 %3397  ;;  %v8100_v51 = vld [vmem:[#allocation71_spill] sm:$0xff] }
 0x753   : > { %v6638_v37 = vmul.f32 %v3400_v58, %v6587_v3  ;;  %v2574_v50 = vmul.f32 %v2565_v47, %v6604_v55  ;;  %v2515_v10 = vmul.f32 %v6512_v18, %v6604_v55  ;;  %v2516_v33 = vmul.f32 %v2507_v2, %v6581_v29  ;;  %v8070_v2 = vld [vmem:[#allocation66_spill] sm:$0xff] }
 0x754   : > { %v2476_v43 = vadd.f32 1.0, %v4518_v32  ;;  %v3519_v5 = vsel %vm367_vm1, %v6455_v30, %v6629_v12  ;;  %v2517_v24 = vmul.f32 %v2508_v38, %v6587_v3  ;;  %v3401_v11 = vsel %vm1056_vm15, %v3396_v56, %v6640_v22 }
 0x755   : > { %v4635_v60 = vpack.i.bf16 %v2574_v50, %v2573_v36  ;;  %v4625_v6 = vpack.i.bf16 %v2515_v10, %v6507_v21  ;;  %v6659_v18 = vmul.f32 %v6391_v0, %v6604_v55  ;;  %v6663_v7 = vmul.f32 %v6446_v17, %v6604_v55 }
 0x756   : > { %v6652_v19 = vmul.f32 %v2476_v43, %v2308_v39  ;;  %v6667_v30 = vmul.f32 %v6501_v16, %v6604_v55  ;;  %v4630_v49 = vpack.i.bf16 %v2517_v24, %v2516_v33  ;;  %v2566_v17 = vsel %vm433_vm2, %v6097_v48, %v6068_v40  ;;  %v7993_v24 = vld [vmem:[#allocation54_spill] sm:$0xff] }
 0x757   : > { %4636 = vrot.lane.b32.xlu2 %v4635_v60, %s7888_s11  ;;  %4626 = vrot.lane.b32.xlu1 %v4625_v6, %s7889_s10  ;;  %v6686_v16 = vmul.f32 %v6499_v27, %v6604_v55  ;;  %v2575_v27 = vmul.f32 %v2566_v17, %v6581_v29  ;;  %v2685_v38 = vsel %vm566_vm4, %v6121_v9, %v6106_v23  ;;  %v2632_v43 = vmul.f32 0.0, %v6104_v54  ;;  %v7994_v60 = vld [vmem:[#allocation27_spill] sm:$0xff] }
 0x758   : > { %v6672_v56 = vmul.f32 %v6562_v31, %v6652_v19  ;;  %v6675_v21 = vmul.f32 %v3519_v5, %v6652_v19  ;;  %v6678_v0 = vmul.f32 %v3401_v11, %v6652_v19  ;;  %4631 = vrot.lane.b32.xlu0 %v4630_v49, %s7889_s10  ;;  %v2567_v31 = vsel %vm433_vm2, %v6068_v40, %v6070_v35  ;;  %v8094_v40 = vld [vmem:[#allocation88_spill] sm:$0xff] }
 0x759   : > { %v6700_v48 = vmul.f32 %v6579_v4, %v6652_v19  ;;  %v2576_v14 = vmul.f32 %v2567_v31, %v6587_v3  ;;  %v2636_v58 = vmul.f32 %v6110_v45, %v6652_v19  ;;  %v2518_v52 = vmul.f32 %v6072_v41, %v6652_v19 }
 0x75a   : > { %v2684_v4 = vsel %vm566_vm4, %v6102_v59, %v6121_v9  ;;  %v2694_v32 = vmul.f32 %v2685_v38, %v6587_v3  ;;  %v2624_v41 = vsel %vm500_vm3, %v6104_v54, %v6074_v13  ;;  %v3281_v9 = vsel %vm7991_vm8, %v6245_v20, %v6270_v57  ;;  %v7995_v54 = vld [vmem:[#allocation22_spill] sm:$0xff]  ;;  %v7997_v57 = vld [vmem:[#allocation20_spill] sm:$0xff] }
 0x75b   : > { %v4640_v36 = vpack.i.bf16 %v2576_v14, %v2575_v27  ;;  %v2693_v47 = vmul.f32 %v2684_v4, %v6581_v29  ;;  %v2633_v39 = vmul.f32 %v2624_v41, %v6604_v55  ;;  %v2577_v10 = vmul.f32 %v6070_v35, %v6652_v19  ;;  %v7998_v27 = vld [vmem:[#allocation64_spill] sm:$0xff]  ;;  %v7999_v14 = vld [vmem:[#allocation61_spill] sm:$0xff]  ;;  %v8002_v38 = vld [vmem:[#allocation58_spill] sm:$0xff] }
 0x75c   : > { %v6733_v5 = vmul.f32 %v3281_v9, %v6581_v29  ;;  %v6737_v11 = vmul.f32 %v7993_v24, %v6587_v3  ;;  %v2742_v6 = vsel %vm7996_vm0, %v7995_v54, %v7994_v60  ;;  %v2625_v35 = vsel %vm500_vm3, %v6074_v13, %v7997_v57 }
 0x75d   : > { %v4660_v50 = vpack.i.bf16 %v2694_v32, %v2693_v47  ;;  %v4645_v33 = vpack.i.bf16 %v2633_v39, %v2632_v43  ;;  %v2626_v49 = vsel %vm500_vm3, %v7997_v57, %v6110_v45  ;;  %v2751_v17 = vmul.f32 %v2742_v6, %v6604_v55  ;;  %v8001_v45 = vld [vmem:[#allocation62_spill] sm:$0xff]  ;;  %v8004_v32 = vld [vmem:[#allocation65_spill] sm:$0xff] }
 0x75e   : > { %v4740_v31 = vpack.i.bf16 %v6737_v11, %v6733_v5  ;;  %v2750_v13 = vmul.f32 0.0, %v7995_v54  ;;  %vm8003_vm11 = vcmask 596992   ;;  %v6767_v41 = vmul.f32 %v8004_v32, %v6587_v3  ;;  %v8007_v6 = vld [vmem:[#allocation21_spill] sm:$0xff] }
 0x75f   : > { %2650 = vrot.lane.b32.xlu2 %v2636_v58, %s7887_s14  ;;  %2532 = vrot.lane.b32.xlu1 %v2518_v52, %s7889_s10  ;;  %v3930_v58 = vsel %vm8000_vm10, %v7999_v14, %v7998_v27  ;;  %v2634_v52 = vmul.f32 %v2625_v35, %v6581_v29  ;;  %v3989_v47 = vsel %vm8003_vm11, %v8002_v38, %v8001_v45  ;;  %v8008_v35 = vld [vmem:[#allocation23_spill] sm:$0xff]  ;;  %v8015_v32 = vld [vmem:[#allocation29_spill] sm:$0xff]  ;;  %vm8016_vm5 = vcmask 580608   ;;  %vm8031_vm11 = vmmov %vm8024_vm13 }
 0x760   : > { %4641 = vrot.lane.b32.xlu0 %v4640_v36, %s7888_s11  ;;  %v2635_v36 = vmul.f32 %v2626_v49, %v6587_v3  ;;  %v6760_v4 = vmul.f32 %v3930_v58, %v6581_v29  ;;  %v4665_v39 = vpack.i.bf16 %v2751_v17, %v2750_v13  ;;  %v6770_v43 = vmul.f32 %v3989_v47, %v6581_v29  ;;  %v8010_v17 = vld [vmem:[#allocation24_spill] sm:$0xff]  ;;  %vm8018_vm7 = vmmov %vm8016_vm5 }
 0x761   : > { %v2695_v24 = vmul.f32 %v6106_v23, %v6652_v19  ;;  %v2683_v57 = vsel %vm566_vm4, %v8007_v6, %v6102_v59  ;;  %v2743_v49 = vsel %vm8009_vm6, %v7994_v60, %v8008_v35  ;;  %v2744_v27 = vsel %vm8011_vm12, %v8008_v35, %v8010_v17  ;;  %v8012_v59 = vld [vmem:[#allocation33_spill] sm:$0xff]  ;;  %v8014_v60 = vld [vmem:[#allocation36_spill] sm:$0xff]  ;;  %v8020_v35 = vld [vmem:[#allocation30_spill] sm:$0xff] }
 0x762   : > { %v2692_v23 = vmul.f32 %v2683_v57, %v6604_v55  ;;  %v2752_v58 = vmul.f32 %v2743_v49, %v6581_v29  ;;  %v2813_v13 = vmul.f32 %v8012_v59, %v6652_v19  ;;  %v8019_v57 = vld [vmem:[#allocation25_spill] sm:$0xff]  ;;  %vm8021_vm9 = vcmask 531456   ;;  %vm8029_vm10 = vmmov %vm8016_vm5 }
 0x763   : > { %v2801_v49 = vsel %vm8021_vm9, %v8020_v35, %v8019_v57  ;;  %vm8026_vm8 = vmmov %vm8021_vm9  ;;  %vm8037_vm12 = vcmask 973824   ;;  %vm8045_vm9 = vcmask 982016  }
 0x764   : > { %vm8027_vm0 = vmmov %vm8026_vm8 }
 0x765   : > { %vm8033_vm6 = vmmov %vm8031_vm11 }
 0x767   : > { %4661 = vrot.lane.b32.xlu2 %v4660_v50, %s7992_s0  ;;  %2591 = vrot.lane.b32.xlu1 %v2577_v10, %s7888_s11  ;;  %v8005_v50 = vld [vmem:[#allocation63_spill] sm:$0xff]  ;;  %v4650_v10 = vpack.i.bf16 %v2635_v36, %v2634_v52  ;;  %v2753_v52 = vmul.f32 %v2744_v27, %v6587_v3  ;;  %v2691_v36 = vmul.f32 0.0, %v8007_v6  ;;  %v2810_v27 = vmul.f32 %v2801_v49, %v6604_v55 }
 0x768   : > { %4646 = vrot.lane.b32.xlu0 %v4645_v33, %s7887_s14  ;;  %v6774_v9 = vmul.f32 %v8005_v50, %v6587_v3  ;;  %v4770_v33 = vpack.i.bf16 %v6767_v41, %v6760_v4  ;;  %v8017_v50 = vld [vmem:[#allocation31_spill] sm:$0xff] }
 0x769   : > { %v4655_v45 = vpack.i.bf16 %v2692_v23, %v2691_v36  ;;  %v4670_v47 = vpack.i.bf16 %v2753_v52, %v2752_v58  ;;  %v2809_v23 = vmul.f32 0.0, %v8020_v35  ;;  %v2754_v52 = vmul.f32 %v8010_v17, %v6652_v19 }
 0x76a   : > { %v4765_v54 = vpack.i.bf16 %v6774_v9, %v6770_v43 }
 0x76b   : > { %v4675_v36 = vpack.i.bf16 %v2810_v27, %v2809_v23 }
 0x76f   : > { %4666 = vrot.lane.b32.xlu2 %v4665_v39, %s8006_s4  ;;  %4651 = vrot.lane.b32.xlu1 %v4650_v10, %s7887_s14  ;;  %v2861_v39 = vsel %vm8016_vm5, %v8015_v32, %v8014_v60  ;;  %v2862_v10 = vsel %vm8018_vm7, %v8014_v60, %v8017_v50  ;;  %v8025_v60 = vld [vmem:[#allocation26_spill] sm:$0xff]  ;;  %vm8039_vm5 = vmmov %vm8037_vm12  ;;  %vm8042_vm7 = vcmask 596992  }
 0x770   : > { %2709 = vrot.lane.b32.xlu0 %v2695_v24, %s7992_s0  ;;  %v2870_v24 = vmul.f32 %v2861_v39, %v6581_v29  ;;  %v2871_v6 = vmul.f32 %v2862_v10, %v6587_v3  ;;  %v2802_v39 = vsel %vm8026_vm8, %v8019_v57, %v8025_v60  ;;  %v2803_v10 = vsel %vm8027_vm0, %v8025_v60, %v8012_v59  ;;  %v8028_v59 = vld [vmem:[#allocation28_spill] sm:$0xff]  ;;  %vm8048_vm8 = vmmov %vm8042_vm7 }
 0x771   : > { %v2872_v57 = vmul.f32 %v8017_v50, %v6652_v19  ;;  %v2860_v23 = vsel %vm8029_vm10, %v8028_v59, %v8015_v32  ;;  %v8034_v32 = vld [vmem:[#allocation45_spill] sm:$0xff]  ;;  %vm8050_vm0 = vmmov %vm8039_vm5 }
 0x772   : > { %v4690_v58 = vpack.i.bf16 %v2871_v6, %v2870_v24  ;;  %v2811_v24 = vmul.f32 %v2802_v39, %v6581_v29  ;;  %v2812_v6 = vmul.f32 %v2803_v10, %v6587_v3  ;;  %v2868_v39 = vmul.f32 0.0, %v8028_v59  ;;  %vm8053_vm10 = vmmov %vm8045_vm9 }
 0x773   : > { %v2990_v10 = vmul.f32 %v8034_v32, %v6652_v19 }
 0x774   : > { %v4680_v27 = vpack.i.bf16 %v2812_v6, %v2811_v24  ;;  %v8036_v6 = vld [vmem:[#allocation41_spill] sm:$0xff] }
 0x777   : > { %2827 = vrot.lane.b32.xlu2 %v2813_v13, %s8013_s28  ;;  %4656 = vrot.lane.b32.xlu1 %v4655_v45, %s7992_s0  ;;  %v8022_v13 = vld [vmem:[#allocation39_spill] sm:$0xff]  ;;  %v8023_v45 = vld [vmem:[#allocation32_spill] sm:$0xff] }
 0x778   : > { %4671 = vrot.lane.b32.xlu0 %v4670_v47, %s8006_s4  ;;  %v2919_v47 = vsel %vm8024_vm13, %v8023_v45, %v8022_v13  ;;  %v2927_v35 = vmul.f32 0.0, %v8023_v45  ;;  %vm8047_vm13 = vmmov %vm8042_vm7 }
 0x779   : > { %v2928_v17 = vmul.f32 %v2919_v47, %v6604_v55  ;;  %v2869_v47 = vmul.f32 %v2860_v23, %v6604_v55  ;;  %v8040_v23 = vld [vmem:[#allocation37_spill] sm:$0xff] }
 0x77b   : > { %v4695_v49 = vpack.i.bf16 %v2928_v17, %v2927_v35  ;;  %v4685_v17 = vpack.i.bf16 %v2869_v47, %v2868_v39 }
 0x77f   : > { %4691 = vrot.lane.b32.xlu2 %v4690_v58, %s7962_s19  ;;  %2768 = vrot.lane.b32.xlu1 %v2754_v52, %s8006_s4  ;;  %v8030_v58 = vld [vmem:[#allocation34_spill] sm:$0xff] }
 0x780   : > { %4676 = vrot.lane.b32.xlu0 %v4675_v36, %s8013_s28  ;;  %v2920_v52 = vsel %vm8031_vm11, %v8022_v13, %v8030_v58  ;;  %v8032_v36 = vld [vmem:[#allocation35_spill] sm:$0xff]  ;;  %v8035_v13 = vld [vmem:[#allocation48_spill] sm:$0xff]  ;;  %vm8054_vm11 = vmmov %vm8045_vm9 }
 0x781   : > { %v2921_v45 = vsel %vm8033_vm6, %v8030_v58, %v8032_v36  ;;  %v2929_v50 = vmul.f32 %v2920_v52, %v6581_v29  ;;  %v3038_v35 = vsel %vm8037_vm12, %v8036_v6, %v8035_v13  ;;  %v8041_v58 = vld [vmem:[#allocation42_spill] sm:$0xff]  ;;  %vm8057_vm6 = vcmask 990208  }
 0x782   : > { %v2930_v60 = vmul.f32 %v2921_v45, %v6587_v3  ;;  %v2978_v52 = vsel %vm8042_vm7, %v8041_v58, %v8040_v23  ;;  %v2986_v47 = vmul.f32 0.0, %v8041_v58  ;;  %vm8059_vm12 = vmmov %vm8057_vm6 }
 0x783   : > { %v2987_v45 = vmul.f32 %v2978_v52, %v6604_v55 }
 0x784   : > { %v4700_v24 = vpack.i.bf16 %v2930_v60, %v2929_v50  ;;  %v2931_v60 = vmul.f32 %v8032_v36, %v6652_v19 }
 0x785   : > { %v4705_v39 = vpack.i.bf16 %v2987_v45, %v2986_v47 }
 0x787   : > { %4696 = vrot.lane.b32.xlu2 %v4695_v49, %s7975_s2  ;;  %4681 = vrot.lane.b32.xlu1 %v4680_v27, %s8013_s28  ;;  %v8038_v49 = vld [vmem:[#allocation43_spill] sm:$0xff] }
 0x788   : > { %2886 = vrot.lane.b32.xlu0 %v2872_v57, %s7962_s19  ;;  %v3039_v27 = vsel %vm8039_vm5, %v8035_v13, %v8038_v49  ;;  %v3047_v57 = vmul.f32 %v3038_v35, %v6581_v29  ;;  %v8046_v13 = vld [vmem:[#allocation38_spill] sm:$0xff]  ;;  %vm8062_vm5 = vcmask 56320  }
 0x789   : > { %v3048_v59 = vmul.f32 %v3039_v27, %v6587_v3  ;;  %v2979_v35 = vsel %vm8047_vm13, %v8040_v23, %v8046_v13  ;;  %v2980_v27 = vsel %vm8048_vm8, %v8046_v13, %v8034_v32  ;;  %v3049_v23 = vmul.f32 %v8038_v49, %v6652_v19  ;;  %v8049_v32 = vld [vmem:[#allocation40_spill] sm:$0xff]  ;;  %vm8064_vm7 = vmmov %vm8062_vm5 }
 0x78a   : > { %v3037_v47 = vsel %vm8050_vm0, %v8049_v32, %v8036_v6  ;;  %vm8071_vm8 = vmmov %vm8062_vm5 }
 0x78b   : > { %v4720_v50 = vpack.i.bf16 %v3048_v59, %v3047_v57  ;;  %v2988_v57 = vmul.f32 %v2979_v35, %v6581_v29  ;;  %v2989_v59 = vmul.f32 %v2980_v27, %v6587_v3  ;;  %v3045_v35 = vmul.f32 0.0, %v8049_v32  ;;  %vm8074_vm0 = vmmov %vm8057_vm6 }
 0x78d   : > { %v4710_v45 = vpack.i.bf16 %v2989_v59, %v2988_v57  ;;  %v8055_v57 = vld [vmem:[#allocation60_spill] sm:$0xff]  ;;  %v8056_v59 = vld [vmem:[#allocation55_spill] sm:$0xff] }
 0x78e   : > { %v3163_v41 = vmul.f32 0.0, %v8056_v59 }
 0x78f   : > { %3004 = vrot.lane.b32.xlu2 %v2990_v10, %s7940_s9  ;;  %4686 = vrot.lane.b32.xlu1 %v4685_v17, %s7962_s19  ;;  %v8043_v10 = vld [vmem:[#allocation51_spill] sm:$0xff]  ;;  %v8044_v17 = vld [vmem:[#allocation44_spill] sm:$0xff] }
 0x790   : > { %4701 = vrot.lane.b32.xlu0 %v4700_v24, %s7975_s2  ;;  %v3096_v24 = vsel %vm8045_vm9, %v8044_v17, %v8043_v10  ;;  %v3104_v58 = vmul.f32 0.0, %v8044_v17  ;;  %vm8067_vm9 = vcmask 1039360  }
 0x791   : > { %v3105_v36 = vmul.f32 %v3096_v24, %v6604_v55  ;;  %v3046_v24 = vmul.f32 %v3037_v47, %v6604_v55  ;;  %v8063_v47 = vld [vmem:[#allocation49_spill] sm:$0xff]  ;;  %vm8069_vm13 = vmmov %vm8067_vm9 }
 0x793   : > { %v4725_v52 = vpack.i.bf16 %v3105_v36, %v3104_v58  ;;  %v4715_v27 = vpack.i.bf16 %v3046_v24, %v3045_v35  ;;  %v6910_v36 = vpop.permute.xlu2 %4015  ;;  %v8058_v58 = vld [vmem:[#allocation59_spill] sm:$0xff]  ;;  %v8068_v24 = vld [vmem:[#allocation56_spill] sm:$0xff] }
 0x797   : > { %4721 = vrot.lane.b32.xlu2 %v4720_v50, %s7946_s16  ;;  %2945 = vrot.lane.b32.xlu1 %v2931_v60, %s7975_s2  ;;  %v8051_v50 = vld [vmem:[#allocation47_spill] sm:$0xff]  ;;  %v8052_v60 = vld [vmem:[#allocation46_spill] sm:$0xff] }
 0x798   : > { %4706 = vrot.lane.b32.xlu0 %v4705_v39, %s7940_s9  ;;  %v3098_v39 = vsel %vm8053_vm10, %v8052_v60, %v8051_v50  ;;  %v3097_v17 = vsel %vm8054_vm11, %v8043_v10, %v8052_v60  ;;  %v3155_v10 = vsel %vm8057_vm6, %v8056_v59, %v8055_v57  ;;  %v8065_v60 = vld [vmem:[#allocation57_spill] sm:$0xff]  ;;  %vm8076_vm10 = vmmov %vm8067_vm9  ;;  %vm8079_vm11 = vcmask 580608  }
 0x799   : > { %v3106_v49 = vmul.f32 %v3097_v17, %v6581_v29  ;;  %v3107_v13 = vmul.f32 %v3098_v39, %v6587_v3  ;;  %v3164_v11 = vmul.f32 %v3155_v10, %v6604_v55  ;;  %v8066_v39 = vld [vmem:[#allocation53_spill] sm:$0xff]  ;;  %v6938_v10 = vpop.permute.xlu0 %3366  ;;  %vm8084_vm6 = vmmov %vm8079_vm11 }
 0x79a   : > { %v3214_v17 = vsel %vm8067_vm9, %v8066_v39, %v8065_v60 }
 0x79b   : > { %v4730_v6 = vpack.i.bf16 %v3107_v13, %v3106_v49  ;;  %v3215_v49 = vsel %vm8069_vm13, %v8065_v60, %v8068_v24  ;;  %v3342_v60 = vsel %vm8071_vm8, %v8063_v47, %v8070_v2  ;;  %vm8096_vm13 = vcmask 596992  }
 0x79c   : > { %vm8097_vm8 = vmmov %vm8096_vm13 }
 0x79f   : > { %4726 = vrot.lane.b32.xlu2 %v4725_v52, %s7950_s23  ;;  %4711 = vrot.lane.b32.xlu1 %v4710_v45, %s7940_s9  ;;  %v3156_v52 = vsel %vm8059_vm12, %v8055_v57, %v8058_v58  ;;  %v8060_v45 = vld [vmem:[#allocation52_spill] sm:$0xff]  ;;  %vm8086_vm12 = vcmask 531456  }
 0x7a0   : > { %3063 = vrot.lane.b32.xlu0 %v3049_v23, %s7946_s16  ;;  %v8061_v23 = vld [vmem:[#allocation50_spill] sm:$0xff]  ;;  %v3341_v5 = vsel %vm8064_vm7, %v8060_v45, %v8063_v47 }
 0x7a1   : > { %v3340_v32 = vsel %vm8062_vm5, %v8061_v23, %v8060_v45  ;;  %v3350_v35 = vmul.f32 %v3341_v5, %v6587_v3  ;;  %v3348_v5 = vmul.f32 %v8061_v23, %v6604_v55  ;;  %v6959_v47 = vpop.permute.xlu0 %3307  ;;  %vm8090_vm5 = vmmov %vm8086_vm12 }
 0x7a2   : > { %v3349_v13 = vmul.f32 %v3340_v32, %v6581_v29  ;;  %vm8092_vm7 = vmmov %vm8090_vm5 }
 0x7a3   : > { %vm8095_vm9 = vmmov %vm8090_vm5 }
 0x7a7   : > { %4741 = vrot.lane.b32.xlu2 %v4740_v31, %s7906_s21  ;;  %4716 = vrot.lane.b32.xlu1 %v4715_v27, %s7946_s16  ;;  %v3165_v31 = vmul.f32 %v3156_v52, %v6581_v29  ;;  %v3223_v27 = vmul.f32 %v3214_v17, %v6604_v55  ;;  %v4735_v52 = vpack.i.bf16 %v3350_v35, %v3349_v13  ;;  %v8072_v17 = vld [vmem:[#allocation70_spill] sm:$0xff] }
 0x7a8   : > { %4731 = vrot.lane.b32.xlu0 %v4730_v6, %s7950_s23  ;;  %v3224_v6 = vmul.f32 %v3215_v49, %v6581_v29  ;;  %v3292_v49 = vmul.f32 %v8072_v17, %v6652_v19  ;;  %v8073_v35 = vld [vmem:[#allocation82_spill] sm:$0xff] }
 0x7a9   : > { %v4755_v57 = vpack.i.bf16 %v3165_v31, %v3164_v11  ;;  %v3351_v11 = vmul.f32 %v3342_v60, %v6652_v19  ;;  %v3289_v31 = vmul.f32 %v6245_v20, %v6604_v55  ;;  %v3157_v23 = vsel %vm8074_vm0, %v8058_v58, %v8073_v35  ;;  %v8077_v58 = vld [vmem:[#allocation73_spill] sm:$0xff] }
 0x7aa   : > { %v4745_v45 = vpack.i.bf16 %v3224_v6, %v3223_v27  ;;  %v3166_v27 = vmul.f32 %v3157_v23, %v6587_v3  ;;  %v8075_v6 = vld [vmem:[#allocation81_spill] sm:$0xff]  ;;  %v3997_v23 = vmul.f32 %v8002_v38, %v6604_v55  ;;  %vm8101_vm0 = vcmask 523264  }
 0x7ab   : > { %v4750_v13 = vpack.i.bf16 %v3351_v11, %v3348_v5  ;;  %v4760_v2 = vpack.i.bf16 %v3292_v49, %v3289_v31  ;;  %v3216_v4 = vsel %vm8076_vm10, %v8068_v24, %v8075_v6  ;;  %v8080_v11 = vld [vmem:[#allocation80_spill] sm:$0xff]  ;;  %v8081_v31 = vld [vmem:[#allocation77_spill] sm:$0xff]  ;;  %v8082_v49 = vld [vmem:[#allocation83_spill] sm:$0xff] }
 0x7ac   : > { %v3694_v17 = vsel %vm566_vm4, %v8081_v31, %v8080_v11  ;;  %v3695_v59 = vsel %vm566_vm4, %v8080_v11, %v8082_v49  ;;  %v8089_v11 = vld [vmem:[#allocation69_spill] sm:$0xff]  ;;  %vm8103_vm10 = vmmov %vm8101_vm0 }
 0x7af   : > { %4756 = vrot.lane.b32.xlu2 %v4755_v57, %s7904_s17  ;;  %4736 = vrot.lane.b32.xlu1 %v4735_v52, %s7907_s1  ;;  %v3222_v57 = vmul.f32 0.0, %v8066_v39  ;;  %v4785_v52 = vpack.i.bf16 %v3166_v27, %v3163_v41  ;;  %v8083_v39 = vld [vmem:[#allocation68_spill] sm:$0xff]  ;;  %v8085_v27 = vld [vmem:[#allocation74_spill] sm:$0xff] }
 0x7b0   : > { %4746 = vrot.lane.b32.xlu0 %v4745_v45, %s7905_s20  ;;  %v8078_v45 = vld [vmem:[#allocation67_spill] sm:$0xff] }
 0x7b1   : > { %v6946_v32 = vpop.permute.xlu2 %4636  ;;  %v3872_v60 = vsel %vm8079_vm11, %v8078_v45, %v8077_v58  ;;  %v3871_v24 = vsel %vm8084_vm6, %v8083_v39, %v8078_v45  ;;  %vm8105_vm11 = vmmov %vm8101_vm0 }
 0x7b2   : > { %v3880_v9 = vmul.f32 %v3871_v24, %v6581_v29  ;;  %v8091_v24 = vld [vmem:[#allocation72_spill] sm:$0xff]  ;;  %vm8106_vm6 = vmmov %vm8097_vm8 }
 0x7b3   : > { %v3814_v63 = vsel %vm8095_vm9, %v8091_v24, %v8094_v40 }
 0x7b7   : > { %4771 = vrot.lane.b32.xlu2 %v4770_v33, %s7975_s2  ;;  %4751 = vrot.lane.b32.xlu1 %v4750_v13, %s7907_s1  ;;  %v3225_v33 = vmul.f32 %v3216_v4, %v6587_v3  ;;  %v6993_v13 = vpop.permute.xlu0 %3956  ;;  %v4000_v4 = vmul.f32 %v8085_v27, %v6652_v19 }
 0x7b8   : > { %4761 = vrot.lane.b32.xlu0 %v4760_v2, %s7906_s21 }
 0x7b9   : > { %v6966_v20 = vpop.permute.xlu2 %2650  ;;  %v4775_v5 = vpack.i.bf16 %v3225_v33, %v3222_v57  ;;  %v3703_v33 = vmul.f32 %v3694_v17, %v6581_v29  ;;  %v3704_v57 = vmul.f32 %v3695_v59, %v6587_v3 }
 0x7bb   : > { %v4810_v17 = vpack.i.bf16 %v3704_v57, %v3703_v33 }
 0x7bf   : > { %4786 = vrot.lane.b32.xlu2 %v4785_v52, %s7904_s17  ;;  %4766 = vrot.lane.b32.xlu1 %v4765_v54, %s7940_s9  ;;  %v3881_v54 = vmul.f32 %v3872_v60, %v6587_v3  ;;  %v4795_v52 = vpack.i.bf16 %v4000_v4, %v3997_v23  ;;  %v3938_v23 = vmul.f32 %v7999_v14, %v6604_v55  ;;  %v8093_v4 = vld [vmem:[#allocation78_spill] sm:$0xff] }
 0x7c0   : > { %4776 = vrot.lane.b32.xlu0 %v4775_v5, %s7905_s20  ;;  %v8088_v5 = vld [vmem:[#allocation76_spill] sm:$0xff] }
 0x7c1   : > { %v6995_v2 = vpop.permute.xlu2 %4661  ;;  %v4780_v45 = vpack.i.bf16 %v3881_v54, %v3880_v9  ;;  %v3812_v27 = vsel %vm8090_vm5, %v8089_v11, %v8088_v5  ;;  %v3813_v60 = vsel %vm8092_vm7, %v8088_v5, %v8091_v24  ;;  %v3941_v9 = vmul.f32 %v8093_v4, %v6652_v19 }
 0x7c2   : > { %v7854_v41 = vunpack.i.h.bf16 %v6995_v2  ;;  %v7852_v43 = vunpack.i.l.bf16 %v6995_v2  ;;  %v3821_v28 = vmul.f32 %v3812_v27, %v6581_v29  ;;  %v3822_v5 = vmul.f32 %v3813_v60, %v6587_v3  ;;  %v8099_v60 = vld [vmem:[#allocation79_spill] sm:$0xff] }
 0x7c3   : > { %v3226_v24 = vmul.f32 %v8075_v6, %v6652_v19  ;;  %vm8112_vm7 = vcmask 580608  }
 0x7c4   : > { %v7012_v38 = vsel %vm8086_vm12, %v7852_v43, %v7854_v41  ;;  %v4790_v14 = vpack.i.bf16 %v3822_v5, %v3821_v28  ;;  %v3753_v43 = vsel %vm8101_vm0, %v8100_v51, %v8099_v60  ;;  %v8104_v28 = vld [vmem:[#allocation89_spill] sm:$0xff]  ;;  %v3820_v5 = vmul.f32 %v8089_v11, %v6604_v55  ;;  %vm8123_vm0 = vmmov %vm8112_vm7 }
 0x7c5   : > { %8087 = vst [vmem:[#allocation54_spill] sm:$0xff] %v7012_v38  ;;  %v3762_v6 = vmul.f32 %v3753_v43, %v6581_v29  ;;  %vm8108_vm12 = vcmask 588800  }
 0x7c6   : > { %vm8109_vm5 = vmmov %vm8108_vm12 }
 0x7c7   : > { %4796 = vrot.lane.b32.xlu2 %v4795_v52, %s7940_s9  ;;  %4781 = vrot.lane.b32.xlu1 %v4780_v45, %s7962_s19  ;;  %vm8113_vm9 = vmmov %vm8109_vm5 }
 0x7c8   : > { %4811 = vrot.lane.b32.xlu0 %v4810_v17, %s7992_s0  ;;  %v4805_v17 = vpack.i.bf16 %v3941_v9, %v3938_v23  ;;  %v3754_v23 = vsel %vm8103_vm10, %v8099_v60, %v8102_v15  ;;  %v3755_v9 = vsel %vm8105_vm11, %v8102_v15, %v8104_v28  ;;  %vm8124_vm10 = vmmov %vm8123_vm0 }
 0x7c9   : > { %v7023_v59 = vpop.permute.xlu2 %4666  ;;  %v7029_v54 = vpop.permute.xlu1 %4626  ;;  %v3764_v15 = vmul.f32 %v3755_v9, %v6652_v19 }
 0x7ca   : > { %v7853_v33 = vunpack.i.h.bf16 %v7029_v54  ;;  %v4632_v57 = vpop.permute.xlu0 %4631 }
 0x7cb   : > { %v4634_v52 = vunpack.i.h.bf16 %v4632_v57  ;;  %v4633_v45 = vunpack.i.l.bf16 %v4632_v57  ;;  %v3823_v57 = vmul.f32 %v3814_v63, %v6652_v19  ;;  %v7855_v63 = vunpack.i.h.bf16 %v6946_v32 }
 0x7cd   : > { %v7040_v4 = vsel %vm8096_vm13, %v7853_v33, %v4633_v45  ;;  %v7043_v27 = vsel %vm8097_vm8, %v4633_v45, %v4634_v52  ;;  %v3761_v33 = vmul.f32 %v8100_v51, %v6604_v55  ;;  %v4825_v62 = vpack.i.bf16 %v3823_v57, %v3820_v5  ;;  %v8111_v51 = vld [vmem:[#allocation87_spill] sm:$0xff]  ;;  %vm8122_vm8 = vmmov %vm8112_vm7 }
 0x7ce   : > { %8098 = vst [vmem:[#allocation27_spill] sm:$0xff] %v7043_v27  ;;  %v3873_v9 = vsel %vm8112_vm7, %v8077_v58, %v8111_v51  ;;  %v3879_v57 = vmul.f32 %v8083_v39, %v6604_v55  ;;  %vm8121_vm13 = vcmask 531456   ;;  %vm8148_vm7 = vcmask 990208  }
 0x7cf   : > { %4806 = vrot.lane.b32.xlu2 %v4805_v17, %s7975_s2  ;;  %4791 = vrot.lane.b32.xlu1 %v4790_v14, %s8013_s28  ;;  %v3763_v17 = vmul.f32 %v3754_v23, %v6587_v3  ;;  %vm8129_vm11 = vmmov %vm8121_vm13 }
 0x7d0   : > { %3240 = vrot.lane.b32.xlu0 %v3226_v24, %s7905_s20 }
 0x7d1   : > { %v7062_v45 = vpop.permute.xlu2 %2827  ;;  %v2533_v60 = vpop.permute.xlu1 %2532  ;;  %v4800_v1 = vpack.i.bf16 %v3763_v17, %v3762_v6 }
 0x7d2   : > { %v4642_v14 = vpop.permute.xlu0 %4641  ;;  %v7070_v41 = vsel %vm8106_vm6, %v4634_v52, %v2533_v60  ;;  %v4835_v52 = vpack.i.bf16 %v3764_v15, %v3761_v33  ;;  %v3882_v60 = vmul.f32 %v3873_v9, %v6652_v19  ;;  %v8115_v33 = vld [vmem:[#allocation84_spill] sm:$0xff]  ;;  %v8116_v15 = vld [vmem:[#allocation86_spill] sm:$0xff]  ;;  %v8117_v9 = vld [vmem:[#allocation85_spill] sm:$0xff]  ;;  %vm8130_vm6 = vcmask 523264  }
 0x7d3   : > { %8107 = vst [vmem:[#allocation22_spill] sm:$0xff] %v7070_v41  ;;  %v4644_v11 = vunpack.i.h.bf16 %v4642_v14  ;;  %v4643_v24 = vunpack.i.l.bf16 %v4642_v14 }
 0x7d4   : > { %v4815_v39 = vpack.i.bf16 %v3882_v60, %v3879_v57 }
 0x7d5   : > { %v7076_v43 = vsel %vm8108_vm12, %v7855_v63, %v4643_v24  ;;  %v7079_v23 = vsel %vm8109_vm5, %v4643_v24, %v4644_v11  ;;  %v3635_v24 = vsel %vm500_vm3, %v8116_v15, %v8115_v33  ;;  %vm8131_vm12 = vmmov %vm8130_vm6 }
 0x7d6   : > { %8110 = vst [vmem:[#allocation20_spill] sm:$0xff] %v7079_v23  ;;  %v3644_v60 = vmul.f32 %v3635_v24, %v6581_v29  ;;  %vm8134_vm5 = vmmov %vm8130_vm6 }
 0x7d7   : > { %4826 = vrot.lane.b32.xlu2 %v4825_v62, %s8013_s28  ;;  %4801 = vrot.lane.b32.xlu1 %v4800_v1, %s8006_s4 }
 0x7d8   : > { %4836 = vrot.lane.b32.xlu0 %v4835_v52, %s8006_s4  ;;  %v3636_v52 = vsel %vm500_vm3, %v8115_v33, %v8117_v9 }
 0x7d9   : > { %v7087_v5 = vpop.permute.xlu2 %4691  ;;  %v2592_v6 = vpop.permute.xlu1 %2591  ;;  %v3645_v63 = vmul.f32 %v3636_v52, %v6587_v3 }
 0x7da   : > { %v7857_v17 = vunpack.i.h.bf16 %v7087_v5  ;;  %v7856_v14 = vunpack.i.l.bf16 %v7087_v5  ;;  %v7094_v58 = vpop.permute.xlu0 %4646  ;;  %v7097_v62 = vsel %vm8113_vm9, %v4644_v11, %v2592_v6  ;;  %v8118_v11 = vpack.i.bf16 %v6607_v25, %v6591_v34 }
 0x7db   : > { %v8119_v6 = vpack.i.bf16 %v6610_v46, %v6600_v42  ;;  %v7858_v33 = vunpack.i.h.bf16 %v7094_v58  ;;  %v8120_v25 = vunpack.i.h.bf16 %v6995_v2  ;;  %v3108_v42 = vmul.f32 %v8051_v50, %v6652_v19 }
 0x7dc   : > { %v7104_v1 = vsel %vm500_vm3, %v7856_v14, %v7857_v17  ;;  %v4820_v52 = vpack.i.bf16 %v3645_v63, %v3644_v60  ;;  %v8127_v50 = vpack.i.bf16 %v6620_v26, %v6617_v8  ;;  %v3824_v60 = vmul.f32 0.0, %v8094_v40 }
 0x7dd   : > { %8114 = vst [vmem:[#allocation64_spill] sm:$0xff] %v7104_v1  ;;  %v3167_v26 = vmul.f32 %v8073_v35, %v6652_v19  ;;  %v8133_v40 = vpack.i.bf16 %v6638_v37, %v6635_v53  ;;  %v3883_v53 = vmul.f32 0.0, %v8111_v51  ;;  %v8136_v37 = vld [vmem:[#allocation90_spill] sm:$0xff]  ;;  %vm8149_vm9 = vcmask 1039360  }
 0x7df   : > { %4831 = vrot.lane.b32.xlu2 %v8118_v11, %s7888_s11  ;;  %4816 = vrot.lane.b32.xlu1 %v4815_v39, %s7962_s19 }
 0x7e0   : > { %4841 = vrot.lane.b32.xlu0 %v8119_v6, %s7889_s10 }
 0x7e1   : > { %v7121_v57 = vpop.permute.xlu2 %4696  ;;  %v4652_v14 = vpop.permute.xlu1 %4651 }
 0x7e2   : > { %v4654_v17 = vunpack.i.h.bf16 %v4652_v14  ;;  %v4653_v27 = vunpack.i.l.bf16 %v4652_v14  ;;  %v2710_v34 = vpop.permute.xlu0 %2709 }
 0x7e3   : > { %v7129_v39 = vsel %vm8121_vm13, %v8120_v25, %v2710_v34  ;;  %v8128_v25 = vunpack.i.l.bf16 %v6995_v2  ;;  %vm8150_vm13 = vcmask 7168  }
 0x7e4   : > { %v7136_v46 = vsel %vm8122_vm8, %v7858_v33, %v4653_v27  ;;  %v7140_v24 = vsel %vm8123_vm0, %v4654_v17, %v6966_v20  ;;  %v7143_v14 = vsel %vm8124_vm10, %v4653_v27, %v4654_v17  ;;  %v7860_v27 = vunpack.i.h.bf16 %v7023_v59  ;;  %vm8151_vm8 = vmmov %vm8148_vm7 }
 0x7e5   : > { %8125 = vst [vmem:[#allocation61_spill] sm:$0xff] %v7143_v14  ;;  %vm8152_vm0 = vcmask 56320   ;;  %vm8153_vm10 = vmmov %vm8148_vm7 }
 0x7e7   : > { %3122 = vrot.lane.b32.xlu2 %v3108_v42, %s7950_s23  ;;  %4821 = vrot.lane.b32.xlu1 %v4820_v52, %s7887_s14 }
 0x7e8   : > { %4851 = vrot.lane.b32.xlu0 %v8127_v50, %s8126_s30 }
 0x7e9   : > { %v7151_v11 = vpop.permute.xlu2 %3004  ;;  %v7153_v6 = vpop.permute.xlu1 %4656 }
 0x7ea   : > { %v7859_v20 = vunpack.i.h.bf16 %v7153_v6  ;;  %v4672_v34 = vpop.permute.xlu0 %4671 }
 0x7eb   : > { %v4674_v17 = vunpack.i.h.bf16 %v4672_v34  ;;  %v4673_v63 = vunpack.i.l.bf16 %v4672_v34 }
 0x7ec   : > { %v7163_v8 = vsel %vm8129_vm11, %v7859_v20, %v8128_v25  ;;  %vm8156_vm11 = vmmov %vm8149_vm9 }
 0x7ed   : > { %v7170_v42 = vsel %vm8130_vm6, %v7860_v27, %v4673_v63  ;;  %v7173_v52 = vsel %vm8131_vm12, %v4673_v63, %v4674_v17  ;;  %vm8158_vm6 = vmmov %vm8149_vm9 }
 0x7ee   : > { %8132 = vst [vmem:[#allocation62_spill] sm:$0xff] %v7173_v52  ;;  %v3411_v52 = vmul.f32 0.0, %v6640_v22  ;;  %vm8162_vm12 = vmmov %vm8150_vm13 }
 0x7ef   : > { %3838 = vrot.lane.b32.xlu2 %v3824_v60, %s8013_s28  ;;  %3181 = vrot.lane.b32.xlu1 %v3167_v26, %s7904_s17  ;;  %v3765_v60 = vmul.f32 0.0, %v8104_v28 }
 0x7f0   : > { %4861 = vrot.lane.b32.xlu0 %v8133_v40, %s7903_s15  ;;  %v3696_v40 = vsel %vm566_vm4, %v8082_v49, %v8136_v37 }
 0x7f1   : > { %v7181_v2 = vpop.permute.xlu2 %4721  ;;  %v2769_v35 = vpop.permute.xlu1 %2768  ;;  %v3705_v51 = vmul.f32 %v3696_v40, %v6652_v19 }
 0x7f2   : > { %v4724_v50 = vunpack.i.h.bf16 %v7181_v2  ;;  %v7861_v34 = vunpack.i.l.bf16 %v7181_v2  ;;  %v7185_v25 = vpop.permute.xlu0 %4676  ;;  %v7188_v63 = vsel %vm8134_vm5, %v4674_v17, %v2769_v35  ;;  %v8137_v17 = vpack.i.bf16 %v6675_v21, %v6663_v7  ;;  %vm8165_vm5 = vmmov %vm8162_vm12 }
 0x7f3   : > { %v3702_v35 = vmul.f32 %v8081_v31, %v6604_v55  ;;  %v3706_v7 = vmul.f32 0.0, %v8136_v37 }
 0x7f4   : > { %v7194_v26 = vsel %vm990_vm14, %v7861_v34, %v4724_v50  ;;  %v8140_v34 = vld [vmem:[#allocation91_spill] sm:$0xff] }
 0x7f5   : > { %8135 = vst [vmem:[#allocation58_spill] sm:$0xff] %v7194_v26  ;;  %v4845_v40 = vpack.i.bf16 %v3705_v51, %v3702_v35  ;;  %v3637_v23 = vsel %vm500_vm3, %v8117_v9, %v8140_v34 }
 0x7f6   : > { %v3646_v37 = vmul.f32 %v3637_v23, %v6652_v19  ;;  %v8142_v23 = vpack.i.bf16 %v6700_v48, %v6686_v16 }
 0x7f7   : > { %3779 = vrot.lane.b32.xlu2 %v3765_v60, %s8006_s4  ;;  %3897 = vrot.lane.b32.xlu1 %v3883_v53, %s7962_s19  ;;  %v8138_v53 = vunpack.i.h.bf16 %v7087_v5 }
 0x7f8   : > { %4871 = vrot.lane.b32.xlu0 %v8137_v17, %s7889_s10  ;;  %v3588_v17 = vmul.f32 0.0, %v6555_v44 }
 0x7f9   : > { %v7206_v28 = vpop.permute.xlu2 %4726  ;;  %v7211_v33 = vpop.permute.xlu1 %4681 }
 0x7fa   : > { %v4684_v49 = vunpack.i.h.bf16 %v7211_v33  ;;  %v7862_v60 = vunpack.i.l.bf16 %v7211_v33  ;;  %v2887_v20 = vpop.permute.xlu0 %2886  ;;  %v4728_v41 = vunpack.i.l.bf16 %v7206_v28 }
 0x7fb   : > { %v7218_v27 = vsel %vm500_vm3, %v8138_v53, %v2887_v20  ;;  %v3643_v20 = vmul.f32 %v8116_v15, %v6604_v55 }
 0x7fc   : > { %v7223_v21 = vsel %vm566_vm4, %v4684_v49, %v7062_v45  ;;  %v7228_v31 = vsel %vm566_vm4, %v7862_v60, %v4684_v49 }
 0x7fd   : > { %8139 = vst [vmem:[#allocation65_spill] sm:$0xff] %v7228_v31  ;;  %v4855_v49 = vpack.i.bf16 %v3646_v37, %v3643_v20  ;;  %v3529_v37 = vmul.f32 0.0, %v6629_v12 }
 0x7ff   : > { %3720 = vrot.lane.b32.xlu2 %v3706_v7, %s7992_s0  ;;  %4846 = vrot.lane.b32.xlu1 %v4845_v40, %s7992_s0  ;;  %v3470_v7 = vmul.f32 0.0, %v6564_v61  ;;  %v8144_v61 = vpack.i.bf16 %v6672_v56, %v6659_v18  ;;  %v3647_v56 = vmul.f32 0.0, %v8140_v34  ;;  %v8147_v34 = vpack.i.bf16 %v6678_v0, %v6667_v30  ;;  %s4529_s0 = sshll.u32 %s5125_s12, 5 }
 0x800   : > { %3602 = vrot.lane.b32.xlu0 %v3588_v17, %s7888_s11 }
 0x801   : > { %v7237_v45 = vpop.permute.xlu2 %4741  ;;  %v7242_v35 = vpop.permute.xlu1 %4686 }
 0x802   : > { %v7244_v44 = vpop.permute.xlu0 %4701  ;;  %v4743_v60 = vunpack.i.l.bf16 %v7237_v45 }
 0x803   : > { %v4704_v51 = vunpack.i.h.bf16 %v7244_v44  ;;  %v7863_v9 = vunpack.i.l.bf16 %v7244_v44 }
 0x805   : > { %v7251_v53 = vsel %vm433_vm2, %v7863_v9, %v4704_v51 }
 0x806   : > { %8141 = vst [vmem:[#allocation63_spill] sm:$0xff] %v7251_v53  ;;  %v4729_v53 = vunpack.i.h.bf16 %v7206_v28 }
 0x807   : > { %4876 = vrot.lane.b32.xlu2 %v8142_v23, %s8126_s30  ;;  %4856 = vrot.lane.b32.xlu1 %v4855_v49, %s7887_s14 }
 0x808   : > { %3484 = vrot.lane.b32.xlu0 %v3470_v7, %s8126_s30  ;;  %s4411_s30 = scalar_lea.hbm %s7735_s8, %s4529_s0 }
 0x809   : > { %v7260_v15 = vpop.permute.xlu2 %4756  ;;  %v2946_v40 = vpop.permute.xlu1 %2945  ;;  %s4415_s1 = sshll.u32 %s4411_s30, 4  ;;  %s4416_s1 = int_to_ptr.hbm [resolvable:$true] %s4415_s1 }
 0x80a   : > { %8143 = vst [vmem:[#allocation21_spill] sm:$0xff] %v7260_v15  ;;  %v7262_v17 = vpop.permute.xlu0 %4706  ;;  %v7265_v20 = vsel %vm433_vm2, %v4704_v51, %v2946_v40  ;;  %s4974_s23 = sshra.s32 %s4416_s1, 4  ;;  %s4975_s23 = int_to_ptr.hbm [resolvable:$true] %s4974_s23 }
 0x80b   : > { %s4976_s16 = scalar_lea.hbm %s4975_s23, 32  ;;  %p4981_p12 = scmp.lt.s32.totalorder %s4975_s23, %s7735_s8 }
 0x80c   : > { %p4977_p1 = scmp.ne.s32.totalorder %s4975_s23, %s4976_s16 }
 0x80e   : > { %p4978_p3 = pnand %p4977_p1, %p5161_p13 }
 0x80f   : > { %3543 = vrot.lane.b32.xlu2 %v3529_v37, %s7889_s10  ;;  %4866 = vrot.lane.b32.xlu1 %v8144_v61, %s7888_s11 }
 0x810   : > { %p4979_p5 = pneg %p4978_p3 }
 0x811   : > { %v7273_v16 = vpop.permute.xlu1 %4711  ;;  %v7275_v48 = vpop.permute.xlu2 %4771 }
 0x812   : > { %v4714_v49 = vunpack.i.h.bf16 %v7273_v16  ;;  %v7864_v7 = vunpack.i.l.bf16 %v7273_v16  ;;  %v3064_v23 = vpop.permute.xlu0 %3063 }
 0x813   : > { %v7280_v51 = vsel %vm990_vm14, %v4724_v50, %v3064_v23 }
 0x814   : > { %v7284_v12 = vsel %vm367_vm1, %v4714_v49, %v7151_v11  ;;  %v7289_v18 = vsel %vm367_vm1, %v7864_v7, %v4714_v49 }
 0x815   : > { %8145 = vst [vmem:[#allocation23_spill] sm:$0xff] %v7289_v18 }
 0x817   : > { %3661 = vrot.lane.b32.xlu1 %v3647_v56, %s7887_s14  ;;  %v4744_v56 = vunpack.i.h.bf16 %v7237_v45  ;;  %v7866_v45 = vunpack.i.h.bf16 %v7260_v15  ;;  %s4980_s14 = scalar_lea.hbm %s7735_s8, 64 }
 0x818   : > { %p4982_p8 = scmp.lt.s32.totalorder %s4980_s14, %s4976_s16 }
 0x819   : > { %v7293_v40 = vpop.permute.xlu1 %4716  ;;  %v7299_v23 = vpop.permute.xlu2 %4786  ;;  %v3310_v0 = vsel %vm8149_vm9, %v4743_v60, %v4744_v56  ;;  %vm8175_vm9 = vcmask 531456  }
 0x81a   : > { %v7295_v37 = vpop.permute.xlu0 %4731  ;;  %v4718_v28 = vunpack.i.l.bf16 %v7293_v40  ;;  %p4983_p7 = por %p4982_p8, %p4981_p12 }
 0x81b   : > { %v7865_v50 = vunpack.i.h.bf16 %v7295_v37  ;;  %v4733_v61 = vunpack.i.l.bf16 %v7295_v37 }
 0x81c   : > { %p4984_p9 = pnand %p4983_p7, %p4979_p5 }
 0x81d   : > { %v7304_v11 = vsel %vm1056_vm15, %v4733_v61, %v7865_v50 }
 0x81e   : > { %8146 = vst [vmem:[#allocation24_spill] sm:$0xff] %v7304_v11  ;;  %v4719_v11 = vunpack.i.h.bf16 %v7293_v40 }
 0x81f   : > { %4881 = vrot.lane.b32.xlu1 %v8147_v34, %s7903_s15  ;;  %v4758_v34 = vunpack.i.l.bf16 %v7260_v15  ;;  %v4304_v15 = vld [vmem:[%s7734_s7] sm:$0xff] }
 0x821   : > { %v4737_v49 = vpop.permute.xlu1 %4736  ;;  %v7316_v50 = vpop.permute.xlu2 %4796  ;;  %v3184_v18 = vsel %vm8152_vm0, %v4758_v34, %v7866_v45 }
 0x822   : > { %v4739_v9 = vunpack.i.h.bf16 %v4737_v49  ;;  %v4738_v7 = vunpack.i.l.bf16 %v4737_v49  ;;  %v7312_v14 = vpop.permute.xlu0 %4746 }
 0x823   : > { %v4749_v31 = vunpack.i.h.bf16 %v7312_v14  ;;  %v4748_v30 = vunpack.i.l.bf16 %v7312_v14 }
 0x824   : > { %v3369_v38 = vsel %vm8148_vm7, %v4738_v7, %v4739_v9  ;;  %vm8166_vm7 = vmmov %vm8152_vm0 }
 0x825   : > { %4183 = vmatpush.msrb.mxu2 %v3369_v38  ;;  %v3243_v14 = vsel %vm8150_vm13, %v4748_v30, %v4749_v31  ;;  %vm8177_vm13 = vcmask 580608  }
 0x827   : > { %3425 = vrot.lane.b32.xlu1 %v3411_v52, %s7903_s15  ;;  %4184 = vmatpush.msrb.mxu2 %v3310_v0 }
 0x829   : > { %v7324_v49 = vpop.permute.xlu1 %4751  ;;  %4185 = vmatpush.msrb.mxu2 %v6581_v29  ;;  %v4303_v29 = vld [vmem:[%s7733_s6] sm:$0xff]  ;;  %v7354_v45 = vpop.permute.xlu2 %4806 }
 0x82a   : > { %v7867_v22 = vunpack.i.h.bf16 %v7324_v49  ;;  %v4753_v38 = vunpack.i.l.bf16 %v7324_v49  ;;  %v7329_v1 = vpop.permute.xlu0 %4761 }
 0x82b   : > { %v4763_v52 = vunpack.i.l.bf16 %v7329_v1  ;;  %4186 = vmatpush.msrb.mxu2 %v3243_v14 }
 0x82c   : > { %v3368_v0 = vsel %vm8151_vm8, %v4753_v38, %v4738_v7  ;;  %v7344_v26 = vsel %vm8153_vm10, %v4739_v9, %v7867_v22  ;;  %v8155_v7 = vunpack.i.h.bf16 %v7329_v1  ;;  %v3125_v9 = vsel %vm1056_vm15, %v4729_v53, %v4733_v61 }
 0x82d   : > { %8154 = vst [vmem:[#allocation33_spill] sm:$0xff] %v7344_v26  ;;  %4143 = vmatpush.msrb.mxu0 %v3368_v0  ;;  %4187 = vmatpush.msrb.mxu2 %v3184_v18  ;;  %v3309_v14 = vsel %vm8158_vm6, %v4763_v52, %v4743_v60  ;;  %v4699_v22 = vunpack.i.h.bf16 %v7121_v57  ;;  %v4709_v18 = vunpack.i.h.bf16 %v7262_v17  ;;  %v4798_v52 = vunpack.i.l.bf16 %v7316_v50  ;;  %vm8185_vm6 = vmmov %vm8175_vm9 }
 0x82e   : > { %v7351_v38 = vsel %vm8156_vm11, %v4744_v56, %v8155_v7  ;;  %v8159_v56 = vunpack.i.l.bf16 %v7181_v2  ;;  %v8160_v2 = vunpack.i.l.bf16 %v7273_v16  ;;  %vm8179_vm8 = vcmask 588800  }
 0x82f   : > { %8157 = vst [vmem:[#allocation36_spill] sm:$0xff] %v7351_v38  ;;  %4379 = vperm.xlu1 %4624, %v4303_v29   ;;  %4144 = vmatpush.msrb.mxu0 %v3309_v14  ;;  %v4808_v29 = vunpack.i.l.bf16 %v7354_v45  ;;  %v4773_v38 = vunpack.i.l.bf16 %v7275_v48  ;;  %vm8182_vm10 = vcmask 596992   ;;  %vm8184_vm11 = vcmask 990208  }
 0x830   : > { %4188 = vmatpush.msrb.mxu2 %v3125_v9  ;;  %v3066_v60 = vsel %vm990_vm14, %v4719_v11, %v8159_v56  ;;  %v4788_v9 = vunpack.i.l.bf16 %v7299_v23  ;;  %v3007_v56 = vsel %vm367_vm1, %v4709_v18, %v8160_v2  ;;  %v8163_v2 = vunpack.i.l.bf16 %v7244_v44 }
 0x831   : > { %v7360_v0 = vpop.permute.xlu1 %4766  ;;  %4145 = vmatpush.msrb.mxu0 %v6604_v55  ;;  %v8167_v44 = vunpack.i.l.bf16 %v7087_v5 }
 0x832   : > { %v4768_v7 = vunpack.i.l.bf16 %v7360_v0  ;;  %v7370_v14 = vpop.permute.xlu0 %4776  ;;  %4189 = vmatpush.msrb.mxu2 %v3066_v60  ;;  %v8161_v26 = vunpack.i.h.bf16 %v7360_v0  ;;  %v2948_v3 = vsel %vm433_vm2, %v4699_v22, %v8163_v2  ;;  %v4668_v2 = vunpack.i.l.bf16 %v7023_v59 }
 0x833   : > { %v4778_v55 = vunpack.i.l.bf16 %v7370_v14 }
 0x834   : > { %4190 = vmatpush.msrb.mxu2 %v3007_v56  ;;  %v4017_v61 = vsel %vm367_vm1, %v4798_v52, %v4768_v7  ;;  %v4018_v60 = vsel %vm367_vm1, %v4768_v7, %v8161_v26  ;;  %v8164_v52 = vunpack.i.h.bf16 %v7370_v14  ;;  %v3958_v26 = vsel %vm433_vm2, %v4808_v29, %v4773_v38 }
 0x835   : > { %v3242_v16 = vsel %vm8162_vm12, %v4778_v55, %v4748_v30  ;;  %4168 = vmatpush.msrb.mxu1 %v4017_v61  ;;  %4208 = vmatpush.msrb.mxu3 %v4018_v60  ;;  %v4679_v7 = vunpack.i.h.bf16 %v7185_v25  ;;  %v3183_v30 = vsel %vm8166_vm7, %v4788_v9, %v4758_v34  ;;  %v8168_v61 = vunpack.i.h.bf16 %v7242_v35 }
 0x836   : > { %v7395_v56 = vsel %vm8165_vm5, %v4749_v31, %v8164_v52  ;;  %4146 = vmatpush.msrb.mxu0 %v3242_v16  ;;  %4191 = vmatpush.msrb.mxu2 %v2948_v3  ;;  %v8169_v3 = vunpack.i.h.bf16 %v7275_v48  ;;  %v4708_v29 = vunpack.i.l.bf16 %v7262_v17  ;;  %v8170_v34 = vunpack.i.l.bf16 %v7211_v33  ;;  %v7436_v52 = vpop.permute.xlu2 %4826 }
 0x837   : > { %4388 = vperm.xlu1 %4624, %v4304_v15   ;;  %4169 = vmatpush.msrb.mxu1 %v3958_v26  ;;  %v2889_v55 = vsel %vm500_vm3, %v8168_v61, %v8167_v44  ;;  %v3124_v15 = vsel %vm1056_vm15, %v4728_v41, %v4729_v53  ;;  %v3065_v17 = vsel %vm990_vm14, %v4718_v28, %v4719_v11  ;;  %v4688_v33 = vunpack.i.l.bf16 %v7242_v35 }
 0x838   : > { %4147 = vmatpush.msrb.mxu0 %v3183_v30  ;;  %4192 = vmatpush.msrb.mxu2 %v2889_v55  ;;  %v3959_v31 = vsel %vm433_vm2, %v4773_v38, %v8169_v3  ;;  %v2830_v5 = vsel %vm566_vm4, %v4679_v7, %v8170_v34  ;;  %v4698_v38 = vunpack.i.l.bf16 %v7121_v57  ;;  %v3006_v53 = vsel %vm367_vm1, %v4708_v29, %v4709_v18 }
 0x839   : > { %4209 = vmatpush.msrb.mxu3 %v3959_v31  ;;  %v7410_v40 = vpop.permute.xlu1 %4781  ;;  %v4678_v57 = vunpack.i.l.bf16 %v7185_v25  ;;  %v8171_v18 = vmov %v8168_v61  ;;  %v4648_v55 = vunpack.i.l.bf16 %v7094_v58  ;;  %vm8173_vm14 = vcmask 523264  }
 0x83a   : > { %v4784_v9 = vunpack.i.h.bf16 %v7410_v40  ;;  %v4783_v60 = vunpack.i.l.bf16 %v7410_v40  ;;  %v7418_v16 = vpop.permute.xlu0 %4811  ;;  %4148 = vmatpush.msrb.mxu0 %v3124_v15  ;;  %4193 = vmatpush.msrb.mxu2 %v2830_v5  ;;  %v2947_v11 = vsel %vm433_vm2, %v4698_v38, %v4699_v22  ;;  %v2888_v28 = vsel %vm500_vm3, %v4688_v33, %v8171_v18  ;;  %vm8180_vm0 = vmmov %vm8173_vm14 }
 0x83b   : > { %v2829_v44 = vsel %vm566_vm4, %v4678_v57, %v4679_v7  ;;  %v8174_v7 = vunpack.i.h.bf16 %v7153_v6  ;;  %v4628_v29 = vunpack.i.l.bf16 %v7029_v54  ;;  %v8176_v15 = vunpack.i.h.bf16 %v7094_v58  ;;  %vm8189_vm7 = vmmov %vm8180_vm0 }
 0x83c   : > { %4149 = vmatpush.msrb.mxu0 %v3065_v17  ;;  %4194 = vmatpush.msrb.mxu2 %v7170_v42  ;;  %v3900_v41 = vsel %vm500_vm3, %v4783_v60, %v4784_v9  ;;  %v4799_v42 = vunpack.i.h.bf16 %v7316_v50  ;;  %v4814_v5 = vunpack.i.h.bf16 %v7418_v16  ;;  %v8178_v33 = vunpack.i.h.bf16 %v6946_v32 }
 0x83d   : > { %4210 = vmatpush.msrb.mxu3 %v3900_v41  ;;  %v2652_v34 = vsel %vm8177_vm13, %v4648_v55, %v8176_v15  ;;  %v8181_v57 = vunpack.i.h.bf16 %v7029_v54  ;;  %v8186_v54 = vunpack.i.h.bf16 %v7329_v1  ;;  %vm8187_vm12 = vcmask 1039360  }
 0x83e   : > { %4150 = vmatpush.msrb.mxu0 %v3006_v53  ;;  %4195 = vmatpush.msrb.mxu2 %v7163_v8  ;;  %v4809_v8 = vunpack.i.h.bf16 %v7354_v45  ;;  %v4020_v35 = vsel %vm367_vm1, %v4799_v42, %v6910_v36  ;;  %v4638_v36 = vunpack.i.l.bf16 %v6946_v32  ;;  %v7481_v41 = vpop.permute.xlu2 %4831  ;;  %v4829_v50 = vunpack.i.h.bf16 %v7436_v52 }
 0x840   : > { %4151 = vmatpush.msrb.mxu0 %v2947_v11  ;;  %4196 = vmatpush.msrb.mxu2 %v7136_v46  ;;  %v4658_v46 = vunpack.i.l.bf16 %v7153_v6  ;;  %v2593_v53 = vsel %vm8179_vm8, %v4638_v36, %v8178_v33  ;;  %v2534_v11 = vsel %vm8182_vm10, %v4628_v29, %v8181_v57  ;;  %v4789_v33 = vunpack.i.h.bf16 %v7299_v23  ;;  %v8232_v23 = vld [vmem:[#allocation54_spill] sm:$0xff] }
 0x841   : > { %v7438_v26 = vpop.permute.xlu1 %4791 }
 0x842   : > { %v4794_v25 = vunpack.i.h.bf16 %v7438_v26  ;;  %v4793_v22 = vunpack.i.l.bf16 %v7438_v26  ;;  %v3241_v30 = vpop.permute.xlu0 %3240  ;;  %4152 = vmatpush.msrb.mxu0 %v2888_v28  ;;  %4197 = vmatpush.msrb.mxu2 %v7076_v43  ;;  %v8172_v43 = vunpack.i.h.bf16 %v7023_v59  ;;  %v2711_v31 = vsel %vm8175_vm9, %v4658_v46, %v8174_v7  ;;  %vm8191_vm9 = vmmov %vm8179_vm8 }
 0x843   : > { %v3312_v28 = vsel %vm8187_vm12, %v8186_v54, %v6959_v47  ;;  %vm8193_vm8 = vcmask 973824   ;;  %v8195_v54 = vunpack.i.h.bf16 %v7295_v37  ;;  %v8198_v37 = vunpack.i.h.bf16 %v7275_v48  ;;  %vm8207_vm12 = vmmov %vm8191_vm9 }
 0x844   : > { %4153 = vmatpush.msrb.mxu0 %v2829_v44  ;;  %4198 = vmatpush.msrb.mxu2 %v7040_v4  ;;  %v3841_v61 = vsel %vm566_vm4, %v4793_v22, %v4794_v25  ;;  %v2770_v3 = vsel %vm8173_vm14, %v4668_v2, %v8172_v43  ;;  %v3961_v4 = vsel %vm433_vm2, %v4809_v8, %v6993_v13  ;;  %v4813_v13 = vunpack.i.l.bf16 %v7418_v16  ;;  %vm8190_vm14 = vmmov %vm8177_vm13 }
 0x845   : > { %4211 = vmatpush.msrb.mxu3 %v3841_v61  ;;  %v8183_v2 = vunpack.i.h.bf16 %v7324_v49  ;;  %v8188_v61 = vunpack.i.h.bf16 %v7370_v14  ;;  %v4833_v14 = vunpack.i.l.bf16 %v7481_v41  ;;  %vm8192_vm13 = vmmov %vm8182_vm10  ;;  %vm8196_vm10 = vcmask 982016  }
 0x846   : > { %4288 = vmatpush.msra.mxu2 %v4020_v35  ;;  %4154 = vmatpush.msrb.mxu0 %v2770_v3  ;;  %v3723_v32 = vsel %vm8185_vm6, %v4813_v13, %v4814_v5  ;;  %v3123_v47 = vpop.permute.xlu2 %3122  ;;  %v3842_v48 = vsel %vm566_vm4, %v4794_v25, %v4829_v50 }
 0x847   : > { %v3371_v18 = vsel %vm8184_vm11, %v8183_v2, %v6938_v10  ;;  %v4828_v10 = vunpack.i.l.bf16 %v7436_v52  ;;  %v3245_v55 = vsel %vm8165_vm5, %v8188_v61, %v3241_v30  ;;  %vm8205_vm11 = vmmov %vm8190_vm14 }
 0x848   : > { %4289 = vmatpush.msra.mxu2 %v3961_v4  ;;  %4155 = vmatpush.msrb.mxu0 %v2711_v31  ;;  %v4834_v4 = vunpack.i.h.bf16 %v7481_v41  ;;  %vm8208_vm5 = vmmov %vm8191_vm9  ;;  %v4030_v41 = vld [vmem:[%s7732_s5 + $0x8] sm:$0xff] }
 0x849   : > { %v7470_v59 = vpop.permute.xlu1 %4801  ;;  %v3840_v43 = vsel %vm566_vm4, %v4828_v10, %v4793_v22 }
 0x84a   : > { %v4804_v38 = vunpack.i.h.bf16 %v7470_v59  ;;  %v4803_v17 = vunpack.i.l.bf16 %v7470_v59  ;;  %v7479_v6 = vpop.permute.xlu0 %4836  ;;  %4156 = vmatpush.msrb.mxu0 %v2652_v34  ;;  %v3605_v34 = vsel %vm8191_vm9, %v4833_v14, %v4834_v4  ;;  %vm4139_vm9 = vcmask 719872  }
 0x84b   : > { %v4838_v49 = vunpack.i.l.bf16 %v7479_v6 }
 0x84c   : > { %4157 = vmatpush.msrb.mxu0 %v2593_v53  ;;  %v3782_v58 = vsel %vm8180_vm0, %v4803_v17, %v4804_v38  ;;  %vm8194_vm0 = vcmask 56320  }
 0x84d   : > { %4212 = vmatpush.msrb.mxu3 %v3782_v58 }
 0x84e   : > { %4158 = vmatpush.msrb.mxu0 %v2534_v11 }
 0x84f   : > { %4213 = vmatpush.msrb.mxu3 %v3723_v32 }
 0x850   : > { %4263 = vmatpush.msra.mxu0 %v3371_v18 }
 0x851   : > { %v4817_v46 = vpop.permute.xlu1 %4816 }
 0x852   : > { %4264 = vmatpush.msra.mxu0 %v3312_v28  ;;  %v4818_v44 = vunpack.i.l.bf16 %v4817_v46  ;;  %v7505_v35 = vpop.permute.xlu0 %4841  ;;  %v3127_v28 = vsel %vm1056_vm15, %v8195_v54, %v3123_v47  ;;  %v4819_v10 = vunpack.i.h.bf16 %v4817_v46 }
 0x853   : > { %v4844_v7 = vunpack.i.h.bf16 %v7505_v35  ;;  %v4843_v22 = vunpack.i.l.bf16 %v7505_v35 }
 0x854   : > { %4265 = vmatpush.msra.mxu0 %v6652_v19  ;;  %v3899_v1 = vsel %vm500_vm3, %v4818_v44, %v4783_v60  ;;  %v3781_v19 = vsel %vm8189_vm7, %v4838_v49, %v4803_v17  ;;  %v3839_v17 = vpop.permute.xlu2 %3838  ;;  %v8197_v49 = vunpack.i.h.bf16 %v7360_v0  ;;  %v4839_v0 = vunpack.i.h.bf16 %v7479_v6 }
 0x855   : > { %4170 = vmatpush.msrb.mxu1 %v3899_v1  ;;  %v3546_v53 = vsel %vm8192_vm13, %v4843_v22, %v4844_v7 }
 0x856   : > { %4266 = vmatpush.msra.mxu0 %v3245_v55  ;;  %v4019_v61 = vsel %vm367_vm1, %v8197_v49, %v4799_v42  ;;  %v3960_v55 = vsel %vm433_vm2, %v8198_v37, %v4809_v8  ;;  %v3901_v42 = vsel %vm500_vm3, %v4784_v9, %v4819_v10  ;;  %vm8199_vm1 = vmmov %vm8189_vm7  ;;  %v8219_v49 = vld [vmem:[#allocation36_spill] sm:$0xff] }
 0x857   : > { %4171 = vmatpush.msrb.mxu1 %v3840_v43  ;;  %v3783_v45 = vsel %vm8199_vm1, %v4804_v38, %v4839_v0  ;;  %vm8200_vm2 = vmmov %vm8199_vm1  ;;  %v8204_v38 = vld [vmem:[#allocation22_spill] sm:$0xff]  ;;  %v8220_v37 = vld [vmem:[#allocation92_spill] sm:$0xff] }
 0x858   : > { %vm8209_vm7 = vmmov %vm8192_vm13 }
 0x859   : > { %v7518_v3 = vpop.permute.xlu1 %4821  ;;  %4172 = vmatpush.msrb.mxu1 %v3781_v19  ;;  %vm8211_vm13 = vmmov %vm8193_vm8 }
 0x85a   : > { %v4824_v30 = vunpack.i.h.bf16 %v7518_v3  ;;  %v4823_v36 = vunpack.i.l.bf16 %v7518_v3  ;;  %v7524_v60 = vpop.permute.xlu0 %4851  ;;  %vm8214_vm1 = vmmov %vm8209_vm7 }
 0x85b   : > { %v4854_v29 = vunpack.i.h.bf16 %v7524_v60  ;;  %v4853_v15 = vunpack.i.l.bf16 %v7524_v60 }
 0x85c   : > { %v3664_v31 = vsel %vm8190_vm14, %v4823_v36, %v4824_v30  ;;  %v3780_v1 = vpop.permute.xlu2 %3779  ;;  %vm8210_vm14 = vmmov %vm8209_vm7 }
 0x85d   : > { %4214 = vmatpush.msrb.mxu3 %v3664_v31  ;;  %v3487_v11 = vsel %vm8193_vm8, %v4853_v15, %v4854_v29 }
 0x85f   : > { %4215 = vmatpush.msrb.mxu3 %v3605_v34 }
 0x861   : > { %v3182_v58 = vpop.permute.xlu1 %3181  ;;  %4216 = vmatpush.msrb.mxu3 %v3546_v53  ;;  %v4029_v53 = vld [vmem:[%s7732_s5] sm:$0xff] }
 0x862   : > { %v7546_v57 = vpop.permute.xlu0 %4861  ;;  %v3186_v2 = vsel %vm8194_vm0, %v4789_v33, %v3182_v58  ;;  %4199 = vmatmul.f32.vlgmr.msrb.gmra.mxu2 %v4029_v53  ;;  %4159 = vmatmul.f32.vlgmr.msrb.gmra.mxu0 %v4029_v53 }
 0x863   : > { %v4864_v18 = vunpack.i.h.bf16 %v7546_v57  ;;  %v4863_v32 = vunpack.i.l.bf16 %v7546_v57  ;;  %4217 = vmatpush.msrb.mxu3 %v3487_v11  ;;  %4267 = vmatpush.msra.mxu0 %v3186_v2  ;;  %v8222_v57 = vld [vmem:[#allocation21_spill] sm:$0xff] }
 0x864   : > { %v3721_v26 = vpop.permute.xlu2 %3720 }
 0x865   : > { %v3428_v44 = vsel %vm8196_vm10, %v4863_v32, %v4864_v18  ;;  %4268 = vmatpush.msra.mxu0 %v3127_v28  ;;  %vm8213_vm10 = vmmov %vm8208_vm5 }
 0x866   : > { %4218 = vmatpush.msrb.mxu3 %v3428_v44 }
 0x867   : > { %4269 = vmatpush.msra.mxu0 %v7280_v51  ;;  %4520 = vmatmul.msk.f32.vlgmr.msrb.gmra.mxu3 %vm4139_vm9, %v4030_v41 }
 0x868   : > { %4248 = vmatpush.msra.mxu3 %v4019_v61 }
 0x869   : > { %v3898_v47 = vpop.permute.xlu1 %3897  ;;  %4270 = vmatpush.msra.mxu0 %v7284_v12  ;;  %v3843_v12 = vsel %vm566_vm4, %v4829_v50, %v3839_v17  ;;  %v8227_v50 = vld [vmem:[#allocation23_spill] sm:$0xff] }
 0x86a   : > { %4249 = vmatpush.msra.mxu3 %v3960_v55  ;;  %v3902_v51 = vsel %vm500_vm3, %v4819_v10, %v3898_v47  ;;  %vm8201_vm3 = vmmov %vm8185_vm6  ;;  %v8218_v10 = vld [vmem:[#allocation33_spill] sm:$0xff]  ;;  %v8226_v47 = vld [vmem:[#allocation58_spill] sm:$0xff] }
 0x86b   : > { %4271 = vmatpush.msra.mxu0 %v7265_v20  ;;  %4290 = vmatpush.msra.mxu2 %v3902_v51  ;;  %v3784_v20 = vsel %vm8200_vm2, %v4839_v0, %v3780_v1  ;;  %vm8202_vm4 = vmmov %vm8201_vm3  ;;  %v8225_v1 = vld [vmem:[#allocation24_spill] sm:$0xff]  ;;  %v8228_v0 = vld [vmem:[#allocation63_spill] sm:$0xff] }
 0x86c   : > { %4250 = vmatpush.msra.mxu3 %v3901_v42  ;;  %vm8203_vm15 = vmmov %vm8201_vm3  ;;  %v8229_v42 = vld [vmem:[#allocation64_spill] sm:$0xff]  ;;  %v8231_v51 = vld [vmem:[#allocation62_spill] sm:$0xff] }
 0x86d   : > { %4272 = vmatpush.msra.mxu0 %v7218_v27  ;;  %4291 = vmatpush.msra.mxu2 %v3843_v12  ;;  %vm8206_vm6 = vmmov %vm8205_vm11  ;;  %v8235_v12 = vld [vmem:[#allocation27_spill] sm:$0xff] }
 0x86e   : > { %4251 = vmatpush.msra.mxu3 %v3842_v48  ;;  %vm8212_vm0 = vmmov %vm8206_vm6  ;;  %v8233_v48 = vld [vmem:[#allocation61_spill] sm:$0xff] }
 0x86f   : > { %4273 = vmatpush.msra.mxu0 %v7223_v21  ;;  %4292 = vmatpush.msra.mxu2 %v3784_v20  ;;  %vm8215_vm2 = vmmov %vm8193_vm8 }
 0x870   : > { %4252 = vmatpush.msra.mxu3 %v3783_v45 }
 0x871   : > { %v4847_v40 = vpop.permute.xlu1 %4846  ;;  %4274 = vmatpush.msra.mxu0 %v7188_v63  ;;  %v4872_v63 = vpop.permute.xlu0 %4871 }
 0x872   : > { %v4849_v9 = vunpack.i.h.bf16 %v4847_v40  ;;  %v4848_v52 = vunpack.i.l.bf16 %v4847_v40  ;;  %v4874_v6 = vunpack.i.h.bf16 %v4872_v63 }
 0x873   : > { %4275 = vmatpush.msra.mxu0 %v7129_v39 }
 0x874   : > { %v3722_v27 = vsel %vm8201_vm3, %v4848_v52, %v4813_v13  ;;  %v3724_v8 = vsel %vm8202_vm4, %v4814_v5, %v4849_v9  ;;  %v3725_v21 = vsel %vm8203_vm15, %v4849_v9, %v3721_v26  ;;  %vm8216_vm3 = vcmask 982016  }
 0x875   : > { %4173 = vmatpush.msrb.mxu1 %v3722_v27  ;;  %4253 = vmatpush.msra.mxu3 %v3724_v8  ;;  %vm8217_vm4 = vmmov %vm8216_vm3 }
 0x876   : > { %4276 = vmatpush.msra.mxu0 %v7140_v24  ;;  %4293 = vmatpush.msra.mxu2 %v3725_v21  ;;  %v4877_v24 = vpop.permute.xlu2 %4876  ;;  %vm8221_vm15 = vmmov %vm8216_vm3 }
 0x877   : > { %v4879_v31 = vunpack.i.h.bf16 %v4877_v24  ;;  %v4878_v34 = vunpack.i.l.bf16 %v4877_v24 }
 0x878   : > { %4277 = vmatpush.msra.mxu0 %v7097_v62  ;;  %v4873_v62 = vunpack.i.l.bf16 %v4872_v63 }
 0x879   : > { %v4857_v25 = vpop.permute.xlu1 %4856  ;;  %v3603_v19 = vpop.permute.xlu0 %3602  ;;  %v3488_v35 = vsel %vm8193_vm8, %v4854_v29, %v4879_v31 }
 0x87a   : > { %v4859_v39 = vunpack.i.h.bf16 %v4857_v25  ;;  %v4858_v59 = vunpack.i.l.bf16 %v4857_v25  ;;  %4278 = vmatpush.msra.mxu0 %v8204_v38 }
 0x87b   : > { %4279 = vmatmul.f32.vlgmr.msra.gmra.mxu0 %v4029_v53 }
 0x87c   : > { %v3663_v16 = vsel %vm8205_vm11, %v4858_v59, %v4823_v36  ;;  %v3665_v5 = vsel %vm8206_vm6, %v4824_v30, %v4859_v39  ;;  %v3545_v30 = vsel %vm8209_vm7, %v4873_v62, %v4843_v22  ;;  %v3547_v36 = vsel %vm8210_vm14, %v4844_v7, %v4874_v6 }
 0x87d   : > { %4174 = vmatpush.msrb.mxu1 %v3663_v16  ;;  %4254 = vmatpush.msra.mxu3 %v3665_v5  ;;  %vm8224_vm11 = vcmask 56320  }
 0x87e   : > { %v3544_v58 = vpop.permute.xlu2 %3543 }
 0x881   : > { %v4867_v13 = vpop.permute.xlu1 %4866  ;;  %v3485_v11 = vpop.permute.xlu0 %3484 }
 0x882   : > { %v4869_v46 = vunpack.i.h.bf16 %v4867_v13  ;;  %v4868_v43 = vunpack.i.l.bf16 %v4867_v13  ;;  %v3489_v60 = vsel %vm8215_vm2, %v4879_v31, %v3485_v11 }
 0x884   : > { %v3604_v17 = vsel %vm8207_vm12, %v4868_v43, %v4833_v14  ;;  %v3606_v3 = vsel %vm8208_vm5, %v4834_v4, %v4869_v46  ;;  %v3486_v4 = vsel %vm8211_vm13, %v4878_v34, %v4853_v15  ;;  %v3607_v22 = vsel %vm8213_vm10, %v4869_v46, %v3603_v19 }
 0x885   : > { %4175 = vmatpush.msrb.mxu1 %v3604_v17  ;;  %4255 = vmatpush.msra.mxu3 %v3606_v3  ;;  %v3548_v15 = vsel %vm8214_vm1, %v4874_v6, %v3544_v58 }
 0x887   : > { %4176 = vmatpush.msrb.mxu1 %v3545_v30  ;;  %4256 = vmatpush.msra.mxu3 %v3547_v36 }
 0x889   : > { %v3662_v14 = vpop.permute.xlu1 %3661  ;;  %4177 = vmatpush.msrb.mxu1 %v3486_v4  ;;  %4257 = vmatpush.msra.mxu3 %v3488_v35 }
 0x88a   : > { %v3666_v7 = vsel %vm8212_vm0, %v4859_v39, %v3662_v14 }
 0x88b   : > { %4294 = vmatpush.msra.mxu2 %v3666_v7 }
 0x88d   : > { %4295 = vmatpush.msra.mxu2 %v3607_v22 }
 0x88f   : > { %4296 = vmatpush.msra.mxu2 %v3548_v15 }
 0x891   : > { %v4882_v29 = vpop.permute.xlu1 %4881  ;;  %4297 = vmatpush.msra.mxu2 %v3489_v60 }
 0x892   : > { %v4884_v2 = vunpack.i.h.bf16 %v4882_v29  ;;  %v4883_v54 = vunpack.i.l.bf16 %v4882_v29 }
 0x894   : > { %v3427_v28 = vsel %vm8216_vm3, %v4883_v54, %v4863_v32  ;;  %v3429_v44 = vsel %vm8217_vm4, %v4864_v18, %v4884_v2  ;;  %v8223_v18 = vunpack.i.h.bf16 %v8222_v57 }
 0x895   : > { %4178 = vmatpush.msrb.mxu1 %v3427_v28  ;;  %4258 = vmatpush.msra.mxu3 %v3429_v44 }
 0x896   : > { %4521 = vmatmul.msk.f32.vlgmr.msra.gmra.mxu3 %vm4139_vm9, %v4030_v41  ;;  %4519 = vmatmul.msk.f32.vlgmr.msrb.gmra.mxu1 %vm4139_vm9, %v4030_v41  ;;  %v3185_v32 = vsel %vm8224_vm11, %v8223_v18, %v4789_v33  ;;  %v8234_v33 = vld [vmem:[#allocation20_spill] sm:$0xff] }
 0x897   : > { %4223 = vmatpush.msra.mxu1 %v8218_v10 }
 0x899   : > { %4224 = vmatpush.msra.mxu1 %v8219_v49  ;;  %v3426_v61 = vpop.permute.xlu1 %3425 }
 0x89a   : > { %v3430_v55 = vsel %vm8221_vm15, %v4884_v2, %v3426_v61 }
 0x89b   : > { %4225 = vmatpush.msra.mxu1 %v8220_v37  ;;  %4298 = vmatpush.msra.mxu2 %v3430_v55 }
 0x89c   : > { %4522 = vmatmul.msk.f32.vlgmr.msra.gmra.mxu2 %vm4139_vm9, %v4030_v41 }
 0x89d   : > { %4226 = vmatpush.msra.mxu1 %v7395_v56  ;;  %v8230_v56 = vld [vmem:[#allocation65_spill] sm:$0xff] }
 0x89f   : > { %4227 = vmatpush.msra.mxu1 %v3185_v32 }
 0x8a1   : > { %4228 = vmatpush.msra.mxu1 %v8225_v1  ;;  %v4380_v44 = vpop.permute.xlu1 %4379 }
 0x8a3   : > { %4229 = vmatpush.msra.mxu1 %v8226_v47 }
 0x8a5   : > { %4230 = vmatpush.msra.mxu1 %v8227_v50 }
 0x8a7   : > { %4231 = vmatpush.msra.mxu1 %v8228_v0 }
 0x8a9   : > { %4232 = vmatpush.msra.mxu1 %v8229_v42 }
 0x8ab   : > { %4233 = vmatpush.msra.mxu1 %v8230_v56 }
 0x8ad   : > { %4234 = vmatpush.msra.mxu1 %v8231_v51  ;;  %v4389_v51 = vpop.permute.xlu1 %4388 }
 0x8af   : > { %4235 = vmatpush.msra.mxu1 %v8232_v23 }
 0x8b1   : > { %4236 = vmatpush.msra.mxu1 %v8233_v48 }
 0x8b3   : > { %4237 = vmatpush.msra.mxu1 %v8234_v33 }
 0x8b5   : > { %4238 = vmatpush.msra.mxu1 %v8235_v12 }
 0x8b6   : > { %4239 = vmatmul.f32.vlgmr.msra.gmra.mxu1 %v4029_v53 }
 0x8df   : > { %v4160_v45 = vpop.f32.mrf.mxu0 }
 0x8e5   : > { %v4200_v20 = vpop.f32.mrf.mxu2 }
 0x8ea   : > { %v4220_v40 = vpop.f32.mrf.mxu3 }
 0x8eb   : > { %v7674_v26 = vadd.f32 %v4220_v40, %v4200_v20 }
 0x8ed   : > { %v4318_v25 = vmul.f32 %v7674_v26, %v7674_v26 }
 0x8f8   : > { %v4280_v27 = vpop.f32.mrf.mxu0 }
 0x913   : > { %v4180_v9 = vpop.f32.mrf.mxu1 }
 0x914   : > { %v7672_v52 = vadd.f32 %v4180_v9, %v4160_v45 }
 0x916   : > { %v4317_v63 = vmul.f32 %v7672_v52, %v7672_v52  ;;  %v4305_v38 = vadd.f32 %v7674_v26, %v7672_v52 }
 0x918   : > { %v4321_v5 = vadd.f32 %v4318_v25, %v4317_v63 }
 0x919   : > { %v4260_v21 = vpop.f32.mrf.mxu3 }
 0x91f   : > { %v4300_v8 = vpop.f32.mrf.mxu2 }
 0x920   : > { %v7680_v39 = vadd.f32 %v4300_v8, %v4280_v27 }
 0x922   : > { %v4320_v6 = vmul.f32 %v7680_v39, %v7680_v39 }
 0x933   : > { %v4240_v59 = vpop.f32.mrf.mxu1 }
 0x934   : > { %v4261_v16 = vadd.f32 %v4260_v21, %v4240_v59 }
 0x936   : > { %v4306_v24 = vadd.f32 %v4305_v38, %v4261_v16  ;;  %v4319_v13 = vmul.f32 %v4261_v16, %v4261_v16 }
 0x938   : > { %v4307_v62 = vadd.f32 %v4306_v24, %v7680_v39  ;;  %v4322_v46 = vadd.f32 %v4321_v5, %v4319_v13 }
 0x93a   : > { %4308 = vadd.xlane.f32.xlu2 %v4307_v62  ;;  %v4323_v43 = vadd.f32 %v4322_v46, %v4320_v6 }
 0x93c   : > { %4324 = vadd.xlane.f32.xlu0 %v4323_v43 }
 0x9ad   : > { %v4309_v19 = vpop.xlane.xlu2 %4308 }
 0x9ae   : > { %v4310_v31 = vrot.slane %v4309_v19, 4 }
 0x9af   : > { %v4325_v34 = vpop.xlane.xlu0 %4324 }
 0x9b0   : > { %v4311_v17 = vadd.f32 %v4310_v31, %v4309_v19  ;;  %v4326_v3 = vrot.slane %v4325_v34, 4 }
 0x9b2   : > { %v4312_v30 = vrot.slane %v4311_v17, 2  ;;  %v4327_v36 = vadd.f32 %v4326_v3, %v4325_v34 }
 0x9b4   : > { %v4313_v53 = vadd.f32 %v4312_v30, %v4311_v17  ;;  %v4328_v41 = vrot.slane %v4327_v36, 2 }
 0x9b6   : > { %v4329_v4 = vadd.f32 %v4328_v41, %v4327_v36  ;;  %v4314_v35 = vrot.slane %v4313_v53, 1 }
 0x9b8   : > { %v4315_v14 = vadd.f32 %v4314_v35, %v4313_v53  ;;  %v4330_v7 = vrot.slane %v4329_v4, 1 }
 0x9ba   : > { %4538 = vpush %v4315_v14  ;;  %v4331_v22 = vadd.f32 %v4330_v7, %v4329_v4 }
 0x9bc   : > { %4540 = vpush %v4331_v22 }
 0x9eb   : > { %s4539_s10 = spop %4538 }
 0x9ec   : > { %s4341_s11 = smul.f32 %s4539_s10, %s6333_s13 }
 0x9ed   : > { %s4541_s15 = spop %4540 }
 0x9ee   : > { %s4351_s17 = smul.f32 %s4341_s11, %s4341_s11  ;;  %v4354_v10 = vstv %s4341_s11 }
 0x9ef   : > { %s4350_s20 = smul.f32 %s4541_s15, %s6333_s13  ;;  %s4506_s13 = sshll.u32 %s5192_s25, 5  ;;  %v4355_v49 = vsub.f32 %v7672_v52, %v4354_v10  ;;  %v4356_v61 = vsub.f32 %v7674_v26, %v4354_v10  ;;  %v4357_v37 = vsub.f32 %v4261_v16, %v4354_v10  ;;  %v4358_v55 = vsub.f32 %v7680_v39, %v4354_v10 }
 0x9f0   : > { %s340_s12 = scalar_lea.vmem [#allocation11], %s4506_s13 }
 0x9f1   : > { %s4352_s21 = ssub.f32 %s4350_s20, %s4351_s17  ;;  %s4413_s19 = sshll.u32 %s340_s12, 4  ;;  %s4414_s19 = int_to_ptr.vmem [resolvable:$true] %s4413_s19 }
 0x9f3   : > { %s4353_s2 = smax.f32 %s5055_s29, %s4352_s21 }
 0x9f4   : > { %s4359_s3 = sadd.f32 1e-05, %s4353_s2 }
 0x9f6   : > { %v4360_v58 = vstv %s4359_s3 }
 0x9f7   : > { %4898 = vrsqrt.f32 %v4360_v58  ;;  %vm4367_vm12 = vweird.f32 %v4360_v58 }
 0x9fd   : > { %v4899_v11 = vpop.eup %4898 }
 0x9fe   : > { %v4362_v15 = vmul.f32 %v4899_v11, %v4360_v58  ;;  %vm4368_vm6 = vweird.f32 %v4899_v11 }
 0x9ff   : > { %vm4369_vm5 = vmor %vm4367_vm12, %vm4368_vm6 }
 0xa00   : > { %v4363_v60 = vmul.f32 %v4899_v11, %v4362_v15 }
 0xa02   : > { %v4364_v29 = vmul.f32 0.5, %v4363_v60 }
 0xa04   : > { %v4365_v2 = vsub.f32 1.5, %v4364_v29 }
 0xa06   : > { %v4366_v54 = vmul.f32 %v4899_v11, %v4365_v2 }
 0xa08   : > { %v4370_v28 = vsel %vm4369_vm5, %v4899_v11, %v4366_v54 }
 0xa09   : > { %4542 = vpush %v4370_v28 }
 0xa3a   : > { %s4543_s29 = spop %4542 }
 0xa3b   : > { %v4372_v57 = vstv %s4543_s29 }
 0xa3c   : > { %v4373_v18 = vmul.f32 %v4372_v57, %v4355_v49  ;;  %v4374_v32 = vmul.f32 %v4372_v57, %v4356_v61  ;;  %v4375_v1 = vmul.f32 %v4372_v57, %v4357_v37  ;;  %v4376_v47 = vmul.f32 %v4372_v57, %v4358_v55 }
 0xa3e   : > { %v4382_v50 = vmul.f32 %v4380_v44, %v4373_v18  ;;  %v4383_v0 = vmul.f32 %v4380_v44, %v4374_v32  ;;  %v4384_v42 = vmul.f32 %v4380_v44, %v4375_v1  ;;  %v4385_v56 = vmul.f32 %v4380_v44, %v4376_v47 }
 0xa40   : > { %v4391_v23 = vadd.f32 %v4389_v51, %v4382_v50  ;;  %v4392_v48 = vadd.f32 %v4389_v51, %v4383_v0  ;;  %v4393_v33 = vadd.f32 %v4389_v51, %v4384_v42  ;;  %v4394_v12 = vadd.f32 %v4389_v51, %v4385_v56 }
 0xa42   : > { %4395 = vst [vmem:[%s340_s12] sm:$0xff] %v4391_v23 }
 0xa43   : > { %4396 = vst [vmem:[%s340_s12 + $0x8] sm:$0xff] %v4392_v48 }
 0xa44   : > { %4397 = vst [vmem:[%s340_s12 + $0x10] sm:$0xff] %v4393_v33 }
 0xa45   : > { %4398 = vst [vmem:[%s340_s12 + $0x18] sm:$0xff] %v4394_v12 }
 0xa46   : > { %4987 = shalt.err (!%p4984_p9)
}
 0xa47   : > { %4550 = dma.vmem_to_hbm [thread:$0]  (%p5161_p13), %s4414_s19, 512, %s4416_s1, %s4400_s22  }
 0xa48 PF: > { %s8236_s25 = sld [smem:[#allocation17_spill]]  ;;  %s4427_s15 = sand.u32 1, %s5018_s27  }
 0xa49   : > { %s4428_s17 = scalar_lea.sflag [#allocation8], %s4427_s15 }
 0xa4e   : > { %p8237_p10 = scmp.ge.s32.totalorder %s8236_s25, 2 }
 0xa50   : > { %p4561_p11 = pnand %p8237_p10, %p5166_p4 }
 0xa52   : > { %p4562_p0 = pneg %p4561_p11 }
 0xa54   : > { %5013 = dma.done.wait (%p4562_p0), %s4428_s17, 512  }
 0xa55   : > { %5015 = vsyncadd (%p4562_p0), %s4428_s17, 4294966784  ;;  %s8238_s30 = sld [smem:[#allocation18_spill]] }
 0xa56   : > { %s8239_s27 = sld [smem:[#allocation15_spill]] }
 0xa57   : > { %s8240_s28 = sld [smem:[#allocation16_spill]] }
 0xa58   : > { %s8241_s29 = sld [smem:[#allocation19_spill]] }
 0xa5b   : > { %p22_p2 = scmp.ge.s32.totalorder %s8238_s30, 4  }
 0xa5d   :  { %24 = sbr.rel (!%p22_p2) target bundleno = 12 (0xc), region = 192 }
 0xa62   :  { %4434 = vsyncpa [#allocation7], 1 }
 0xa63   :  { %4436 = vsyncpa [#allocation7 + $0x1], 1 }
 0xa64   :  { %4437 = vsyncpa [#allocation10], 1 }
 0xa65   :  { %4438 = vsyncpa [#allocation8], 1 }
 0xa66   :  { %4440 = vsyncpa [#allocation8 + $0x1], 1 }

</bundles_post_ra>
